<compile_context>
chip_gen: v7x
topology: tpu7x:2x2x1
jax: 0.10.0
libtpu: 0.0.40
codegen_flags: <defaults>
</compile_context>

<pallas_src>
import functools
import math

import jax
import jax.numpy as jnp
from jax.experimental import pallas as pl
from jax.experimental.pallas import tpu as pltpu


def _round_up(x, m):
    return ((x + m - 1) // m) * m


# ----------------------------------------------------------------------------
# Pallas kernel: full decoder stack for ONE batch element (grid over batch).
# ----------------------------------------------------------------------------
def decoder_kernel(
    # per-batch inputs ---------------------------------------------------------
    z_ref,       # (1, 1, E_pad)   latent code
    maskb_ref,   # (1, 1, T)       additive key-padding bias: 0 = valid, -1e30 = masked
    maskk_ref,   # (1, T, 1)       1.0 = valid frame, 0.0 = padded frame (final zeroing)
    # batch-independent constants / weights ------------------------------------
    tgt0_ref,    # (T, E_pad)      norm_pe(PE[:T])  (timequeries are zeros)
    wqkv_ref,    # (L, E_pad, 3*HP) fused self-attn QKV, head-padded columns (bf16)
    bqkv_ref,    # (L, 1, 3*HP)
    wo_ref,      # (L, HP, E_pad)   self-attn out_proj, head-padded rows (bf16)
    bo_ref,      # (L, 1, E_pad)
    wvc_ref,     # (L, E_pad, E_pad) cross-attn V projection (bf16)
    bvc_ref,     # (L, 1, E_pad)
    woc_ref,     # (L, E_pad, E_pad) cross-attn out_proj (bf16)
    boc_ref,     # (L, 1, E_pad)
    w1_ref,      # (L, E_pad, FF_pad)  (bf16)
    b1_ref,      # (L, 1, FF_pad)
    w2_ref,      # (L, FF_pad, E_pad)  (bf16)
    b2_ref,      # (L, 1, E_pad)
    ln1g_ref, ln1b_ref,   # (L, 1, E_pad)
    ln2g_ref, ln2b_ref,   # (L, 1, E_pad)
    ln3g_ref, ln3b_ref,   # (L, 1, E_pad)
    dng_ref, dnb_ref,     # (1, E_pad)   decoder_norm
    wf_ref,      # (E_pad, F_out_pad)   finallayer (bf16)
    bf_ref,      # (1, F_out_pad)
    # output -------------------------------------------------------------------
    out_ref,     # (1, T, F_out_pad)
    # static config ------------------------------------------------------------
    *, T, E, E_pad, H, Dh, DhP, L, mm_dtype,
):
    f32 = jnp.float32
    HP = H * DhP
    inv_E = 1.0 / E
    scale = 1.0 / math.sqrt(Dh)

    lane_valid = None
    if E != E_pad:
        lane_valid = (jax.lax.broadcasted_iota(jnp.int32, (1, E_pad), 1) < E).astype(f32)

    def layernorm(x, g=None, b=None):
        # statistics over the TRUE E lanes (padded lanes of x are exactly zero)
        m = jnp.sum(x, axis=-1, keepdims=True) * inv_E
        c = x - m
        if lane_valid is not None:
            c = c * lane_valid
        v = jnp.sum(c * c, axis=-1, keepdims=True) * inv_E
        y = c * jax.lax.rsqrt(v + 1e-5)
        if g is not None:
            y = y * g + b        # padded gamma/beta are zero -> padded lanes stay zero
        return y

    def gelu(x):
        # TODO(synk): tanh-approx GELU; PyTorch activation='gelu' is exact erf GELU.
        c0 = 0.7978845608028654  # sqrt(2/pi)
        return 0.5 * x * (1.0 + jnp.tanh(c0 * (x + 0.044715 * x * x * x)))

    def mm(a, w):
        return jnp.dot(a.astype(mm_dtype), w.astype(mm_dtype),
                       preferred_element_type=f32)

    # --- memory path: z -> F.layer_norm(z, (E,)) (no affine) -------------------
    z_ln = layernorm(z_ref[0])                                   # (1, E_pad)

    # Cross-attention memory has length 1: softmax over a single key is identically 1,
    # so the whole block reduces exactly to out_proj(V(memory)) (Q/K cross weights are dead).
    # It is also constant over query positions -> compute once per layer, add as a row bias.
    cross = []
    for l in range(L):
        v_mem = mm(z_ln, wvc_ref[l]) + bvc_ref[l]                # (1, E_pad)
        cross.append(mm(v_mem, woc_ref[l]) + boc_ref[l])         # (1, E_pad)

    mask_bias = maskb_ref[0]                                     # (1, T)
    mask_keep = maskk_ref[0]                                     # (T, 1)

    # tgt = norm_pe(0 + PE[:T]); dropouts are identity in eval mode
    h = tgt0_ref[...]                                            # (T, E_pad)

    # --- num_layers x post-norm TransformerDecoderLayer ------------------------
    # TODO(synk): static unroll is fine for tiny L; move to a grid axis / fori_loop if L grows.
    for l in range(L):
        # self-attention: single fused QKV matmul (one MXU weight push)
        qkv = mm(h, wqkv_ref[l]) + bqkv_ref[l]                   # (T, 3*HP)
        heads = []
        for hh in range(H):
            # each head lives in its own 128-lane-aligned slot -> cheap, unmasked slices
            q_h = qkv[:, hh * DhP:(hh + 1) * DhP]
            k_h = qkv[:, HP + hh * DhP:HP + (hh + 1) * DhP]
            v_h = qkv[:, 2 * HP + hh * DhP:2 * HP + (hh + 1) * DhP]
            s = jax.lax.dot_general(
                q_h.astype(mm_dtype), k_h.astype(mm_dtype),
                (((1,), (1,)), ((), ())),
                preferred_element_type=f32) * scale              # (T, T)
            s = s + mask_bias                                    # src key-padding mask
            s = s - jnp.max(s, axis=-1, keepdims=True)
            p = jnp.exp(s)
            p = p * pl.reciprocal(jnp.sum(p, axis=-1, keepdims=True), approx=True)
            heads.append(mm(p, v_h))                             # (T, DhP)
        attn = jnp.concatenate(heads, axis=-1)                   # (T, HP), 128-aligned concat
        attn = mm(attn, wo_ref[l]) + bo_ref[l]                   # (T, E_pad)
        h = layernorm(h + attn, ln1g_ref[l], ln1b_ref[l])

        # cross-attention block (constant over queries, see above)
        h = layernorm(h + cross[l], ln2g_ref[l], ln2b_ref[l])

        # feed-forward
        ff = gelu(mm(h, w1_ref[l]) + b1_ref[l])
        ff = mm(ff, w2_ref[l]) + b2_ref[l]
        h = layernorm(h + ff, ln3g_ref[l], ln3b_ref[l])

    # --- decoder_norm + finallayer + frame masking ------------------------------
    dec = layernorm(h, dng_ref[...], dnb_ref[...])               # (T, E_pad)
    # TODO(synk): KANLayer has no upstream definition; modeled as its linear projection.
    skel = mm(dec, wf_ref[...]) + bf_ref[...]                    # (T, F_out_pad)
    out_ref[0] = skel * mask_keep                                # skel_feats[~mask_t] = 0


# ----------------------------------------------------------------------------
# Glue: PE table, synthetic params, one-time weight preparation, forward wrapper.
# ----------------------------------------------------------------------------
def build_pe(seq_len, d_model):
    position = jnp.arange(seq_len, dtype=jnp.float32)[:, None]
    div_term = jnp.exp(jnp.arange(0, d_model, 2, dtype=jnp.float32)
                       * (-math.log(10000.0) / d_model))
    pe = jnp.zeros((seq_len, d_model), jnp.float32)
    pe = pe.at[:, 0::2].set(jnp.sin(position * div_term))
    pe = pe.at[:, 1::2].set(jnp.cos(position * div_term))
    return pe


def init_params(key, *, njoints, nfeats, latent_dim, ff_size, num_layers):
    """Synthetic parameters in PyTorch layouts (no checkpoint available)."""
    E, FF, L = latent_dim, ff_size, num_layers
    F_out = njoints * nfeats
    ks = jax.random.split(key, 8)
    s = 0.05

    def nrm(k, shape):
        return (jax.random.normal(k, shape) * s).astype(jnp.float32)

    p = dict(
        # PositionalEncoding.norm_pe
        pe_g=jnp.ones((E,), jnp.float32), pe_b=jnp.zeros((E,), jnp.float32),
        # per-layer TransformerDecoderLayer params
        sa_in_w=nrm(ks[0], (L, 3 * E, E)), sa_in_b=jnp.zeros((L, 3 * E), jnp.float32),
        sa_out_w=nrm(ks[1], (L, E, E)),    sa_out_b=jnp.zeros((L, E), jnp.float32),
        ca_in_w=nrm(ks[2], (L, 3 * E, E)), ca_in_b=jnp.zeros((L, 3 * E), jnp.float32),
        ca_out_w=nrm(ks[3], (L, E, E)),    ca_out_b=jnp.zeros((L, E), jnp.float32),
        ff_w1=nrm(ks[4], (L, FF, E)),      ff_b1=jnp.zeros((L, FF), jnp.float32),
        ff_w2=nrm(ks[5], (L, E, FF)),      ff_b2=jnp.zeros((L, E), jnp.float32),
        ln1_g=jnp.ones((L, E), jnp.float32), ln1_b=jnp.zeros((L, E), jnp.float32),
        ln2_g=jnp.ones((L, E), jnp.float32), ln2_b=jnp.zeros((L, E), jnp.float32),
        ln3_g=jnp.ones((L, E), jnp.float32), ln3_b=jnp.zeros((L, E), jnp.float32),
        dec_g=jnp.ones((E,), jnp.float32), dec_b=jnp.zeros((E,), jnp.float32),
        # finallayer: KANLayer(latent_dim, input_feats) modeled as Linear (see kernel TODO)
        fin_w=nrm(ks[6], (F_out, E)), fin_b=jnp.zeros((F_out,), jnp.float32),
    )
    return p


def prepare_params(params, *, num_heads, njoints, nfeats, matmul_dtype=jnp.bfloat16):
    """One-time (outside the per-call path): transpose to (in,out), zero-pad every
    feature axis to a multiple of 128 lanes (per-head padding for self-attention so the
    head split is preserved), stack per-layer weights, and cast matmul RHS to bf16."""
    E = params["dec_g"].shape[0]
    L, FF = params["ff_w1"].shape[0], params["ff_w1"].shape[1]
    F_out = params["fin_w"].shape[0]
    H = num_heads
    assert E % H == 0
    Dh = E // H
    E_pad = _round_up(E, 128)
    DhP = _round_up(Dh, 128)          # each head gets a full 128-lane slot
    HP = H * DhP
    FF_pad = _round_up(FF, 128)
    F_out_pad = _round_up(F_out, 128)

    def pad2(w, r, c):
        return jnp.pad(w, ((0, r - w.shape[0]), (0, c - w.shape[1])))

    def head_cols(Wt):                 # Wt (E, E): x @ Wt, output columns ordered (head, d)
        W3 = Wt.reshape(E, H, Dh)
        W3 = jnp.pad(W3, ((0, E_pad - E), (0, 0), (0, DhP - Dh)))
        return W3.reshape(E_pad, HP)

    def head_cols_b(b):                # (E,)
        b3 = jnp.pad(b.reshape(H, Dh), ((0, 0), (0, DhP - Dh)))
        return b3.reshape(1, HP)

    def head_rows(Wt):                 # Wt (E, E) = W_o^T, input rows ordered (head, d)
        W3 = Wt.reshape(H, Dh, E)
        W3 = jnp.pad(W3, ((0, 0), (0, DhP - Dh), (0, E_pad - E)))
        return W3.reshape(HP, E_pad)

    wqkv, bqkv, wo, bo = [], [], [], []
    wvc, bvc, woc, boc = [], [], [], []
    w1, b1, w2, b2 = [], [], [], []
    for l in range(L):
        W = params["sa_in_w"][l]                               # (3E, E) PyTorch (out, in)
        Wq, Wk, Wv = W[:E].T, W[E:2 * E].T, W[2 * E:].T
        bq = params["sa_in_b"][l][:E]
        bk = params["sa_in_b"][l][E:2 * E]
        bv = params["sa_in_b"][l][2 * E:]
        wqkv.append(jnp.concatenate([head_cols(Wq), head_cols(Wk), head_cols(Wv)], axis=1))
        bqkv.append(jnp.concatenate([head_cols_b(bq), head_cols_b(bk), head_cols_b(bv)], axis=1))
        wo.append(head_rows(params["sa_out_w"][l].T))
        bo.append(pad2(params["sa_out_b"][l][None, :], 1, E_pad))
        # cross-attention: only the V / out_proj path is live (memory length 1)
        Wc = params["ca_in_w"][l]
        wvc.append(pad2(Wc[2 * E:].T, E_pad, E_pad))
        bvc.append(pad2(params["ca_in_b"][l][2 * E:][None, :], 1, E_pad))
        woc.append(pad2(params["ca_out_w"][l].T, E_pad, E_pad))
        boc.append(pad2(params["ca_out_b"][l][None, :], 1, E_pad))
        w1.append(pad2(params["ff_w1"][l].T, E_pad, FF_pad))
        b1.append(pad2(params["ff_b1"][l][None, :], 1, FF_pad))
        w2.append(pad2(params["ff_w2"][l].T, FF_pad, E_pad))
        b2.append(pad2(params["ff_b2"][l][None, :], 1, E_pad))

    def stack(xs):
        return jnp.stack(xs, axis=0)

    def padln(x):                      # (L, E) -> (L, 1, E_pad); zero pad keeps pad lanes zero
        return jnp.pad(x, ((0, 0), (0, E_pad - E)))[:, None, :]

    weights = dict(
        wqkv=stack(wqkv).astype(matmul_dtype), bqkv=stack(bqkv),
        wo=stack(wo).astype(matmul_dtype),     bo=stack(bo),
        wvc=stack(wvc).astype(matmul_dtype),   bvc=stack(bvc),
        woc=stack(woc).astype(matmul_dtype),   boc=stack(boc),
        w1=stack(w1).astype(matmul_dtype),     b1=stack(b1),
        w2=stack(w2).astype(matmul_dtype),     b2=stack(b2),
        ln1_g=padln(params["ln1_g"]), ln1_b=padln(params["ln1_b"]),
        ln2_g=padln(params["ln2_g"]), ln2_b=padln(params["ln2_b"]),
        ln3_g=padln(params["ln3_g"]), ln3_b=padln(params["ln3_b"]),
        dec_g=jnp.pad(params["dec_g"], (0, E_pad - E))[None, :],
        dec_b=jnp.pad(params["dec_b"], (0, E_pad - E))[None, :],
        wf=pad2(params["fin_w"].T, E_pad, F_out_pad).astype(matmul_dtype),
        bf=pad2(params["fin_b"][None, :], 1, F_out_pad),
    )
    config = dict(E=E, E_pad=E_pad, H=H, Dh=Dh, DhP=DhP, FF=FF, FF_pad=FF_pad,
                  F_out=F_out, F_out_pad=F_out_pad, L=L,
                  njoints=njoints, nfeats=nfeats)
    return dict(config=config, weights=weights,
                pe_g=params["pe_g"], pe_b=params["pe_b"],
                matmul_dtype=matmul_dtype)


_WEIGHT_ORDER = ["wqkv", "bqkv", "wo", "bo", "wvc", "bvc", "woc", "boc",
                 "w1", "b1", "w2", "b2", "ln1_g", "ln1_b", "ln2_g", "ln2_b",
                 "ln3_g", "ln3_b", "dec_g", "dec_b", "wf", "bf"]


def decoder_transformer_forward(prepared, batch):
    cfg = prepared["config"]
    z = batch["z"].astype(jnp.float32)        # (bs, E)
    mask = batch["mask"]                      # (bs, nframes) bool
    # 'y' and 'lengths' are read by the PyTorch forward but never used downstream.
    bs, T = mask.shape
    E, E_pad = cfg["E"], cfg["E_pad"]
    F_out, F_out_pad = cfg["F_out"], cfg["F_out_pad"]
    nj, nf = cfg["njoints"], cfg["nfeats"]

    # timequeries are all zeros, so the PositionalEncoding block reduces to the constant
    # norm_pe(PE[:T]) — batch independent, precomputed here exactly (dropout = identity).
    pe = build_pe(T, E)
    mu = jnp.mean(pe, axis=-1, keepdims=True)
    var = jnp.mean((pe - mu) ** 2, axis=-1, keepdims=True)
    tgt0 = (pe - mu) * jax.lax.rsqrt(var + 1e-5) * prepared["pe_g"] + prepared["pe_b"]
    tgt0 = jnp.pad(tgt0, ((0, 0), (0, E_pad - E)))               # (T, E_pad)

    z_in = jnp.pad(z, ((0, 0), (0, E_pad - E)))[:, None, :]      # (bs, 1, E_pad)
    maskf = mask.astype(jnp.float32)
    mask_bias = ((1.0 - maskf) * (-1e30))[:, None, :]            # (bs, 1, T)  additive bias
    mask_keep = maskf[:, :, None]                                # (bs, T, 1)  output zeroing

    w = prepared["weights"]
    weight_args = [w[name] for name in _WEIGHT_ORDER]

    kernel = functools.partial(
        decoder_kernel, T=T, E=E, E_pad=E_pad, H=cfg["H"], Dh=cfg["Dh"],
        DhP=cfg["DhP"], L=cfg["L"], mm_dtype=prepared["matmul_dtype"])

    per_batch_specs = [
        pl.BlockSpec((1, 1, E_pad), lambda b: (b, 0, 0)),        # z
        pl.BlockSpec((1, 1, T), lambda b: (b, 0, 0)),            # mask_bias
        pl.BlockSpec((1, T, 1), lambda b: (b, 0, 0)),            # mask_keep
        pl.BlockSpec((T, E_pad), lambda b: (0, 0)),              # tgt0 (constant)
    ]
    weight_specs = [pl.BlockSpec(a.shape, lambda b, n=a.ndim: (0,) * n)
                    for a in weight_args]

    out = pl.pallas_call(
        kernel,
        grid=(bs,),                                              # parallel over batch
        out_shape=jax.ShapeDtypeStruct((bs, T, F_out_pad), jnp.float32),
        in_specs=per_batch_specs + weight_specs,
        out_specs=pl.BlockSpec((1, T, F_out_pad), lambda b: (b, 0, 0)),
        compiler_params=pltpu.CompilerParams(
            dimension_semantics=("parallel",),
            vmem_limit_bytes=32 * 1024 * 1024),                  # explicit budget (v7x-safe)
    )(z_in, mask_bias, mask_keep, tgt0, *weight_args)

    # slice off lane padding, then (bs, T, F_out) -> (bs, njoints, nfeats, nframes)
    out = out[:, :, :F_out]
    output = jnp.transpose(out, (0, 2, 1)).reshape(bs, nj, nf, T)
    new_batch = dict(batch)
    new_batch["output"] = output
    return new_batch


# ----------------------------------------------------------------------------
if __name__ == "__main__":
    # small, self-consistent shapes
    bs, njoints, nfeats, num_frames = 2, 4, 4, 8                 # input_feats = 16
    latent_dim, ff_size, num_layers, num_heads = 32, 64, 2, 4

    key = jax.random.PRNGKey(0)
    kz, kp = jax.random.split(key, 2)

    params = init_params(kp, njoints=njoints, nfeats=nfeats, latent_dim=latent_dim,
                         ff_size=ff_size, num_layers=num_layers)
    prepared = prepare_params(params, num_heads=num_heads, njoints=njoints,
                              nfeats=nfeats, matmul_dtype=jnp.bfloat16)

    z = jax.random.normal(kz, (bs, latent_dim), jnp.float32)
    y = jnp.zeros((bs,), jnp.int32)                              # read but unused by forward
    lengths = jnp.array([num_frames, num_frames - 3])
    mask = jnp.arange(num_frames)[None, :] < lengths[:, None]    # (bs, nframes) bool

    batch = {"z": z, "y": y, "mask": mask, "lengths": lengths}
    out_batch = decoder_transformer_forward(prepared, batch)
    out = out_batch["output"]
    jax.block_until_ready(out)

    assert out.shape == (bs, njoints, nfeats, num_frames)
    assert bool(jnp.all(jnp.isfinite(out)))
    # frames beyond each sequence length must be zeroed (skel_feats[~mask_t] = 0)
    assert bool(jnp.all(out[1, :, :, num_frames - 3:] == 0.0))
    print("KERNEL_OK")
</pallas_src>

<mosaic_0001>
module attributes {stable_mosaic.version = 11 : i64} {
  func.func @decoder_kernel(%arg0: i32, %arg1: memref<1x1x128xf32, #tpu.memory_space<vmem>>, %arg2: memref<1x1x8xf32, #tpu.memory_space<vmem>>, %arg3: memref<1x8x1xf32, #tpu.memory_space<vmem>>, %arg4: memref<8x128xf32, #tpu.memory_space<vmem>>, %arg5: memref<2x128x1536xbf16, #tpu.memory_space<vmem>>, %arg6: memref<2x1x1536xf32, #tpu.memory_space<vmem>>, %arg7: memref<2x512x128xbf16, #tpu.memory_space<vmem>>, %arg8: memref<2x1x128xf32, #tpu.memory_space<vmem>>, %arg9: memref<2x128x128xbf16, #tpu.memory_space<vmem>>, %arg10: memref<2x1x128xf32, #tpu.memory_space<vmem>>, %arg11: memref<2x128x128xbf16, #tpu.memory_space<vmem>>, %arg12: memref<2x1x128xf32, #tpu.memory_space<vmem>>, %arg13: memref<2x128x128xbf16, #tpu.memory_space<vmem>>, %arg14: memref<2x1x128xf32, #tpu.memory_space<vmem>>, %arg15: memref<2x128x128xbf16, #tpu.memory_space<vmem>>, %arg16: memref<2x1x128xf32, #tpu.memory_space<vmem>>, %arg17: memref<2x1x128xf32, #tpu.memory_space<vmem>>, %arg18: memref<2x1x128xf32, #tpu.memory_space<vmem>>, %arg19: memref<2x1x128xf32, #tpu.memory_space<vmem>>, %arg20: memref<2x1x128xf32, #tpu.memory_space<vmem>>, %arg21: memref<2x1x128xf32, #tpu.memory_space<vmem>>, %arg22: memref<2x1x128xf32, #tpu.memory_space<vmem>>, %arg23: memref<1x128xf32, #tpu.memory_space<vmem>>, %arg24: memref<1x128xf32, #tpu.memory_space<vmem>>, %arg25: memref<128x128xbf16, #tpu.memory_space<vmem>>, %arg26: memref<1x128xf32, #tpu.memory_space<vmem>>, %arg27: memref<1x8x128xf32, #tpu.memory_space<vmem>>) attributes {dimension_semantics = [#tpu.dimension_semantics<parallel>], iteration_bounds = array<i64: 2>, scalar_prefetch = 0 : i64, scratch_operands = 0 : i64, tpu.core_type = #tpu.core_type<tc>, window_params = [{transform_indices = @transform_0, window_bounds = array<i64: 1, 1, 128>}, {transform_indices = @transform_1, window_bounds = array<i64: 1, 1, 8>}, {transform_indices = @transform_2, window_bounds = array<i64: 1, 8, 1>}, {pipeline_mode = #tpu.pipeline_mode<synchronous>, transform_indices = @transform_3, window_bounds = array<i64: 8, 128>}, {pipeline_mode = #tpu.pipeline_mode<synchronous>, transform_indices = @transform_4, window_bounds = array<i64: 2, 128, 1536>}, {pipeline_mode = #tpu.pipeline_mode<synchronous>, transform_indices = @transform_5, window_bounds = array<i64: 2, 1, 1536>}, {pipeline_mode = #tpu.pipeline_mode<synchronous>, transform_indices = @transform_6, window_bounds = array<i64: 2, 512, 128>}, {pipeline_mode = #tpu.pipeline_mode<synchronous>, transform_indices = @transform_7, window_bounds = array<i64: 2, 1, 128>}, {pipeline_mode = #tpu.pipeline_mode<synchronous>, transform_indices = @transform_8, window_bounds = array<i64: 2, 128, 128>}, {pipeline_mode = #tpu.pipeline_mode<synchronous>, transform_indices = @transform_9, window_bounds = array<i64: 2, 1, 128>}, {pipeline_mode = #tpu.pipeline_mode<synchronous>, transform_indices = @transform_10, window_bounds = array<i64: 2, 128, 128>}, {pipeline_mode = #tpu.pipeline_mode<synchronous>, transform_indices = @transform_11, window_bounds = array<i64: 2, 1, 128>}, {pipeline_mode = #tpu.pipeline_mode<synchronous>, transform_indices = @transform_12, window_bounds = array<i64: 2, 128, 128>}, {pipeline_mode = #tpu.pipeline_mode<synchronous>, transform_indices = @transform_13, window_bounds = array<i64: 2, 1, 128>}, {pipeline_mode = #tpu.pipeline_mode<synchronous>, transform_indices = @transform_14, window_bounds = array<i64: 2, 128, 128>}, {pipeline_mode = #tpu.pipeline_mode<synchronous>, transform_indices = @transform_15, window_bounds = array<i64: 2, 1, 128>}, {pipeline_mode = #tpu.pipeline_mode<synchronous>, transform_indices = @transform_16, window_bounds = array<i64: 2, 1, 128>}, {pipeline_mode = #tpu.pipeline_mode<synchronous>, transform_indices = @transform_17, window_bounds = array<i64: 2, 1, 128>}, {pipeline_mode = #tpu.pipeline_mode<synchronous>, transform_indices = @transform_18, window_bounds = array<i64: 2, 1, 128>}, {pipeline_mode = #tpu.pipeline_mode<synchronous>, transform_indices = @transform_19, window_bounds = array<i64: 2, 1, 128>}, {pipeline_mode = #tpu.pipeline_mode<synchronous>, transform_indices = @transform_20, window_bounds = array<i64: 2, 1, 128>}, {pipeline_mode = #tpu.pipeline_mode<synchronous>, transform_indices = @transform_21, window_bounds = array<i64: 2, 1, 128>}, {pipeline_mode = #tpu.pipeline_mode<synchronous>, transform_indices = @transform_22, window_bounds = array<i64: 1, 128>}, {pipeline_mode = #tpu.pipeline_mode<synchronous>, transform_indices = @transform_23, window_bounds = array<i64: 1, 128>}, {pipeline_mode = #tpu.pipeline_mode<synchronous>, transform_indices = @transform_24, window_bounds = array<i64: 128, 128>}, {pipeline_mode = #tpu.pipeline_mode<synchronous>, transform_indices = @transform_25, window_bounds = array<i64: 1, 128>}, {transform_indices = @transform_26, window_bounds = array<i64: 1, 8, 128>}]} {
    %0 = tpu.iota {dimensions = array<i32: 1>} : vector<1x128xi32>
    %c32_i32 = arith.constant 32 : i32
    %1 = vector.broadcast %c32_i32 : i32 to vector<1x128xi32>
    %2 = arith.cmpi slt, %0, %1 : vector<1x128xi32>
    %3 = arith.extui %2 : vector<1x128xi1> to vector<1x128xi32>
    %4 = arith.sitofp %3 : vector<1x128xi32> to vector<1x128xf32>
    %c0 = arith.constant 0 : index
    %c0_0 = arith.constant 0 : index
    %c0_1 = arith.constant 0 : index
    %5 = vector.load %arg1[%c0, %c0_0, %c0_1] : memref<1x1x128xf32, #tpu.memory_space<vmem>>, vector<1x1x128xf32>
    %6 = vector.shape_cast %5 : vector<1x1x128xf32> to vector<1x128xf32>
    %cst = arith.constant dense<0.000000e+00> : vector<1xf32>
    %7 = vector.multi_reduction <add>, %6, %cst [1] : vector<1x128xf32> to vector<1xf32>
    %8 = vector.shape_cast %7 : vector<1xf32> to vector<1x1xf32>
    %cst_2 = arith.constant 3.125000e-02 : f32
    %9 = vector.broadcast %cst_2 : f32 to vector<1x1xf32>
    %10 = arith.mulf %8, %9 : vector<1x1xf32>
    %11 = vector.broadcast %10 : vector<1x1xf32> to vector<1x128xf32>
    %12 = arith.subf %6, %11 : vector<1x128xf32>
    %13 = arith.mulf %12, %4 : vector<1x128xf32>
    %14 = arith.mulf %13, %13 : vector<1x128xf32>
    %cst_3 = arith.constant dense<0.000000e+00> : vector<1xf32>
    %15 = vector.multi_reduction <add>, %14, %cst_3 [1] : vector<1x128xf32> to vector<1xf32>
    %16 = vector.shape_cast %15 : vector<1xf32> to vector<1x1xf32>
    %cst_4 = arith.constant 3.125000e-02 : f32
    %17 = vector.broadcast %cst_4 : f32 to vector<1x1xf32>
    %18 = arith.mulf %16, %17 : vector<1x1xf32>
    %cst_5 = arith.constant 9.99999974E-6 : f32
    %19 = vector.broadcast %cst_5 : f32 to vector<1x1xf32>
    %20 = arith.addf %18, %19 : vector<1x1xf32>
    %21 = math.rsqrt %20 : vector<1x1xf32>
    %22 = vector.broadcast %21 : vector<1x1xf32> to vector<1x128xf32>
    %23 = arith.mulf %13, %22 : vector<1x128xf32>
    %c0_6 = arith.constant 0 : index
    %c0_7 = arith.constant 0 : index
    %c0_8 = arith.constant 0 : index
    %24 = vector.load %arg9[%c0_6, %c0_7, %c0_8] : memref<2x128x128xbf16, #tpu.memory_space<vmem>>, vector<1x128x128xbf16>
    %25 = vector.shape_cast %24 : vector<1x128x128xbf16> to vector<128x128xbf16>
    %26 = arith.truncf %23 : vector<1x128xf32> to vector<1x128xbf16>
    %cst_9 = arith.constant dense<0.000000e+00> : vector<1x128xf32>
    %27 = tpu.matmul %26, %25, %cst_9 {dimension_numbers = #tpu.dot_dimension_numbers<[1], [0], [0], [1], [0, 0, 1, 1], [], []>} : vector<1x128xbf16>, vector<128x128xbf16>, vector<1x128xf32> -> vector<1x128xf32>
    %c0_10 = arith.constant 0 : index
    %c0_11 = arith.constant 0 : index
    %c0_12 = arith.constant 0 : index
    %28 = vector.load %arg10[%c0_10, %c0_11, %c0_12] : memref<2x1x128xf32, #tpu.memory_space<vmem>>, vector<1x1x128xf32>
    %29 = vector.shape_cast %28 : vector<1x1x128xf32> to vector<1x128xf32>
    %30 = arith.addf %27, %29 : vector<1x128xf32>
    %c0_13 = arith.constant 0 : index
    %c0_14 = arith.constant 0 : index
    %c0_15 = arith.constant 0 : index
    %31 = vector.load %arg11[%c0_13, %c0_14, %c0_15] : memref<2x128x128xbf16, #tpu.memory_space<vmem>>, vector<1x128x128xbf16>
    %32 = vector.shape_cast %31 : vector<1x128x128xbf16> to vector<128x128xbf16>
    %33 = arith.truncf %30 : vector<1x128xf32> to vector<1x128xbf16>
    %cst_16 = arith.constant dense<0.000000e+00> : vector<1x128xf32>
    %34 = tpu.matmul %33, %32, %cst_16 {dimension_numbers = #tpu.dot_dimension_numbers<[1], [0], [0], [1], [0, 0, 1, 1], [], []>} : vector<1x128xbf16>, vector<128x128xbf16>, vector<1x128xf32> -> vector<1x128xf32>
    %c0_17 = arith.constant 0 : index
    %c0_18 = arith.constant 0 : index
    %c0_19 = arith.constant 0 : index
    %35 = vector.load %arg12[%c0_17, %c0_18, %c0_19] : memref<2x1x128xf32, #tpu.memory_space<vmem>>, vector<1x1x128xf32>
    %36 = vector.shape_cast %35 : vector<1x1x128xf32> to vector<1x128xf32>
    %37 = arith.addf %34, %36 : vector<1x128xf32>
    %c1 = arith.constant 1 : index
    %c0_20 = arith.constant 0 : index
    %c0_21 = arith.constant 0 : index
    %38 = vector.load %arg9[%c1, %c0_20, %c0_21] : memref<2x128x128xbf16, #tpu.memory_space<vmem>>, vector<1x128x128xbf16>
    %39 = vector.shape_cast %38 : vector<1x128x128xbf16> to vector<128x128xbf16>
    %40 = arith.truncf %23 : vector<1x128xf32> to vector<1x128xbf16>
    %cst_22 = arith.constant dense<0.000000e+00> : vector<1x128xf32>
    %41 = tpu.matmul %40, %39, %cst_22 {dimension_numbers = #tpu.dot_dimension_numbers<[1], [0], [0], [1], [0, 0, 1, 1], [], []>} : vector<1x128xbf16>, vector<128x128xbf16>, vector<1x128xf32> -> vector<1x128xf32>
    %c1_23 = arith.constant 1 : index
    %c0_24 = arith.constant 0 : index
    %c0_25 = arith.constant 0 : index
    %42 = vector.load %arg10[%c1_23, %c0_24, %c0_25] : memref<2x1x128xf32, #tpu.memory_space<vmem>>, vector<1x1x128xf32>
    %43 = vector.shape_cast %42 : vector<1x1x128xf32> to vector<1x128xf32>
    %44 = arith.addf %41, %43 : vector<1x128xf32>
    %c1_26 = arith.constant 1 : index
    %c0_27 = arith.constant 0 : index
    %c0_28 = arith.constant 0 : index
    %45 = vector.load %arg11[%c1_26, %c0_27, %c0_28] : memref<2x128x128xbf16, #tpu.memory_space<vmem>>, vector<1x128x128xbf16>
    %46 = vector.shape_cast %45 : vector<1x128x128xbf16> to vector<128x128xbf16>
    %47 = arith.truncf %44 : vector<1x128xf32> to vector<1x128xbf16>
    %cst_29 = arith.constant dense<0.000000e+00> : vector<1x128xf32>
    %48 = tpu.matmul %47, %46, %cst_29 {dimension_numbers = #tpu.dot_dimension_numbers<[1], [0], [0], [1], [0, 0, 1, 1], [], []>} : vector<1x128xbf16>, vector<128x128xbf16>, vector<1x128xf32> -> vector<1x128xf32>
    %c1_30 = arith.constant 1 : index
    %c0_31 = arith.constant 0 : index
    %c0_32 = arith.constant 0 : index
    %49 = vector.load %arg12[%c1_30, %c0_31, %c0_32] : memref<2x1x128xf32, #tpu.memory_space<vmem>>, vector<1x1x128xf32>
    %50 = vector.shape_cast %49 : vector<1x1x128xf32> to vector<1x128xf32>
    %51 = arith.addf %48, %50 : vector<1x128xf32>
    %c0_33 = arith.constant 0 : index
    %c0_34 = arith.constant 0 : index
    %c0_35 = arith.constant 0 : index
    %52 = vector.load %arg2[%c0_33, %c0_34, %c0_35] : memref<1x1x8xf32, #tpu.memory_space<vmem>>, vector<1x1x8xf32>
    %53 = vector.shape_cast %52 : vector<1x1x8xf32> to vector<1x8xf32>
    %c0_36 = arith.constant 0 : index
    %c0_37 = arith.constant 0 : index
    %c0_38 = arith.constant 0 : index
    %54 = vector.load %arg3[%c0_36, %c0_37, %c0_38] : memref<1x8x1xf32, #tpu.memory_space<vmem>>, vector<1x8x1xf32>
    %55 = vector.shape_cast %54 : vector<1x8x1xf32> to vector<8x1xf32>
    %c0_39 = arith.constant 0 : index
    %c0_40 = arith.constant 0 : index
    %56 = vector.load %arg4[%c0_39, %c0_40] : memref<8x128xf32, #tpu.memory_space<vmem>>, vector<8x128xf32>
    %c0_41 = arith.constant 0 : index
    %c0_42 = arith.constant 0 : index
    %c0_43 = arith.constant 0 : index
    %57 = vector.load %arg5[%c0_41, %c0_42, %c0_43] : memref<2x128x1536xbf16, #tpu.memory_space<vmem>>, vector<1x128x1536xbf16>
    %58 = vector.shape_cast %57 : vector<1x128x1536xbf16> to vector<128x1536xbf16>
    %59 = arith.truncf %56 : vector<8x128xf32> to vector<8x128xbf16>
    %cst_44 = arith.constant dense<0.000000e+00> : vector<8x1536xf32>
    %60 = tpu.matmul %59, %58, %cst_44 {dimension_numbers = #tpu.dot_dimension_numbers<[1], [0], [0], [1], [0, 0, 1, 1], [], []>} : vector<8x128xbf16>, vector<128x1536xbf16>, vector<8x1536xf32> -> vector<8x1536xf32>
    %c0_45 = arith.constant 0 : index
    %c0_46 = arith.constant 0 : index
    %c0_47 = arith.constant 0 : index
    %61 = vector.load %arg6[%c0_45, %c0_46, %c0_47] : memref<2x1x1536xf32, #tpu.memory_space<vmem>>, vector<1x1x1536xf32>
    %62 = vector.shape_cast %61 : vector<1x1x1536xf32> to vector<1x1536xf32>
    %63 = vector.broadcast %62 : vector<1x1536xf32> to vector<8x1536xf32>
    %64 = arith.addf %60, %63 : vector<8x1536xf32>
    %65 = vector.extract_strided_slice %64 {offsets = [0, 0], sizes = [8, 128], strides = [1, 1]} : vector<8x1536xf32> to vector<8x128xf32>
    %66 = vector.extract_strided_slice %64 {offsets = [0, 512], sizes = [8, 128], strides = [1, 1]} : vector<8x1536xf32> to vector<8x128xf32>
    %67 = vector.extract_strided_slice %64 {offsets = [0, 1024], sizes = [8, 128], strides = [1, 1]} : vector<8x1536xf32> to vector<8x128xf32>
    %68 = arith.truncf %65 : vector<8x128xf32> to vector<8x128xbf16>
    %69 = arith.truncf %66 : vector<8x128xf32> to vector<8x128xbf16>
    %cst_48 = arith.constant dense<0.000000e+00> : vector<8x8xf32>
    %70 = tpu.matmul %68, %69, %cst_48 {dimension_numbers = #tpu.dot_dimension_numbers<[1], [1], [0], [0], [0, 0, 1, 0], [], []>} : vector<8x128xbf16>, vector<8x128xbf16>, vector<8x8xf32> -> vector<8x8xf32>
    %cst_49 = arith.constant 0.353553385 : f32
    %71 = vector.broadcast %cst_49 : f32 to vector<8x8xf32>
    %72 = arith.mulf %70, %71 : vector<8x8xf32>
    %73 = vector.broadcast %53 : vector<1x8xf32> to vector<8x8xf32>
    %74 = arith.addf %72, %73 : vector<8x8xf32>
    %cst_50 = arith.constant dense<0xFF800000> : vector<8xf32>
    %75 = vector.multi_reduction <maximumf>, %74, %cst_50 [1] : vector<8x8xf32> to vector<8xf32>
    %76 = vector.shape_cast %75 : vector<8xf32> to vector<8x1xf32>
    %77 = vector.broadcast %76 : vector<8x1xf32> to vector<8x8xf32>
    %78 = arith.subf %74, %77 : vector<8x8xf32>
    %79 = math.exp %78 : vector<8x8xf32>
    %cst_51 = arith.constant dense<0.000000e+00> : vector<8xf32>
    %80 = vector.multi_reduction <add>, %79, %cst_51 [1] : vector<8x8xf32> to vector<8xf32>
    %81 = vector.shape_cast %80 : vector<8xf32> to vector<8x1xf32>
    %82 = tpu.reciprocal %81 {approx = true} : vector<8x1xf32> -> vector<8x1xf32>
    %83 = vector.broadcast %82 : vector<8x1xf32> to vector<8x8xf32>
    %84 = arith.mulf %79, %83 : vector<8x8xf32>
    %85 = arith.truncf %84 : vector<8x8xf32> to vector<8x8xbf16>
    %86 = arith.truncf %67 : vector<8x128xf32> to vector<8x128xbf16>
    %cst_52 = arith.constant dense<0.000000e+00> : vector<8x128xf32>
    %87 = tpu.matmul %85, %86, %cst_52 {dimension_numbers = #tpu.dot_dimension_numbers<[1], [0], [0], [1], [0, 0, 1, 1], [], []>} : vector<8x8xbf16>, vector<8x128xbf16>, vector<8x128xf32> -> vector<8x128xf32>
    %88 = vector.extract_strided_slice %64 {offsets = [0, 128], sizes = [8, 128], strides = [1, 1]} : vector<8x1536xf32> to vector<8x128xf32>
    %89 = vector.extract_strided_slice %64 {offsets = [0, 640], sizes = [8, 128], strides = [1, 1]} : vector<8x1536xf32> to vector<8x128xf32>
    %90 = vector.extract_strided_slice %64 {offsets = [0, 1152], sizes = [8, 128], strides = [1, 1]} : vector<8x1536xf32> to vector<8x128xf32>
    %91 = arith.truncf %88 : vector<8x128xf32> to vector<8x128xbf16>
    %92 = arith.truncf %89 : vector<8x128xf32> to vector<8x128xbf16>
    %cst_53 = arith.constant dense<0.000000e+00> : vector<8x8xf32>
    %93 = tpu.matmul %91, %92, %cst_53 {dimension_numbers = #tpu.dot_dimension_numbers<[1], [1], [0], [0], [0, 0, 1, 0], [], []>} : vector<8x128xbf16>, vector<8x128xbf16>, vector<8x8xf32> -> vector<8x8xf32>
    %cst_54 = arith.constant 0.353553385 : f32
    %94 = vector.broadcast %cst_54 : f32 to vector<8x8xf32>
    %95 = arith.mulf %93, %94 : vector<8x8xf32>
    %96 = vector.broadcast %53 : vector<1x8xf32> to vector<8x8xf32>
    %97 = arith.addf %95, %96 : vector<8x8xf32>
    %cst_55 = arith.constant dense<0xFF800000> : vector<8xf32>
    %98 = vector.multi_reduction <maximumf>, %97, %cst_55 [1] : vector<8x8xf32> to vector<8xf32>
    %99 = vector.shape_cast %98 : vector<8xf32> to vector<8x1xf32>
    %100 = vector.broadcast %99 : vector<8x1xf32> to vector<8x8xf32>
    %101 = arith.subf %97, %100 : vector<8x8xf32>
    %102 = math.exp %101 : vector<8x8xf32>
    %cst_56 = arith.constant dense<0.000000e+00> : vector<8xf32>
    %103 = vector.multi_reduction <add>, %102, %cst_56 [1] : vector<8x8xf32> to vector<8xf32>
    %104 = vector.shape_cast %103 : vector<8xf32> to vector<8x1xf32>
    %105 = tpu.reciprocal %104 {approx = true} : vector<8x1xf32> -> vector<8x1xf32>
    %106 = vector.broadcast %105 : vector<8x1xf32> to vector<8x8xf32>
    %107 = arith.mulf %102, %106 : vector<8x8xf32>
    %108 = arith.truncf %107 : vector<8x8xf32> to vector<8x8xbf16>
    %109 = arith.truncf %90 : vector<8x128xf32> to vector<8x128xbf16>
    %cst_57 = arith.constant dense<0.000000e+00> : vector<8x128xf32>
    %110 = tpu.matmul %108, %109, %cst_57 {dimension_numbers = #tpu.dot_dimension_numbers<[1], [0], [0], [1], [0, 0, 1, 1], [], []>} : vector<8x8xbf16>, vector<8x128xbf16>, vector<8x128xf32> -> vector<8x128xf32>
    %111 = vector.extract_strided_slice %64 {offsets = [0, 256], sizes = [8, 128], strides = [1, 1]} : vector<8x1536xf32> to vector<8x128xf32>
    %112 = vector.extract_strided_slice %64 {offsets = [0, 768], sizes = [8, 128], strides = [1, 1]} : vector<8x1536xf32> to vector<8x128xf32>
    %113 = vector.extract_strided_slice %64 {offsets = [0, 1280], sizes = [8, 128], strides = [1, 1]} : vector<8x1536xf32> to vector<8x128xf32>
    %114 = arith.truncf %111 : vector<8x128xf32> to vector<8x128xbf16>
    %115 = arith.truncf %112 : vector<8x128xf32> to vector<8x128xbf16>
    %cst_58 = arith.constant dense<0.000000e+00> : vector<8x8xf32>
    %116 = tpu.matmul %114, %115, %cst_58 {dimension_numbers = #tpu.dot_dimension_numbers<[1], [1], [0], [0], [0, 0, 1, 0], [], []>} : vector<8x128xbf16>, vector<8x128xbf16>, vector<8x8xf32> -> vector<8x8xf32>
    %cst_59 = arith.constant 0.353553385 : f32
    %117 = vector.broadcast %cst_59 : f32 to vector<8x8xf32>
    %118 = arith.mulf %116, %117 : vector<8x8xf32>
    %119 = vector.broadcast %53 : vector<1x8xf32> to vector<8x8xf32>
    %120 = arith.addf %118, %119 : vector<8x8xf32>
    %cst_60 = arith.constant dense<0xFF800000> : vector<8xf32>
    %121 = vector.multi_reduction <maximumf>, %120, %cst_60 [1] : vector<8x8xf32> to vector<8xf32>
    %122 = vector.shape_cast %121 : vector<8xf32> to vector<8x1xf32>
    %123 = vector.broadcast %122 : vector<8x1xf32> to vector<8x8xf32>
    %124 = arith.subf %120, %123 : vector<8x8xf32>
    %125 = math.exp %124 : vector<8x8xf32>
    %cst_61 = arith.constant dense<0.000000e+00> : vector<8xf32>
    %126 = vector.multi_reduction <add>, %125, %cst_61 [1] : vector<8x8xf32> to vector<8xf32>
    %127 = vector.shape_cast %126 : vector<8xf32> to vector<8x1xf32>
    %128 = tpu.reciprocal %127 {approx = true} : vector<8x1xf32> -> vector<8x1xf32>
    %129 = vector.broadcast %128 : vector<8x1xf32> to vector<8x8xf32>
    %130 = arith.mulf %125, %129 : vector<8x8xf32>
    %131 = arith.truncf %130 : vector<8x8xf32> to vector<8x8xbf16>
    %132 = arith.truncf %113 : vector<8x128xf32> to vector<8x128xbf16>
    %cst_62 = arith.constant dense<0.000000e+00> : vector<8x128xf32>
    %133 = tpu.matmul %131, %132, %cst_62 {dimension_numbers = #tpu.dot_dimension_numbers<[1], [0], [0], [1], [0, 0, 1, 1], [], []>} : vector<8x8xbf16>, vector<8x128xbf16>, vector<8x128xf32> -> vector<8x128xf32>
    %134 = vector.extract_strided_slice %64 {offsets = [0, 384], sizes = [8, 128], strides = [1, 1]} : vector<8x1536xf32> to vector<8x128xf32>
    %135 = vector.extract_strided_slice %64 {offsets = [0, 896], sizes = [8, 128], strides = [1, 1]} : vector<8x1536xf32> to vector<8x128xf32>
    %136 = vector.extract_strided_slice %64 {offsets = [0, 1408], sizes = [8, 128], strides = [1, 1]} : vector<8x1536xf32> to vector<8x128xf32>
    %137 = arith.truncf %134 : vector<8x128xf32> to vector<8x128xbf16>
    %138 = arith.truncf %135 : vector<8x128xf32> to vector<8x128xbf16>
    %cst_63 = arith.constant dense<0.000000e+00> : vector<8x8xf32>
    %139 = tpu.matmul %137, %138, %cst_63 {dimension_numbers = #tpu.dot_dimension_numbers<[1], [1], [0], [0], [0, 0, 1, 0], [], []>} : vector<8x128xbf16>, vector<8x128xbf16>, vector<8x8xf32> -> vector<8x8xf32>
    %cst_64 = arith.constant 0.353553385 : f32
    %140 = vector.broadcast %cst_64 : f32 to vector<8x8xf32>
    %141 = arith.mulf %139, %140 : vector<8x8xf32>
    %142 = vector.broadcast %53 : vector<1x8xf32> to vector<8x8xf32>
    %143 = arith.addf %141, %142 : vector<8x8xf32>
    %cst_65 = arith.constant dense<0xFF800000> : vector<8xf32>
    %144 = vector.multi_reduction <maximumf>, %143, %cst_65 [1] : vector<8x8xf32> to vector<8xf32>
    %145 = vector.shape_cast %144 : vector<8xf32> to vector<8x1xf32>
    %146 = vector.broadcast %145 : vector<8x1xf32> to vector<8x8xf32>
    %147 = arith.subf %143, %146 : vector<8x8xf32>
    %148 = math.exp %147 : vector<8x8xf32>
    %cst_66 = arith.constant dense<0.000000e+00> : vector<8xf32>
    %149 = vector.multi_reduction <add>, %148, %cst_66 [1] : vector<8x8xf32> to vector<8xf32>
    %150 = vector.shape_cast %149 : vector<8xf32> to vector<8x1xf32>
    %151 = tpu.reciprocal %150 {approx = true} : vector<8x1xf32> -> vector<8x1xf32>
    %152 = vector.broadcast %151 : vector<8x1xf32> to vector<8x8xf32>
    %153 = arith.mulf %148, %152 : vector<8x8xf32>
    %154 = arith.truncf %153 : vector<8x8xf32> to vector<8x8xbf16>
    %155 = arith.truncf %136 : vector<8x128xf32> to vector<8x128xbf16>
    %cst_67 = arith.constant dense<0.000000e+00> : vector<8x128xf32>
    %156 = tpu.matmul %154, %155, %cst_67 {dimension_numbers = #tpu.dot_dimension_numbers<[1], [0], [0], [1], [0, 0, 1, 1], [], []>} : vector<8x8xbf16>, vector<8x128xbf16>, vector<8x128xf32> -> vector<8x128xf32>
    %157 = tpu.concatenate %87, %110, %133, %156 in 1 : vector<8x128xf32>, vector<8x128xf32>, vector<8x128xf32>, vector<8x128xf32> -> vector<8x512xf32>
    %c0_68 = arith.constant 0 : index
    %c0_69 = arith.constant 0 : index
    %c0_70 = arith.constant 0 : index
    %158 = vector.load %arg7[%c0_68, %c0_69, %c0_70] : memref<2x512x128xbf16, #tpu.memory_space<vmem>>, vector<1x512x128xbf16>
    %159 = vector.shape_cast %158 : vector<1x512x128xbf16> to vector<512x128xbf16>
    %160 = arith.truncf %157 : vector<8x512xf32> to vector<8x512xbf16>
    %cst_71 = arith.constant dense<0.000000e+00> : vector<8x128xf32>
    %161 = tpu.matmul %160, %159, %cst_71 {dimension_numbers = #tpu.dot_dimension_numbers<[1], [0], [0], [1], [0, 0, 1, 1], [], []>} : vector<8x512xbf16>, vector<512x128xbf16>, vector<8x128xf32> -> vector<8x128xf32>
    %c0_72 = arith.constant 0 : index
    %c0_73 = arith.constant 0 : index
    %c0_74 = arith.constant 0 : index
    %162 = vector.load %arg8[%c0_72, %c0_73, %c0_74] : memref<2x1x128xf32, #tpu.memory_space<vmem>>, vector<1x1x128xf32>
    %163 = vector.shape_cast %162 : vector<1x1x128xf32> to vector<1x128xf32>
    %164 = vector.broadcast %163 : vector<1x128xf32> to vector<8x128xf32>
    %165 = arith.addf %161, %164 : vector<8x128xf32>
    %166 = arith.addf %56, %165 : vector<8x128xf32>
    %c0_75 = arith.constant 0 : index
    %c0_76 = arith.constant 0 : index
    %c0_77 = arith.constant 0 : index
    %167 = vector.load %arg17[%c0_75, %c0_76, %c0_77] : memref<2x1x128xf32, #tpu.memory_space<vmem>>, vector<1x1x128xf32>
    %168 = vector.shape_cast %167 : vector<1x1x128xf32> to vector<1x128xf32>
    %c0_78 = arith.constant 0 : index
    %c0_79 = arith.constant 0 : index
    %c0_80 = arith.constant 0 : index
    %169 = vector.load %arg18[%c0_78, %c0_79, %c0_80] : memref<2x1x128xf32, #tpu.memory_space<vmem>>, vector<1x1x128xf32>
    %170 = vector.shape_cast %169 : vector<1x1x128xf32> to vector<1x128xf32>
    %cst_81 = arith.constant dense<0.000000e+00> : vector<8xf32>
    %171 = vector.multi_reduction <add>, %166, %cst_81 [1] : vector<8x128xf32> to vector<8xf32>
    %172 = vector.shape_cast %171 : vector<8xf32> to vector<8x1xf32>
    %cst_82 = arith.constant 3.125000e-02 : f32
    %173 = vector.broadcast %cst_82 : f32 to vector<8x1xf32>
    %174 = arith.mulf %172, %173 : vector<8x1xf32>
    %175 = vector.broadcast %174 : vector<8x1xf32> to vector<8x128xf32>
    %176 = arith.subf %166, %175 : vector<8x128xf32>
    %177 = vector.broadcast %4 : vector<1x128xf32> to vector<8x128xf32>
    %178 = arith.mulf %176, %177 : vector<8x128xf32>
    %179 = arith.mulf %178, %178 : vector<8x128xf32>
    %cst_83 = arith.constant dense<0.000000e+00> : vector<8xf32>
    %180 = vector.multi_reduction <add>, %179, %cst_83 [1] : vector<8x128xf32> to vector<8xf32>
    %181 = vector.shape_cast %180 : vector<8xf32> to vector<8x1xf32>
    %cst_84 = arith.constant 3.125000e-02 : f32
    %182 = vector.broadcast %cst_84 : f32 to vector<8x1xf32>
    %183 = arith.mulf %181, %182 : vector<8x1xf32>
    %cst_85 = arith.constant 9.99999974E-6 : f32
    %184 = vector.broadcast %cst_85 : f32 to vector<8x1xf32>
    %185 = arith.addf %183, %184 : vector<8x1xf32>
    %186 = math.rsqrt %185 : vector<8x1xf32>
    %187 = vector.broadcast %186 : vector<8x1xf32> to vector<8x128xf32>
    %188 = arith.mulf %178, %187 : vector<8x128xf32>
    %189 = vector.broadcast %168 : vector<1x128xf32> to vector<8x128xf32>
    %190 = arith.mulf %188, %189 : vector<8x128xf32>
    %191 = vector.broadcast %170 : vector<1x128xf32> to vector<8x128xf32>
    %192 = arith.addf %190, %191 : vector<8x128xf32>
    %193 = vector.broadcast %37 : vector<1x128xf32> to vector<8x128xf32>
    %194 = arith.addf %192, %193 : vector<8x128xf32>
    %c0_86 = arith.constant 0 : index
    %c0_87 = arith.constant 0 : index
    %c0_88 = arith.constant 0 : index
    %195 = vector.load %arg19[%c0_86, %c0_87, %c0_88] : memref<2x1x128xf32, #tpu.memory_space<vmem>>, vector<1x1x128xf32>
    %196 = vector.shape_cast %195 : vector<1x1x128xf32> to vector<1x128xf32>
    %c0_89 = arith.constant 0 : index
    %c0_90 = arith.constant 0 : index
    %c0_91 = arith.constant 0 : index
    %197 = vector.load %arg20[%c0_89, %c0_90, %c0_91] : memref<2x1x128xf32, #tpu.memory_space<vmem>>, vector<1x1x128xf32>
    %198 = vector.shape_cast %197 : vector<1x1x128xf32> to vector<1x128xf32>
    %cst_92 = arith.constant dense<0.000000e+00> : vector<8xf32>
    %199 = vector.multi_reduction <add>, %194, %cst_92 [1] : vector<8x128xf32> to vector<8xf32>
    %200 = vector.shape_cast %199 : vector<8xf32> to vector<8x1xf32>
    %cst_93 = arith.constant 3.125000e-02 : f32
    %201 = vector.broadcast %cst_93 : f32 to vector<8x1xf32>
    %202 = arith.mulf %200, %201 : vector<8x1xf32>
    %203 = vector.broadcast %202 : vector<8x1xf32> to vector<8x128xf32>
    %204 = arith.subf %194, %203 : vector<8x128xf32>
    %205 = vector.broadcast %4 : vector<1x128xf32> to vector<8x128xf32>
    %206 = arith.mulf %204, %205 : vector<8x128xf32>
    %207 = arith.mulf %206, %206 : vector<8x128xf32>
    %cst_94 = arith.constant dense<0.000000e+00> : vector<8xf32>
    %208 = vector.multi_reduction <add>, %207, %cst_94 [1] : vector<8x128xf32> to vector<8xf32>
    %209 = vector.shape_cast %208 : vector<8xf32> to vector<8x1xf32>
    %cst_95 = arith.constant 3.125000e-02 : f32
    %210 = vector.broadcast %cst_95 : f32 to vector<8x1xf32>
    %211 = arith.mulf %209, %210 : vector<8x1xf32>
    %cst_96 = arith.constant 9.99999974E-6 : f32
    %212 = vector.broadcast %cst_96 : f32 to vector<8x1xf32>
    %213 = arith.addf %211, %212 : vector<8x1xf32>
    %214 = math.rsqrt %213 : vector<8x1xf32>
    %215 = vector.broadcast %214 : vector<8x1xf32> to vector<8x128xf32>
    %216 = arith.mulf %206, %215 : vector<8x128xf32>
    %217 = vector.broadcast %196 : vector<1x128xf32> to vector<8x128xf32>
    %218 = arith.mulf %216, %217 : vector<8x128xf32>
    %219 = vector.broadcast %198 : vector<1x128xf32> to vector<8x128xf32>
    %220 = arith.addf %218, %219 : vector<8x128xf32>
    %c0_97 = arith.constant 0 : index
    %c0_98 = arith.constant 0 : index
    %c0_99 = arith.constant 0 : index
    %221 = vector.load %arg13[%c0_97, %c0_98, %c0_99] : memref<2x128x128xbf16, #tpu.memory_space<vmem>>, vector<1x128x128xbf16>
    %222 = vector.shape_cast %221 : vector<1x128x128xbf16> to vector<128x128xbf16>
    %223 = arith.truncf %220 : vector<8x128xf32> to vector<8x128xbf16>
    %cst_100 = arith.constant dense<0.000000e+00> : vector<8x128xf32>
    %224 = tpu.matmul %223, %222, %cst_100 {dimension_numbers = #tpu.dot_dimension_numbers<[1], [0], [0], [1], [0, 0, 1, 1], [], []>} : vector<8x128xbf16>, vector<128x128xbf16>, vector<8x128xf32> -> vector<8x128xf32>
    %c0_101 = arith.constant 0 : index
    %c0_102 = arith.constant 0 : index
    %c0_103 = arith.constant 0 : index
    %225 = vector.load %arg14[%c0_101, %c0_102, %c0_103] : memref<2x1x128xf32, #tpu.memory_space<vmem>>, vector<1x1x128xf32>
    %226 = vector.shape_cast %225 : vector<1x1x128xf32> to vector<1x128xf32>
    %227 = vector.broadcast %226 : vector<1x128xf32> to vector<8x128xf32>
    %228 = arith.addf %224, %227 : vector<8x128xf32>
    %cst_104 = arith.constant 5.000000e-01 : f32
    %229 = vector.broadcast %cst_104 : f32 to vector<8x128xf32>
    %230 = arith.mulf %229, %228 : vector<8x128xf32>
    %cst_105 = arith.constant 4.471500e-02 : f32
    %231 = vector.broadcast %cst_105 : f32 to vector<8x128xf32>
    %232 = arith.mulf %231, %228 : vector<8x128xf32>
    %233 = arith.mulf %232, %228 : vector<8x128xf32>
    %234 = arith.mulf %233, %228 : vector<8x128xf32>
    %235 = arith.addf %228, %234 : vector<8x128xf32>
    %cst_106 = arith.constant 0.797884583 : f32
    %236 = vector.broadcast %cst_106 : f32 to vector<8x128xf32>
    %237 = arith.mulf %236, %235 : vector<8x128xf32>
    %238 = math.tanh %237 : vector<8x128xf32>
    %cst_107 = arith.constant 1.000000e+00 : f32
    %239 = vector.broadcast %cst_107 : f32 to vector<8x128xf32>
    %240 = arith.addf %239, %238 : vector<8x128xf32>
    %241 = arith.mulf %230, %240 : vector<8x128xf32>
    %c0_108 = arith.constant 0 : index
    %c0_109 = arith.constant 0 : index
    %c0_110 = arith.constant 0 : index
    %242 = vector.load %arg15[%c0_108, %c0_109, %c0_110] : memref<2x128x128xbf16, #tpu.memory_space<vmem>>, vector<1x128x128xbf16>
    %243 = vector.shape_cast %242 : vector<1x128x128xbf16> to vector<128x128xbf16>
    %244 = arith.truncf %241 : vector<8x128xf32> to vector<8x128xbf16>
    %cst_111 = arith.constant dense<0.000000e+00> : vector<8x128xf32>
    %245 = tpu.matmul %244, %243, %cst_111 {dimension_numbers = #tpu.dot_dimension_numbers<[1], [0], [0], [1], [0, 0, 1, 1], [], []>} : vector<8x128xbf16>, vector<128x128xbf16>, vector<8x128xf32> -> vector<8x128xf32>
    %c0_112 = arith.constant 0 : index
    %c0_113 = arith.constant 0 : index
    %c0_114 = arith.constant 0 : index
    %246 = vector.load %arg16[%c0_112, %c0_113, %c0_114] : memref<2x1x128xf32, #tpu.memory_space<vmem>>, vector<1x1x128xf32>
    %247 = vector.shape_cast %246 : vector<1x1x128xf32> to vector<1x128xf32>
    %248 = vector.broadcast %247 : vector<1x128xf32> to vector<8x128xf32>
    %249 = arith.addf %245, %248 : vector<8x128xf32>
    %250 = arith.addf %220, %249 : vector<8x128xf32>
    %c0_115 = arith.constant 0 : index
    %c0_116 = arith.constant 0 : index
    %c0_117 = arith.constant 0 : index
    %251 = vector.load %arg21[%c0_115, %c0_116, %c0_117] : memref<2x1x128xf32, #tpu.memory_space<vmem>>, vector<1x1x128xf32>
    %252 = vector.shape_cast %251 : vector<1x1x128xf32> to vector<1x128xf32>
    %c0_118 = arith.constant 0 : index
    %c0_119 = arith.constant 0 : index
    %c0_120 = arith.constant 0 : index
    %253 = vector.load %arg22[%c0_118, %c0_119, %c0_120] : memref<2x1x128xf32, #tpu.memory_space<vmem>>, vector<1x1x128xf32>
    %254 = vector.shape_cast %253 : vector<1x1x128xf32> to vector<1x128xf32>
    %cst_121 = arith.constant dense<0.000000e+00> : vector<8xf32>
    %255 = vector.multi_reduction <add>, %250, %cst_121 [1] : vector<8x128xf32> to vector<8xf32>
    %256 = vector.shape_cast %255 : vector<8xf32> to vector<8x1xf32>
    %cst_122 = arith.constant 3.125000e-02 : f32
    %257 = vector.broadcast %cst_122 : f32 to vector<8x1xf32>
    %258 = arith.mulf %256, %257 : vector<8x1xf32>
    %259 = vector.broadcast %258 : vector<8x1xf32> to vector<8x128xf32>
    %260 = arith.subf %250, %259 : vector<8x128xf32>
    %261 = vector.broadcast %4 : vector<1x128xf32> to vector<8x128xf32>
    %262 = arith.mulf %260, %261 : vector<8x128xf32>
    %263 = arith.mulf %262, %262 : vector<8x128xf32>
    %cst_123 = arith.constant dense<0.000000e+00> : vector<8xf32>
    %264 = vector.multi_reduction <add>, %263, %cst_123 [1] : vector<8x128xf32> to vector<8xf32>
    %265 = vector.shape_cast %264 : vector<8xf32> to vector<8x1xf32>
    %cst_124 = arith.constant 3.125000e-02 : f32
    %266 = vector.broadcast %cst_124 : f32 to vector<8x1xf32>
    %267 = arith.mulf %265, %266 : vector<8x1xf32>
    %cst_125 = arith.constant 9.99999974E-6 : f32
    %268 = vector.broadcast %cst_125 : f32 to vector<8x1xf32>
    %269 = arith.addf %267, %268 : vector<8x1xf32>
    %270 = math.rsqrt %269 : vector<8x1xf32>
    %271 = vector.broadcast %270 : vector<8x1xf32> to vector<8x128xf32>
    %272 = arith.mulf %262, %271 : vector<8x128xf32>
    %273 = vector.broadcast %252 : vector<1x128xf32> to vector<8x128xf32>
    %274 = arith.mulf %272, %273 : vector<8x128xf32>
    %275 = vector.broadcast %254 : vector<1x128xf32> to vector<8x128xf32>
    %276 = arith.addf %274, %275 : vector<8x128xf32>
    %c1_126 = arith.constant 1 : index
    %c0_127 = arith.constant 0 : index
    %c0_128 = arith.constant 0 : index
    %277 = vector.load %arg5[%c1_126, %c0_127, %c0_128] : memref<2x128x1536xbf16, #tpu.memory_space<vmem>>, vector<1x128x1536xbf16>
    %278 = vector.shape_cast %277 : vector<1x128x1536xbf16> to vector<128x1536xbf16>
    %279 = arith.truncf %276 : vector<8x128xf32> to vector<8x128xbf16>
    %cst_129 = arith.constant dense<0.000000e+00> : vector<8x1536xf32>
    %280 = tpu.matmul %279, %278, %cst_129 {dimension_numbers = #tpu.dot_dimension_numbers<[1], [0], [0], [1], [0, 0, 1, 1], [], []>} : vector<8x128xbf16>, vector<128x1536xbf16>, vector<8x1536xf32> -> vector<8x1536xf32>
    %c1_130 = arith.constant 1 : index
    %c0_131 = arith.constant 0 : index
    %c0_132 = arith.constant 0 : index
    %281 = vector.load %arg6[%c1_130, %c0_131, %c0_132] : memref<2x1x1536xf32, #tpu.memory_space<vmem>>, vector<1x1x1536xf32>
    %282 = vector.shape_cast %281 : vector<1x1x1536xf32> to vector<1x1536xf32>
    %283 = vector.broadcast %282 : vector<1x1536xf32> to vector<8x1536xf32>
    %284 = arith.addf %280, %283 : vector<8x1536xf32>
    %285 = vector.extract_strided_slice %284 {offsets = [0, 0], sizes = [8, 128], strides = [1, 1]} : vector<8x1536xf32> to vector<8x128xf32>
    %286 = vector.extract_strided_slice %284 {offsets = [0, 512], sizes = [8, 128], strides = [1, 1]} : vector<8x1536xf32> to vector<8x128xf32>
    %287 = vector.extract_strided_slice %284 {offsets = [0, 1024], sizes = [8, 128], strides = [1, 1]} : vector<8x1536xf32> to vector<8x128xf32>
    %288 = arith.truncf %285 : vector<8x128xf32> to vector<8x128xbf16>
    %289 = arith.truncf %286 : vector<8x128xf32> to vector<8x128xbf16>
    %cst_133 = arith.constant dense<0.000000e+00> : vector<8x8xf32>
    %290 = tpu.matmul %288, %289, %cst_133 {dimension_numbers = #tpu.dot_dimension_numbers<[1], [1], [0], [0], [0, 0, 1, 0], [], []>} : vector<8x128xbf16>, vector<8x128xbf16>, vector<8x8xf32> -> vector<8x8xf32>
    %cst_134 = arith.constant 0.353553385 : f32
    %291 = vector.broadcast %cst_134 : f32 to vector<8x8xf32>
    %292 = arith.mulf %290, %291 : vector<8x8xf32>
    %293 = vector.broadcast %53 : vector<1x8xf32> to vector<8x8xf32>
    %294 = arith.addf %292, %293 : vector<8x8xf32>
    %cst_135 = arith.constant dense<0xFF800000> : vector<8xf32>
    %295 = vector.multi_reduction <maximumf>, %294, %cst_135 [1] : vector<8x8xf32> to vector<8xf32>
    %296 = vector.shape_cast %295 : vector<8xf32> to vector<8x1xf32>
    %297 = vector.broadcast %296 : vector<8x1xf32> to vector<8x8xf32>
    %298 = arith.subf %294, %297 : vector<8x8xf32>
    %299 = math.exp %298 : vector<8x8xf32>
    %cst_136 = arith.constant dense<0.000000e+00> : vector<8xf32>
    %300 = vector.multi_reduction <add>, %299, %cst_136 [1] : vector<8x8xf32> to vector<8xf32>
    %301 = vector.shape_cast %300 : vector<8xf32> to vector<8x1xf32>
    %302 = tpu.reciprocal %301 {approx = true} : vector<8x1xf32> -> vector<8x1xf32>
    %303 = vector.broadcast %302 : vector<8x1xf32> to vector<8x8xf32>
    %304 = arith.mulf %299, %303 : vector<8x8xf32>
    %305 = arith.truncf %304 : vector<8x8xf32> to vector<8x8xbf16>
    %306 = arith.truncf %287 : vector<8x128xf32> to vector<8x128xbf16>
    %cst_137 = arith.constant dense<0.000000e+00> : vector<8x128xf32>
    %307 = tpu.matmul %305, %306, %cst_137 {dimension_numbers = #tpu.dot_dimension_numbers<[1], [0], [0], [1], [0, 0, 1, 1], [], []>} : vector<8x8xbf16>, vector<8x128xbf16>, vector<8x128xf32> -> vector<8x128xf32>
    %308 = vector.extract_strided_slice %284 {offsets = [0, 128], sizes = [8, 128], strides = [1, 1]} : vector<8x1536xf32> to vector<8x128xf32>
    %309 = vector.extract_strided_slice %284 {offsets = [0, 640], sizes = [8, 128], strides = [1, 1]} : vector<8x1536xf32> to vector<8x128xf32>
    %310 = vector.extract_strided_slice %284 {offsets = [0, 1152], sizes = [8, 128], strides = [1, 1]} : vector<8x1536xf32> to vector<8x128xf32>
    %311 = arith.truncf %308 : vector<8x128xf32> to vector<8x128xbf16>
    %312 = arith.truncf %309 : vector<8x128xf32> to vector<8x128xbf16>
    %cst_138 = arith.constant dense<0.000000e+00> : vector<8x8xf32>
    %313 = tpu.matmul %311, %312, %cst_138 {dimension_numbers = #tpu.dot_dimension_numbers<[1], [1], [0], [0], [0, 0, 1, 0], [], []>} : vector<8x128xbf16>, vector<8x128xbf16>, vector<8x8xf32> -> vector<8x8xf32>
    %cst_139 = arith.constant 0.353553385 : f32
    %314 = vector.broadcast %cst_139 : f32 to vector<8x8xf32>
    %315 = arith.mulf %313, %314 : vector<8x8xf32>
    %316 = vector.broadcast %53 : vector<1x8xf32> to vector<8x8xf32>
    %317 = arith.addf %315, %316 : vector<8x8xf32>
    %cst_140 = arith.constant dense<0xFF800000> : vector<8xf32>
    %318 = vector.multi_reduction <maximumf>, %317, %cst_140 [1] : vector<8x8xf32> to vector<8xf32>
    %319 = vector.shape_cast %318 : vector<8xf32> to vector<8x1xf32>
    %320 = vector.broadcast %319 : vector<8x1xf32> to vector<8x8xf32>
    %321 = arith.subf %317, %320 : vector<8x8xf32>
    %322 = math.exp %321 : vector<8x8xf32>
    %cst_141 = arith.constant dense<0.000000e+00> : vector<8xf32>
    %323 = vector.multi_reduction <add>, %322, %cst_141 [1] : vector<8x8xf32> to vector<8xf32>
    %324 = vector.shape_cast %323 : vector<8xf32> to vector<8x1xf32>
    %325 = tpu.reciprocal %324 {approx = true} : vector<8x1xf32> -> vector<8x1xf32>
    %326 = vector.broadcast %325 : vector<8x1xf32> to vector<8x8xf32>
    %327 = arith.mulf %322, %326 : vector<8x8xf32>
    %328 = arith.truncf %327 : vector<8x8xf32> to vector<8x8xbf16>
    %329 = arith.truncf %310 : vector<8x128xf32> to vector<8x128xbf16>
    %cst_142 = arith.constant dense<0.000000e+00> : vector<8x128xf32>
    %330 = tpu.matmul %328, %329, %cst_142 {dimension_numbers = #tpu.dot_dimension_numbers<[1], [0], [0], [1], [0, 0, 1, 1], [], []>} : vector<8x8xbf16>, vector<8x128xbf16>, vector<8x128xf32> -> vector<8x128xf32>
    %331 = vector.extract_strided_slice %284 {offsets = [0, 256], sizes = [8, 128], strides = [1, 1]} : vector<8x1536xf32> to vector<8x128xf32>
    %332 = vector.extract_strided_slice %284 {offsets = [0, 768], sizes = [8, 128], strides = [1, 1]} : vector<8x1536xf32> to vector<8x128xf32>
    %333 = vector.extract_strided_slice %284 {offsets = [0, 1280], sizes = [8, 128], strides = [1, 1]} : vector<8x1536xf32> to vector<8x128xf32>
    %334 = arith.truncf %331 : vector<8x128xf32> to vector<8x128xbf16>
    %335 = arith.truncf %332 : vector<8x128xf32> to vector<8x128xbf16>
    %cst_143 = arith.constant dense<0.000000e+00> : vector<8x8xf32>
    %336 = tpu.matmul %334, %335, %cst_143 {dimension_numbers = #tpu.dot_dimension_numbers<[1], [1], [0], [0], [0, 0, 1, 0], [], []>} : vector<8x128xbf16>, vector<8x128xbf16>, vector<8x8xf32> -> vector<8x8xf32>
    %cst_144 = arith.constant 0.353553385 : f32
    %337 = vector.broadcast %cst_144 : f32 to vector<8x8xf32>
    %338 = arith.mulf %336, %337 : vector<8x8xf32>
    %339 = vector.broadcast %53 : vector<1x8xf32> to vector<8x8xf32>
    %340 = arith.addf %338, %339 : vector<8x8xf32>
    %cst_145 = arith.constant dense<0xFF800000> : vector<8xf32>
    %341 = vector.multi_reduction <maximumf>, %340, %cst_145 [1] : vector<8x8xf32> to vector<8xf32>
    %342 = vector.shape_cast %341 : vector<8xf32> to vector<8x1xf32>
    %343 = vector.broadcast %342 : vector<8x1xf32> to vector<8x8xf32>
    %344 = arith.subf %340, %343 : vector<8x8xf32>
    %345 = math.exp %344 : vector<8x8xf32>
    %cst_146 = arith.constant dense<0.000000e+00> : vector<8xf32>
    %346 = vector.multi_reduction <add>, %345, %cst_146 [1] : vector<8x8xf32> to vector<8xf32>
    %347 = vector.shape_cast %346 : vector<8xf32> to vector<8x1xf32>
    %348 = tpu.reciprocal %347 {approx = true} : vector<8x1xf32> -> vector<8x1xf32>
    %349 = vector.broadcast %348 : vector<8x1xf32> to vector<8x8xf32>
    %350 = arith.mulf %345, %349 : vector<8x8xf32>
    %351 = arith.truncf %350 : vector<8x8xf32> to vector<8x8xbf16>
    %352 = arith.truncf %333 : vector<8x128xf32> to vector<8x128xbf16>
    %cst_147 = arith.constant dense<0.000000e+00> : vector<8x128xf32>
    %353 = tpu.matmul %351, %352, %cst_147 {dimension_numbers = #tpu.dot_dimension_numbers<[1], [0], [0], [1], [0, 0, 1, 1], [], []>} : vector<8x8xbf16>, vector<8x128xbf16>, vector<8x128xf32> -> vector<8x128xf32>
    %354 = vector.extract_strided_slice %284 {offsets = [0, 384], sizes = [8, 128], strides = [1, 1]} : vector<8x1536xf32> to vector<8x128xf32>
    %355 = vector.extract_strided_slice %284 {offsets = [0, 896], sizes = [8, 128], strides = [1, 1]} : vector<8x1536xf32> to vector<8x128xf32>
    %356 = vector.extract_strided_slice %284 {offsets = [0, 1408], sizes = [8, 128], strides = [1, 1]} : vector<8x1536xf32> to vector<8x128xf32>
    %357 = arith.truncf %354 : vector<8x128xf32> to vector<8x128xbf16>
    %358 = arith.truncf %355 : vector<8x128xf32> to vector<8x128xbf16>
    %cst_148 = arith.constant dense<0.000000e+00> : vector<8x8xf32>
    %359 = tpu.matmul %357, %358, %cst_148 {dimension_numbers = #tpu.dot_dimension_numbers<[1], [1], [0], [0], [0, 0, 1, 0], [], []>} : vector<8x128xbf16>, vector<8x128xbf16>, vector<8x8xf32> -> vector<8x8xf32>
    %cst_149 = arith.constant 0.353553385 : f32
    %360 = vector.broadcast %cst_149 : f32 to vector<8x8xf32>
    %361 = arith.mulf %359, %360 : vector<8x8xf32>
    %362 = vector.broadcast %53 : vector<1x8xf32> to vector<8x8xf32>
    %363 = arith.addf %361, %362 : vector<8x8xf32>
    %cst_150 = arith.constant dense<0xFF800000> : vector<8xf32>
    %364 = vector.multi_reduction <maximumf>, %363, %cst_150 [1] : vector<8x8xf32> to vector<8xf32>
    %365 = vector.shape_cast %364 : vector<8xf32> to vector<8x1xf32>
    %366 = vector.broadcast %365 : vector<8x1xf32> to vector<8x8xf32>
    %367 = arith.subf %363, %366 : vector<8x8xf32>
    %368 = math.exp %367 : vector<8x8xf32>
    %cst_151 = arith.constant dense<0.000000e+00> : vector<8xf32>
    %369 = vector.multi_reduction <add>, %368, %cst_151 [1] : vector<8x8xf32> to vector<8xf32>
    %370 = vector.shape_cast %369 : vector<8xf32> to vector<8x1xf32>
    %371 = tpu.reciprocal %370 {approx = true} : vector<8x1xf32> -> vector<8x1xf32>
    %372 = vector.broadcast %371 : vector<8x1xf32> to vector<8x8xf32>
    %373 = arith.mulf %368, %372 : vector<8x8xf32>
    %374 = arith.truncf %373 : vector<8x8xf32> to vector<8x8xbf16>
    %375 = arith.truncf %356 : vector<8x128xf32> to vector<8x128xbf16>
    %cst_152 = arith.constant dense<0.000000e+00> : vector<8x128xf32>
    %376 = tpu.matmul %374, %375, %cst_152 {dimension_numbers = #tpu.dot_dimension_numbers<[1], [0], [0], [1], [0, 0, 1, 1], [], []>} : vector<8x8xbf16>, vector<8x128xbf16>, vector<8x128xf32> -> vector<8x128xf32>
    %377 = tpu.concatenate %307, %330, %353, %376 in 1 : vector<8x128xf32>, vector<8x128xf32>, vector<8x128xf32>, vector<8x128xf32> -> vector<8x512xf32>
    %c1_153 = arith.constant 1 : index
    %c0_154 = arith.constant 0 : index
    %c0_155 = arith.constant 0 : index
    %378 = vector.load %arg7[%c1_153, %c0_154, %c0_155] : memref<2x512x128xbf16, #tpu.memory_space<vmem>>, vector<1x512x128xbf16>
    %379 = vector.shape_cast %378 : vector<1x512x128xbf16> to vector<512x128xbf16>
    %380 = arith.truncf %377 : vector<8x512xf32> to vector<8x512xbf16>
    %cst_156 = arith.constant dense<0.000000e+00> : vector<8x128xf32>
    %381 = tpu.matmul %380, %379, %cst_156 {dimension_numbers = #tpu.dot_dimension_numbers<[1], [0], [0], [1], [0, 0, 1, 1], [], []>} : vector<8x512xbf16>, vector<512x128xbf16>, vector<8x128xf32> -> vector<8x128xf32>
    %c1_157 = arith.constant 1 : index
    %c0_158 = arith.constant 0 : index
    %c0_159 = arith.constant 0 : index
    %382 = vector.load %arg8[%c1_157, %c0_158, %c0_159] : memref<2x1x128xf32, #tpu.memory_space<vmem>>, vector<1x1x128xf32>
    %383 = vector.shape_cast %382 : vector<1x1x128xf32> to vector<1x128xf32>
    %384 = vector.broadcast %383 : vector<1x128xf32> to vector<8x128xf32>
    %385 = arith.addf %381, %384 : vector<8x128xf32>
    %386 = arith.addf %276, %385 : vector<8x128xf32>
    %c1_160 = arith.constant 1 : index
    %c0_161 = arith.constant 0 : index
    %c0_162 = arith.constant 0 : index
    %387 = vector.load %arg17[%c1_160, %c0_161, %c0_162] : memref<2x1x128xf32, #tpu.memory_space<vmem>>, vector<1x1x128xf32>
    %388 = vector.shape_cast %387 : vector<1x1x128xf32> to vector<1x128xf32>
    %c1_163 = arith.constant 1 : index
    %c0_164 = arith.constant 0 : index
    %c0_165 = arith.constant 0 : index
    %389 = vector.load %arg18[%c1_163, %c0_164, %c0_165] : memref<2x1x128xf32, #tpu.memory_space<vmem>>, vector<1x1x128xf32>
    %390 = vector.shape_cast %389 : vector<1x1x128xf32> to vector<1x128xf32>
    %cst_166 = arith.constant dense<0.000000e+00> : vector<8xf32>
    %391 = vector.multi_reduction <add>, %386, %cst_166 [1] : vector<8x128xf32> to vector<8xf32>
    %392 = vector.shape_cast %391 : vector<8xf32> to vector<8x1xf32>
    %cst_167 = arith.constant 3.125000e-02 : f32
    %393 = vector.broadcast %cst_167 : f32 to vector<8x1xf32>
    %394 = arith.mulf %392, %393 : vector<8x1xf32>
    %395 = vector.broadcast %394 : vector<8x1xf32> to vector<8x128xf32>
    %396 = arith.subf %386, %395 : vector<8x128xf32>
    %397 = vector.broadcast %4 : vector<1x128xf32> to vector<8x128xf32>
    %398 = arith.mulf %396, %397 : vector<8x128xf32>
    %399 = arith.mulf %398, %398 : vector<8x128xf32>
    %cst_168 = arith.constant dense<0.000000e+00> : vector<8xf32>
    %400 = vector.multi_reduction <add>, %399, %cst_168 [1] : vector<8x128xf32> to vector<8xf32>
    %401 = vector.shape_cast %400 : vector<8xf32> to vector<8x1xf32>
    %cst_169 = arith.constant 3.125000e-02 : f32
    %402 = vector.broadcast %cst_169 : f32 to vector<8x1xf32>
    %403 = arith.mulf %401, %402 : vector<8x1xf32>
    %cst_170 = arith.constant 9.99999974E-6 : f32
    %404 = vector.broadcast %cst_170 : f32 to vector<8x1xf32>
    %405 = arith.addf %403, %404 : vector<8x1xf32>
    %406 = math.rsqrt %405 : vector<8x1xf32>
    %407 = vector.broadcast %406 : vector<8x1xf32> to vector<8x128xf32>
    %408 = arith.mulf %398, %407 : vector<8x128xf32>
    %409 = vector.broadcast %388 : vector<1x128xf32> to vector<8x128xf32>
    %410 = arith.mulf %408, %409 : vector<8x128xf32>
    %411 = vector.broadcast %390 : vector<1x128xf32> to vector<8x128xf32>
    %412 = arith.addf %410, %411 : vector<8x128xf32>
    %413 = vector.broadcast %51 : vector<1x128xf32> to vector<8x128xf32>
    %414 = arith.addf %412, %413 : vector<8x128xf32>
    %c1_171 = arith.constant 1 : index
    %c0_172 = arith.constant 0 : index
    %c0_173 = arith.constant 0 : index
    %415 = vector.load %arg19[%c1_171, %c0_172, %c0_173] : memref<2x1x128xf32, #tpu.memory_space<vmem>>, vector<1x1x128xf32>
    %416 = vector.shape_cast %415 : vector<1x1x128xf32> to vector<1x128xf32>
    %c1_174 = arith.constant 1 : index
    %c0_175 = arith.constant 0 : index
    %c0_176 = arith.constant 0 : index
    %417 = vector.load %arg20[%c1_174, %c0_175, %c0_176] : memref<2x1x128xf32, #tpu.memory_space<vmem>>, vector<1x1x128xf32>
    %418 = vector.shape_cast %417 : vector<1x1x128xf32> to vector<1x128xf32>
    %cst_177 = arith.constant dense<0.000000e+00> : vector<8xf32>
    %419 = vector.multi_reduction <add>, %414, %cst_177 [1] : vector<8x128xf32> to vector<8xf32>
    %420 = vector.shape_cast %419 : vector<8xf32> to vector<8x1xf32>
    %cst_178 = arith.constant 3.125000e-02 : f32
    %421 = vector.broadcast %cst_178 : f32 to vector<8x1xf32>
    %422 = arith.mulf %420, %421 : vector<8x1xf32>
    %423 = vector.broadcast %422 : vector<8x1xf32> to vector<8x128xf32>
    %424 = arith.subf %414, %423 : vector<8x128xf32>
    %425 = vector.broadcast %4 : vector<1x128xf32> to vector<8x128xf32>
    %426 = arith.mulf %424, %425 : vector<8x128xf32>
    %427 = arith.mulf %426, %426 : vector<8x128xf32>
    %cst_179 = arith.constant dense<0.000000e+00> : vector<8xf32>
    %428 = vector.multi_reduction <add>, %427, %cst_179 [1] : vector<8x128xf32> to vector<8xf32>
    %429 = vector.shape_cast %428 : vector<8xf32> to vector<8x1xf32>
    %cst_180 = arith.constant 3.125000e-02 : f32
    %430 = vector.broadcast %cst_180 : f32 to vector<8x1xf32>
    %431 = arith.mulf %429, %430 : vector<8x1xf32>
    %cst_181 = arith.constant 9.99999974E-6 : f32
    %432 = vector.broadcast %cst_181 : f32 to vector<8x1xf32>
    %433 = arith.addf %431, %432 : vector<8x1xf32>
    %434 = math.rsqrt %433 : vector<8x1xf32>
    %435 = vector.broadcast %434 : vector<8x1xf32> to vector<8x128xf32>
    %436 = arith.mulf %426, %435 : vector<8x128xf32>
    %437 = vector.broadcast %416 : vector<1x128xf32> to vector<8x128xf32>
    %438 = arith.mulf %436, %437 : vector<8x128xf32>
    %439 = vector.broadcast %418 : vector<1x128xf32> to vector<8x128xf32>
    %440 = arith.addf %438, %439 : vector<8x128xf32>
    %c1_182 = arith.constant 1 : index
    %c0_183 = arith.constant 0 : index
    %c0_184 = arith.constant 0 : index
    %441 = vector.load %arg13[%c1_182, %c0_183, %c0_184] : memref<2x128x128xbf16, #tpu.memory_space<vmem>>, vector<1x128x128xbf16>
    %442 = vector.shape_cast %441 : vector<1x128x128xbf16> to vector<128x128xbf16>
    %443 = arith.truncf %440 : vector<8x128xf32> to vector<8x128xbf16>
    %cst_185 = arith.constant dense<0.000000e+00> : vector<8x128xf32>
    %444 = tpu.matmul %443, %442, %cst_185 {dimension_numbers = #tpu.dot_dimension_numbers<[1], [0], [0], [1], [0, 0, 1, 1], [], []>} : vector<8x128xbf16>, vector<128x128xbf16>, vector<8x128xf32> -> vector<8x128xf32>
    %c1_186 = arith.constant 1 : index
    %c0_187 = arith.constant 0 : index
    %c0_188 = arith.constant 0 : index
    %445 = vector.load %arg14[%c1_186, %c0_187, %c0_188] : memref<2x1x128xf32, #tpu.memory_space<vmem>>, vector<1x1x128xf32>
    %446 = vector.shape_cast %445 : vector<1x1x128xf32> to vector<1x128xf32>
    %447 = vector.broadcast %446 : vector<1x128xf32> to vector<8x128xf32>
    %448 = arith.addf %444, %447 : vector<8x128xf32>
    %cst_189 = arith.constant 5.000000e-01 : f32
    %449 = vector.broadcast %cst_189 : f32 to vector<8x128xf32>
    %450 = arith.mulf %449, %448 : vector<8x128xf32>
    %cst_190 = arith.constant 4.471500e-02 : f32
    %451 = vector.broadcast %cst_190 : f32 to vector<8x128xf32>
    %452 = arith.mulf %451, %448 : vector<8x128xf32>
    %453 = arith.mulf %452, %448 : vector<8x128xf32>
    %454 = arith.mulf %453, %448 : vector<8x128xf32>
    %455 = arith.addf %448, %454 : vector<8x128xf32>
    %cst_191 = arith.constant 0.797884583 : f32
    %456 = vector.broadcast %cst_191 : f32 to vector<8x128xf32>
    %457 = arith.mulf %456, %455 : vector<8x128xf32>
    %458 = math.tanh %457 : vector<8x128xf32>
    %cst_192 = arith.constant 1.000000e+00 : f32
    %459 = vector.broadcast %cst_192 : f32 to vector<8x128xf32>
    %460 = arith.addf %459, %458 : vector<8x128xf32>
    %461 = arith.mulf %450, %460 : vector<8x128xf32>
    %c1_193 = arith.constant 1 : index
    %c0_194 = arith.constant 0 : index
    %c0_195 = arith.constant 0 : index
    %462 = vector.load %arg15[%c1_193, %c0_194, %c0_195] : memref<2x128x128xbf16, #tpu.memory_space<vmem>>, vector<1x128x128xbf16>
    %463 = vector.shape_cast %462 : vector<1x128x128xbf16> to vector<128x128xbf16>
    %464 = arith.truncf %461 : vector<8x128xf32> to vector<8x128xbf16>
    %cst_196 = arith.constant dense<0.000000e+00> : vector<8x128xf32>
    %465 = tpu.matmul %464, %463, %cst_196 {dimension_numbers = #tpu.dot_dimension_numbers<[1], [0], [0], [1], [0, 0, 1, 1], [], []>} : vector<8x128xbf16>, vector<128x128xbf16>, vector<8x128xf32> -> vector<8x128xf32>
    %c1_197 = arith.constant 1 : index
    %c0_198 = arith.constant 0 : index
    %c0_199 = arith.constant 0 : index
    %466 = vector.load %arg16[%c1_197, %c0_198, %c0_199] : memref<2x1x128xf32, #tpu.memory_space<vmem>>, vector<1x1x128xf32>
    %467 = vector.shape_cast %466 : vector<1x1x128xf32> to vector<1x128xf32>
    %468 = vector.broadcast %467 : vector<1x128xf32> to vector<8x128xf32>
    %469 = arith.addf %465, %468 : vector<8x128xf32>
    %470 = arith.addf %440, %469 : vector<8x128xf32>
    %c1_200 = arith.constant 1 : index
    %c0_201 = arith.constant 0 : index
    %c0_202 = arith.constant 0 : index
    %471 = vector.load %arg21[%c1_200, %c0_201, %c0_202] : memref<2x1x128xf32, #tpu.memory_space<vmem>>, vector<1x1x128xf32>
    %472 = vector.shape_cast %471 : vector<1x1x128xf32> to vector<1x128xf32>
    %c1_203 = arith.constant 1 : index
    %c0_204 = arith.constant 0 : index
    %c0_205 = arith.constant 0 : index
    %473 = vector.load %arg22[%c1_203, %c0_204, %c0_205] : memref<2x1x128xf32, #tpu.memory_space<vmem>>, vector<1x1x128xf32>
    %474 = vector.shape_cast %473 : vector<1x1x128xf32> to vector<1x128xf32>
    %cst_206 = arith.constant dense<0.000000e+00> : vector<8xf32>
    %475 = vector.multi_reduction <add>, %470, %cst_206 [1] : vector<8x128xf32> to vector<8xf32>
    %476 = vector.shape_cast %475 : vector<8xf32> to vector<8x1xf32>
    %cst_207 = arith.constant 3.125000e-02 : f32
    %477 = vector.broadcast %cst_207 : f32 to vector<8x1xf32>
    %478 = arith.mulf %476, %477 : vector<8x1xf32>
    %479 = vector.broadcast %478 : vector<8x1xf32> to vector<8x128xf32>
    %480 = arith.subf %470, %479 : vector<8x128xf32>
    %481 = vector.broadcast %4 : vector<1x128xf32> to vector<8x128xf32>
    %482 = arith.mulf %480, %481 : vector<8x128xf32>
    %483 = arith.mulf %482, %482 : vector<8x128xf32>
    %cst_208 = arith.constant dense<0.000000e+00> : vector<8xf32>
    %484 = vector.multi_reduction <add>, %483, %cst_208 [1] : vector<8x128xf32> to vector<8xf32>
    %485 = vector.shape_cast %484 : vector<8xf32> to vector<8x1xf32>
    %cst_209 = arith.constant 3.125000e-02 : f32
    %486 = vector.broadcast %cst_209 : f32 to vector<8x1xf32>
    %487 = arith.mulf %485, %486 : vector<8x1xf32>
    %cst_210 = arith.constant 9.99999974E-6 : f32
    %488 = vector.broadcast %cst_210 : f32 to vector<8x1xf32>
    %489 = arith.addf %487, %488 : vector<8x1xf32>
    %490 = math.rsqrt %489 : vector<8x1xf32>
    %491 = vector.broadcast %490 : vector<8x1xf32> to vector<8x128xf32>
    %492 = arith.mulf %482, %491 : vector<8x128xf32>
    %493 = vector.broadcast %472 : vector<1x128xf32> to vector<8x128xf32>
    %494 = arith.mulf %492, %493 : vector<8x128xf32>
    %495 = vector.broadcast %474 : vector<1x128xf32> to vector<8x128xf32>
    %496 = arith.addf %494, %495 : vector<8x128xf32>
    %c0_211 = arith.constant 0 : index
    %c0_212 = arith.constant 0 : index
    %497 = vector.load %arg23[%c0_211, %c0_212] : memref<1x128xf32, #tpu.memory_space<vmem>>, vector<1x128xf32>
    %c0_213 = arith.constant 0 : index
    %c0_214 = arith.constant 0 : index
    %498 = vector.load %arg24[%c0_213, %c0_214] : memref<1x128xf32, #tpu.memory_space<vmem>>, vector<1x128xf32>
    %cst_215 = arith.constant dense<0.000000e+00> : vector<8xf32>
    %499 = vector.multi_reduction <add>, %496, %cst_215 [1] : vector<8x128xf32> to vector<8xf32>
    %500 = vector.shape_cast %499 : vector<8xf32> to vector<8x1xf32>
    %cst_216 = arith.constant 3.125000e-02 : f32
    %501 = vector.broadcast %cst_216 : f32 to vector<8x1xf32>
    %502 = arith.mulf %500, %501 : vector<8x1xf32>
    %503 = vector.broadcast %502 : vector<8x1xf32> to vector<8x128xf32>
    %504 = arith.subf %496, %503 : vector<8x128xf32>
    %505 = vector.broadcast %4 : vector<1x128xf32> to vector<8x128xf32>
    %506 = arith.mulf %504, %505 : vector<8x128xf32>
    %507 = arith.mulf %506, %506 : vector<8x128xf32>
    %cst_217 = arith.constant dense<0.000000e+00> : vector<8xf32>
    %508 = vector.multi_reduction <add>, %507, %cst_217 [1] : vector<8x128xf32> to vector<8xf32>
    %509 = vector.shape_cast %508 : vector<8xf32> to vector<8x1xf32>
    %cst_218 = arith.constant 3.125000e-02 : f32
    %510 = vector.broadcast %cst_218 : f32 to vector<8x1xf32>
    %511 = arith.mulf %509, %510 : vector<8x1xf32>
    %cst_219 = arith.constant 9.99999974E-6 : f32
    %512 = vector.broadcast %cst_219 : f32 to vector<8x1xf32>
    %513 = arith.addf %511, %512 : vector<8x1xf32>
    %514 = math.rsqrt %513 : vector<8x1xf32>
    %515 = vector.broadcast %514 : vector<8x1xf32> to vector<8x128xf32>
    %516 = arith.mulf %506, %515 : vector<8x128xf32>
    %517 = vector.broadcast %497 : vector<1x128xf32> to vector<8x128xf32>
    %518 = arith.mulf %516, %517 : vector<8x128xf32>
    %519 = vector.broadcast %498 : vector<1x128xf32> to vector<8x128xf32>
    %520 = arith.addf %518, %519 : vector<8x128xf32>
    %c0_220 = arith.constant 0 : index
    %c0_221 = arith.constant 0 : index
    %521 = vector.load %arg25[%c0_220, %c0_221] : memref<128x128xbf16, #tpu.memory_space<vmem>>, vector<128x128xbf16>
    %522 = arith.truncf %520 : vector<8x128xf32> to vector<8x128xbf16>
    %cst_222 = arith.constant dense<0.000000e+00> : vector<8x128xf32>
    %523 = tpu.matmul %522, %521, %cst_222 {dimension_numbers = #tpu.dot_dimension_numbers<[1], [0], [0], [1], [0, 0, 1, 1], [], []>} : vector<8x128xbf16>, vector<128x128xbf16>, vector<8x128xf32> -> vector<8x128xf32>
    %c0_223 = arith.constant 0 : index
    %c0_224 = arith.constant 0 : index
    %524 = vector.load %arg26[%c0_223, %c0_224] : memref<1x128xf32, #tpu.memory_space<vmem>>, vector<1x128xf32>
    %525 = vector.broadcast %524 : vector<1x128xf32> to vector<8x128xf32>
    %526 = arith.addf %523, %525 : vector<8x128xf32>
    %527 = vector.broadcast %55 : vector<8x1xf32> to vector<8x128xf32>
    %528 = arith.mulf %526, %527 : vector<8x128xf32>
    %c0_225 = arith.constant 0 : index
    %c0_226 = arith.constant 0 : index
    %c0_227 = arith.constant 0 : index
    %529 = vector.load %arg27[%c0_225, %c0_226, %c0_227] : memref<1x8x128xf32, #tpu.memory_space<vmem>>, vector<1x8x128xf32>
    %530 = vector.shape_cast %529 : vector<1x8x128xf32> to vector<8x128xf32>
    %531 = vector.shape_cast %528 : vector<8x128xf32> to vector<1x8x128xf32>
    tpu.vector_store %arg27[%c0_225, %c0_226, %c0_227], %531 {strides = array<i32>} : memref<1x8x128xf32, #tpu.memory_space<vmem>>, vector<1x8x128xf32>,
    return
  }
  func.func @transform_0(%arg0: i32) -> (i32, i32, i32) {
    %c0_i32 = arith.constant 0 : i32
    %c0_i32_0 = arith.constant 0 : i32
    %c0_i32_1 = arith.constant 0 : i32
    return %arg0, %c0_i32, %c0_i32_0 : i32, i32, i32
  }
  func.func @transform_1(%arg0: i32) -> (i32, i32, i32) {
    %c0_i32 = arith.constant 0 : i32
    %c0_i32_0 = arith.constant 0 : i32
    %c0_i32_1 = arith.constant 0 : i32
    return %arg0, %c0_i32, %c0_i32_0 : i32, i32, i32
  }
  func.func @transform_2(%arg0: i32) -> (i32, i32, i32) {
    %c0_i32 = arith.constant 0 : i32
    %c0_i32_0 = arith.constant 0 : i32
    %c0_i32_1 = arith.constant 0 : i32
    return %arg0, %c0_i32, %c0_i32_0 : i32, i32, i32
  }
  func.func @transform_3(%arg0: i32) -> (i32, i32) {
    %c0_i32 = arith.constant 0 : i32
    %c0_i32_0 = arith.constant 0 : i32
    %c0_i32_1 = arith.constant 0 : i32
    return %c0_i32, %c0_i32_0 : i32, i32
  }
  func.func @transform_4(%arg0: i32) -> (i32, i32, i32) {
    %c0_i32 = arith.constant 0 : i32
    %c0_i32_0 = arith.constant 0 : i32
    %c0_i32_1 = arith.constant 0 : i32
    %c0_i32_2 = arith.constant 0 : i32
    return %c0_i32, %c0_i32_0, %c0_i32_1 : i32, i32, i32
  }
  func.func @transform_5(%arg0: i32) -> (i32, i32, i32) {
    %c0_i32 = arith.constant 0 : i32
    %c0_i32_0 = arith.constant 0 : i32
    %c0_i32_1 = arith.constant 0 : i32
    %c0_i32_2 = arith.constant 0 : i32
    return %c0_i32, %c0_i32_0, %c0_i32_1 : i32, i32, i32
  }
  func.func @transform_6(%arg0: i32) -> (i32, i32, i32) {
    %c0_i32 = arith.constant 0 : i32
    %c0_i32_0 = arith.constant 0 : i32
    %c0_i32_1 = arith.constant 0 : i32
    %c0_i32_2 = arith.constant 0 : i32
    return %c0_i32, %c0_i32_0, %c0_i32_1 : i32, i32, i32
  }
  func.func @transform_7(%arg0: i32) -> (i32, i32, i32) {
    %c0_i32 = arith.constant 0 : i32
    %c0_i32_0 = arith.constant 0 : i32
    %c0_i32_1 = arith.constant 0 : i32
    %c0_i32_2 = arith.constant 0 : i32
    return %c0_i32, %c0_i32_0, %c0_i32_1 : i32, i32, i32
  }
  func.func @transform_8(%arg0: i32) -> (i32, i32, i32) {
    %c0_i32 = arith.constant 0 : i32
    %c0_i32_0 = arith.constant 0 : i32
    %c0_i32_1 = arith.constant 0 : i32
    %c0_i32_2 = arith.constant 0 : i32
    return %c0_i32, %c0_i32_0, %c0_i32_1 : i32, i32, i32
  }
  func.func @transform_9(%arg0: i32) -> (i32, i32, i32) {
    %c0_i32 = arith.constant 0 : i32
    %c0_i32_0 = arith.constant 0 : i32
    %c0_i32_1 = arith.constant 0 : i32
    %c0_i32_2 = arith.constant 0 : i32
    return %c0_i32, %c0_i32_0, %c0_i32_1 : i32, i32, i32
  }
  func.func @transform_10(%arg0: i32) -> (i32, i32, i32) {
    %c0_i32 = arith.constant 0 : i32
    %c0_i32_0 = arith.constant 0 : i32
    %c0_i32_1 = arith.constant 0 : i32
    %c0_i32_2 = arith.constant 0 : i32
    return %c0_i32, %c0_i32_0, %c0_i32_1 : i32, i32, i32
  }
  func.func @transform_11(%arg0: i32) -> (i32, i32, i32) {
    %c0_i32 = arith.constant 0 : i32
    %c0_i32_0 = arith.constant 0 : i32
    %c0_i32_1 = arith.constant 0 : i32
    %c0_i32_2 = arith.constant 0 : i32
    return %c0_i32, %c0_i32_0, %c0_i32_1 : i32, i32, i32
  }
  func.func @transform_12(%arg0: i32) -> (i32, i32, i32) {
    %c0_i32 = arith.constant 0 : i32
    %c0_i32_0 = arith.constant 0 : i32
    %c0_i32_1 = arith.constant 0 : i32
    %c0_i32_2 = arith.constant 0 : i32
    return %c0_i32, %c0_i32_0, %c0_i32_1 : i32, i32, i32
  }
  func.func @transform_13(%arg0: i32) -> (i32, i32, i32) {
    %c0_i32 = arith.constant 0 : i32
    %c0_i32_0 = arith.constant 0 : i32
    %c0_i32_1 = arith.constant 0 : i32
    %c0_i32_2 = arith.constant 0 : i32
    return %c0_i32, %c0_i32_0, %c0_i32_1 : i32, i32, i32
  }
  func.func @transform_14(%arg0: i32) -> (i32, i32, i32) {
    %c0_i32 = arith.constant 0 : i32
    %c0_i32_0 = arith.constant 0 : i32
    %c0_i32_1 = arith.constant 0 : i32
    %c0_i32_2 = arith.constant 0 : i32
    return %c0_i32, %c0_i32_0, %c0_i32_1 : i32, i32, i32
  }
  func.func @transform_15(%arg0: i32) -> (i32, i32, i32) {
    %c0_i32 = arith.constant 0 : i32
    %c0_i32_0 = arith.constant 0 : i32
    %c0_i32_1 = arith.constant 0 : i32
    %c0_i32_2 = arith.constant 0 : i32
    return %c0_i32, %c0_i32_0, %c0_i32_1 : i32, i32, i32
  }
  func.func @transform_16(%arg0: i32) -> (i32, i32, i32) {
    %c0_i32 = arith.constant 0 : i32
    %c0_i32_0 = arith.constant 0 : i32
    %c0_i32_1 = arith.constant 0 : i32
    %c0_i32_2 = arith.constant 0 : i32
    return %c0_i32, %c0_i32_0, %c0_i32_1 : i32, i32, i32
  }
  func.func @transform_17(%arg0: i32) -> (i32, i32, i32) {
    %c0_i32 = arith.constant 0 : i32
    %c0_i32_0 = arith.constant 0 : i32
    %c0_i32_1 = arith.constant 0 : i32
    %c0_i32_2 = arith.constant 0 : i32
    return %c0_i32, %c0_i32_0, %c0_i32_1 : i32, i32, i32
  }
  func.func @transform_18(%arg0: i32) -> (i32, i32, i32) {
    %c0_i32 = arith.constant 0 : i32
    %c0_i32_0 = arith.constant 0 : i32
    %c0_i32_1 = arith.constant 0 : i32
    %c0_i32_2 = arith.constant 0 : i32
    return %c0_i32, %c0_i32_0, %c0_i32_1 : i32, i32, i32
  }
  func.func @transform_19(%arg0: i32) -> (i32, i32, i32) {
    %c0_i32 = arith.constant 0 : i32
    %c0_i32_0 = arith.constant 0 : i32
    %c0_i32_1 = arith.constant 0 : i32
    %c0_i32_2 = arith.constant 0 : i32
    return %c0_i32, %c0_i32_0, %c0_i32_1 : i32, i32, i32
  }
  func.func @transform_20(%arg0: i32) -> (i32, i32, i32) {
    %c0_i32 = arith.constant 0 : i32
    %c0_i32_0 = arith.constant 0 : i32
    %c0_i32_1 = arith.constant 0 : i32
    %c0_i32_2 = arith.constant 0 : i32
    return %c0_i32, %c0_i32_0, %c0_i32_1 : i32, i32, i32
  }
  func.func @transform_21(%arg0: i32) -> (i32, i32, i32) {
    %c0_i32 = arith.constant 0 : i32
    %c0_i32_0 = arith.constant 0 : i32
    %c0_i32_1 = arith.constant 0 : i32
    %c0_i32_2 = arith.constant 0 : i32
    return %c0_i32, %c0_i32_0, %c0_i32_1 : i32, i32, i32
  }
  func.func @transform_22(%arg0: i32) -> (i32, i32) {
    %c0_i32 = arith.constant 0 : i32
    %c0_i32_0 = arith.constant 0 : i32
    %c0_i32_1 = arith.constant 0 : i32
    return %c0_i32, %c0_i32_0 : i32, i32
  }
  func.func @transform_23(%arg0: i32) -> (i32, i32) {
    %c0_i32 = arith.constant 0 : i32
    %c0_i32_0 = arith.constant 0 : i32
    %c0_i32_1 = arith.constant 0 : i32
    return %c0_i32, %c0_i32_0 : i32, i32
  }
  func.func @transform_24(%arg0: i32) -> (i32, i32) {
    %c0_i32 = arith.constant 0 : i32
    %c0_i32_0 = arith.constant 0 : i32
    %c0_i32_1 = arith.constant 0 : i32
    return %c0_i32, %c0_i32_0 : i32, i32
  }
  func.func @transform_25(%arg0: i32) -> (i32, i32) {
    %c0_i32 = arith.constant 0 : i32
    %c0_i32_0 = arith.constant 0 : i32
    %c0_i32_1 = arith.constant 0 : i32
    return %c0_i32, %c0_i32_0 : i32, i32
  }
  func.func @transform_26(%arg0: i32) -> (i32, i32, i32) {
    %c0_i32 = arith.constant 0 : i32
    %c0_i32_0 = arith.constant 0 : i32
    %c0_i32_1 = arith.constant 0 : i32
    return %arg0, %c0_i32, %c0_i32_0 : i32, i32, i32
  }
}

</mosaic_0001>

<bundles_post_ra>
// kernel: tpu_custom_call.1
= control target key start
LH: loop header
LB: loop body
LE: loop exit
PB: predicated region body
PF: predicated region fallthrough
CT: control target
= control target key end

     0   :  { %s8977_s0 = inlined_call_operand.vmem [shape: f32[2,1,128], index: 0, kind: input, shape index: {}]   ;;  %s8978_s1 = inlined_call_operand.vmem [shape: f32[2,1,8], index: 1, kind: input, shape index: {}]   ;;  %s8979_s2 = inlined_call_operand.vmem [shape: f32[2,8,1], index: 2, kind: input, shape index: {}]   ;;  %s8980_s3 = inlined_call_operand.vmem [shape: f32[8,128], index: 3, kind: input, shape index: {}]   ;;  %s8981_s4 = inlined_call_operand.hbm [shape: bf16[2,128,1536], index: 4, kind: input, shape index: {}]   ;;  %s8982_s5 = inlined_call_operand.vmem [shape: f32[2,1,1536], index: 5, kind: input, shape index: {}]   ;;  %s8983_s6 = inlined_call_operand.hbm [shape: bf16[2,512,128], index: 6, kind: input, shape index: {}]   ;;  %s8984_s7 = inlined_call_operand.vmem [shape: f32[2,1,128], index: 7, kind: input, shape index: {}]   ;;  %s8985_s8 = inlined_call_operand.hbm [shape: bf16[2,128,128], index: 8, kind: input, shape index: {}]   ;;  %s8986_s9 = inlined_call_operand.vmem [shape: f32[2,1,128], index: 9, kind: input, shape index: {}]   ;;  %s8987_s10 = inlined_call_operand.hbm [shape: bf16[2,128,128], index: 10, kind: input, shape index: {}]   ;;  %s8988_s11 = inlined_call_operand.vmem [shape: f32[2,1,128], index: 11, kind: input, shape index: {}]   ;;  %s8989_s12 = inlined_call_operand.hbm [shape: bf16[2,128,128], index: 12, kind: input, shape index: {}]   ;;  %s8990_s13 = inlined_call_operand.vmem [shape: f32[2,1,128], index: 13, kind: input, shape index: {}]   ;;  %s8991_s14 = inlined_call_operand.hbm [shape: bf16[2,128,128], index: 14, kind: input, shape index: {}]   ;;  %s8992_s15 = inlined_call_operand.hbm [shape: f32[2,1,128], index: 15, kind: input, shape index: {}]   ;;  %s8993_s16 = inlined_call_operand.hbm [shape: f32[2,1,128], index: 16, kind: input, shape index: {}]   ;;  %s8994_s17 = inlined_call_operand.hbm [shape: f32[2,1,128], index: 17, kind: input, shape index: {}]   ;;  %s8995_s18 = inlined_call_operand.hbm [shape: f32[2,1,128], index: 18, kind: input, shape index: {}]   ;;  %s8996_s19 = inlined_call_operand.hbm [shape: f32[2,1,128], index: 19, kind: input, shape index: {}]   ;;  %s8997_s20 = inlined_call_operand.hbm [shape: f32[2,1,128], index: 20, kind: input, shape index: {}]   ;;  %s8998_s21 = inlined_call_operand.hbm [shape: f32[2,1,128], index: 21, kind: input, shape index: {}]   ;;  %s8999_s22 = inlined_call_operand.hbm [shape: f32[1,128], index: 22, kind: input, shape index: {}]   ;;  %s9000_s23 = inlined_call_operand.hbm [shape: f32[1,128], index: 23, kind: input, shape index: {}]   ;;  %s9001_s24 = inlined_call_operand.vmem [shape: bf16[128,128], index: 24, kind: input, shape index: {}]   ;;  %s9002_s25 = inlined_call_operand.vmem [shape: f32[1,128], index: 25, kind: input, shape index: {}]   ;;  %s9003_s26 = inlined_call_operand.hbm [shape: f32[2,8,128], index: 26, kind: output, shape index: {}]  }
   0x1   :  { %9040 = sst [smem:[#allocation44_spill]] %s8977_s0 }
   0x2   :  { %9041 = sst [smem:[#allocation45_spill]] %s8978_s1 }
   0x3   :  { %9042 = sst [smem:[#allocation46_spill]] %s8979_s2 }
   0x4   :  { %9043 = sst [smem:[#allocation47_spill]] %s8980_s3 }
   0x5   :  { %9044 = sst [smem:[#allocation48_spill]] %s8981_s4 }
   0x6   :  { %9045 = sst [smem:[#allocation49_spill]] %s8982_s5 }
   0x7   :  { %9046 = sst [smem:[#allocation50_spill]] %s8983_s6 }
   0x8   :  { %9047 = sst [smem:[#allocation51_spill]] %s8984_s7 }
   0x9   :  { %9048 = sst [smem:[#allocation52_spill]] %s8985_s8 }
   0xa   :  { %9049 = sst [smem:[#allocation53_spill]] %s8986_s9 }
   0xb   :  { %9050 = sst [smem:[#allocation54_spill]] %s8987_s10 }
   0xc   :  { %9051 = sst [smem:[#allocation55_spill]] %s8988_s11 }
   0xd   :  { %9052 = sst [smem:[#allocation56_spill]] %s8990_s13 }
   0xe   :  { %9053 = sst [smem:[#allocation57_spill]] %s8991_s14 }
   0xf   :  { %9054 = sst [smem:[#allocation58_spill]] %s9001_s24 }
  0x10   :  { %9055 = sst [smem:[#allocation59_spill]] %s9002_s25 }
  0x11   :  { %9056 = sst [smem:[#allocation60_spill]] %s9003_s26 }
  0x12   :  { %31 = vsyncpa [#allocation3], 0 }
  0x13   :  { %32 = vsyncpa [#allocation6], 0 }
  0x14   :  { %33 = vsyncpa [#allocation9], 0 }
  0x15   :  { %34 = vsyncpa [#allocation12], 0 }
  0x16   :  { %35 = vsyncpa [#allocation15], 0 }
  0x17   :  { %36 = vsyncpa [#allocation18], 0 }
  0x18   :  { %37 = vsyncpa [#allocation21], 0 }
  0x19   :  { %38 = vsyncpa [#allocation24], 0 }
  0x1a   :  { %39 = vsyncpa [#allocation4], 0 }
  0x1b   :  { %41 = vsyncpa [#allocation4 + $0x1], 0  ;;  %s8062_s27 = smov 0   ;;  %s8064_s3 = smov 0  }
  0x1c   :  { %s8066_s7 = smov 0   ;;  %s8068_s28 = smov 0  }
  0x1d LB: > { %9057 = sst [smem:[#allocation36_spill]] %s7888_s27  ;;  %s8083_s8 = sadd.s32 4294967295, %s7900_s28   ;;  %s7900_s28 = sphi %s8068_s28, %s9117_s28   ;;  %s7896_s7 = sphi %s8066_s7, %s9120_s7   ;;  %s7892_s3 = sphi %s8064_s3, %s9119_s3   ;;  %s7888_s27 = sphi %s8062_s27, %s9118_s27  }
  0x1e   : > { %9058 = sst [smem:[#allocation37_spill]] %s7892_s3  ;;  %s5826_s4 = sadd.s32 4294967294, %s7900_s28  }
  0x1f   : > { %9059 = sst [smem:[#allocation38_spill]] %s7896_s7  ;;  %s8087_s29 = sadd.s32 1, %s7900_s28  }
  0x20   : > { %9060 = sst [smem:[#allocation39_spill]] %s7900_s28  ;;  %s615_s0 = sadd.s32 1, %s7896_s7 }
  0x21   : > { %9061 = sst [smem:[#allocation40_spill]] %s8087_s29  ;;  %s612_s9 = ssub.s32 %s7900_s28, %s8087_s29 }
  0x22   : > { %p625_p0 = scmp.ne.s32.totalorder %s7896_s7, %s7892_s3  ;;  %p613_p1 = scmp.eq.s32.totalorder %s612_s9, 0 }
  0x23   : > { %p626_p2 = scmp.eq.s32.totalorder %s8083_s8, 1  ;;  %p631_p3 = scmp.ne.s32.totalorder %s7892_s3, %s7888_s27 }
  0x24   : > { %p632_p4 = scmp.eq.s32.totalorder %s5826_s4, 1  ;;  %p5827_p7 = scmp.ge.s32.totalorder %s7900_s28, 1 }
  0x25   : > { %s8098_s30 = scalar_select %p613_p1, %s7896_s7, %s615_s0  }
  0x26   : > { %p8100_p5 = por %p626_p2, %p625_p0  ;;  %p8104_p6 = por %p632_p4, %p631_p3 }
  0x27   : > { %9062 = sst [smem:[#allocation41_spill]] %s8098_s30  ;;  %p639_p8 = scmp.lt.s32.totalorder %s7900_s28, 3 }
  0x28   : > { %s9063_s2 = scalar_select %p8100_p5, 1, 0 }
  0x29   : > { %s9065_s5 = scalar_select %p8104_p6, 1, 0 }
  0x2a   : > { %9064 = sst [smem:[#allocation42_spill]] %s9063_s2  ;;  %p9021_p9 = scmp.eq.s32.totalorder %s8083_s8, 0 }
  0x2b   : > { %9066 = sst [smem:[#allocation43_spill]] %s9065_s5  ;;  %p8111_p10 = pnand %p5827_p7, %p639_p8 }
  0x2c   : > { %s7902_s6 = smov [#allocation5]   ;;  %s7903_s0 = smov [#allocation8]  }
  0x2d   : > { %s9067_s10 = scalar_select %p8111_p10, 1, 0 }
  0x2e   : > { %s670_s1 = sshll.u32 %s7902_s6, 4  ;;  %p6770_p11 = pneg %p8111_p10  ;;  %s8117_s1 = int_to_ptr.vmem [resolvable:$true] %s670_s1 }
  0x2f   : > { %s702_s9 = sshll.u32 %s7903_s0, 4  ;;  %s7904_s30 = smov [#allocation11]   ;;  %s8125_s9 = int_to_ptr.vmem [resolvable:$true] %s702_s9 }
  0x30   : > { %p8121_p12 = pnand %p9021_p9, %p6770_p11  ;;  %s8127_s7 = sshll.u32 %s7904_s30, 4  ;;  %s735_s7 = int_to_ptr.vmem [resolvable:$true] %s8127_s7 }
  0x31   : > { %s9069_s6 = sld [smem:[#allocation50_spill]] }
  0x32   : > { %p8137_p0 = pneg %p8121_p12 }
  0x37   : > { %s7386_s27 = scalar_lea.hbm %s9069_s6, 8192 }
  0x38   : > { %p7387_p13 = scmp.ne.s32.totalorder %s9069_s6, %s7386_s27  ;;  %p7393_p3 = scmp.lt.u32.totalorder %s7386_s27, %s9069_s6 }
  0x3a   : > { %p7389_p1 = pnand %p8137_p0, %p7387_p13 }
  0x3c   : > { %p7390_p2 = pneg %p7389_p1 }
  0x3e   : > { %p7395_p4 = pnand %p7393_p3, %p7390_p2 }
  0x40   : > { %7398 = shalt.err (!%p7395_p4)
}
  0x41   : > { %s7399_s26 = scalar_lea.vmem %s8117_s1, 8192  ;;  %p7407_p9 = scmp.lt.s32.totalorder %s8117_s1, %s8117_s1 }
  0x42   : > { %p7400_p7 = scmp.ne.s32.totalorder %s8117_s1, %s7399_s26  ;;  %p7408_p6 = scmp.lt.s32.totalorder %s7399_s26, %s7399_s26 }
  0x44   : > { %p7402_p8 = pnand %p7400_p7, %p8137_p0  ;;  %p7409_p13 = por %p7408_p6, %p7407_p9 }
  0x46   : > { %p7403_p11 = pneg %p7402_p8 }
  0x48   : > { %p7410_p1 = pnand %p7409_p13, %p7403_p11 }
  0x4a   : > { %7413 = shalt.err (!%p7410_p1)
}
  0x4b   : > { %s9029_s28 = smov 64   ;;  %s9031_s27 = smov 4  }
  0x4c   : > { %6776 = dma.hbm_to_vmem [thread:$0]  (!%p8121_p12), %s9069_s6, 8192, %s8117_s1, [#allocation6], %s9029_s28, %s9029_s28, %s9031_s27  }
  0x4d   : > { %s9071_s25 = sld [smem:[#allocation54_spill]] }
  0x53   : > { %s7414_s26 = scalar_lea.hbm %s9071_s25, 2048 }
  0x54   : > { %p7415_p6 = scmp.ne.s32.totalorder %s9071_s25, %s7414_s26  ;;  %p7421_p3 = scmp.lt.u32.totalorder %s7414_s26, %s9071_s25 }
  0x56   : > { %p7417_p9 = pnand %p7415_p6, %p8137_p0 }
  0x58   : > { %p7418_p2 = pneg %p7417_p9 }
  0x5a   : > { %p7423_p4 = pnand %p7421_p3, %p7418_p2 }
  0x5c   : > { %7426 = shalt.err (!%p7423_p4)
}
  0x5d   : > { %s7427_s1 = scalar_lea.vmem %s8125_s9, 2048  ;;  %p7435_p13 = scmp.lt.s32.totalorder %s8125_s9, %s8125_s9 }
  0x5e   : > { %p7428_p7 = scmp.ne.s32.totalorder %s8125_s9, %s7427_s1  ;;  %p7436_p1 = scmp.lt.s32.totalorder %s7427_s1, %s7427_s1 }
  0x60   : > { %p7430_p8 = pnand %p7428_p7, %p8137_p0  ;;  %p7437_p6 = por %p7436_p1, %p7435_p13 }
  0x62   : > { %p7431_p11 = pneg %p7430_p8 }
  0x64   : > { %p7438_p9 = pnand %p7437_p6, %p7431_p11 }
  0x66   : > { %7441 = shalt.err (!%p7438_p9)
}
  0x67   : > { %6782 = dma.hbm_to_vmem [thread:$0]  (!%p8121_p12), %s9071_s25, 2048, %s8125_s9, [#allocation9], %s9029_s28, %s9029_s28, %s9031_s27  }
  0x68   : > { %s9072_s14 = sld [smem:[#allocation57_spill]] }
  0x6e   : > { %s7442_s29 = scalar_lea.hbm %s9072_s14, 2048 }
  0x6f   : > { %p7443_p2 = scmp.ne.s32.totalorder %s9072_s14, %s7442_s29  ;;  %p7449_p7 = scmp.lt.u32.totalorder %s7442_s29, %s9072_s14 }
  0x71   : > { %p7445_p3 = pnand %p7443_p2, %p8137_p0 }
  0x73   : > { %p7446_p4 = pneg %p7445_p3 }
  0x75   : > { %p7451_p8 = pnand %p7449_p7, %p7446_p4 }
  0x77   : > { %7454 = shalt.err (!%p7451_p8)
}
  0x78   : > { %s7455_s1 = scalar_lea.vmem %s735_s7, 2048  ;;  %p7463_p6 = scmp.lt.s32.totalorder %s735_s7, %s735_s7 }
  0x79   : > { %p7456_p11 = scmp.ne.s32.totalorder %s735_s7, %s7455_s1  ;;  %p7464_p9 = scmp.lt.s32.totalorder %s7455_s1, %s7455_s1 }
  0x7b   : > { %p7458_p13 = pnand %p7456_p11, %p8137_p0  ;;  %p7465_p5 = por %p7464_p9, %p7463_p6 }
  0x7d   : > { %p7459_p1 = pneg %p7458_p13 }
  0x7f   : > { %p7466_p10 = pnand %p7465_p5, %p7459_p1 }
  0x81   : > { %7469 = shalt.err (!%p7466_p10)
}
  0x82   : > { %6788 = dma.hbm_to_vmem [thread:$0]  (!%p8121_p12), %s9072_s14, 2048, %s735_s7, [#allocation12], %s9029_s28, %s9029_s28, %s9031_s27  }
  0x83   : > { %s7907_s13 = smov [#allocation14]   ;;  %s7908_s3 = smov [#allocation17]  }
  0x84   : > { %s760_s24 = sshll.u32 %s7907_s13, 4  ;;  %s786_s29 = sshll.u32 %s7908_s3, 4  ;;  %s761_s24 = int_to_ptr.vmem [resolvable:$true] %s760_s24  ;;  %s787_s29 = int_to_ptr.vmem [resolvable:$true] %s786_s29 }
  0x85   : > { %s7470_s30 = scalar_lea.hbm %s8993_s16, 32 }
  0x86   : > { %p7471_p5 = scmp.ne.s32.totalorder %s8993_s16, %s7470_s30  ;;  %p7477_p3 = scmp.lt.u32.totalorder %s7470_s30, %s8993_s16 }
  0x88   : > { %p7473_p10 = pnand %p7471_p5, %p8137_p0 }
  0x8a   : > { %p7474_p2 = pneg %p7473_p10 }
  0x8c   : > { %p7479_p4 = pnand %p7477_p3, %p7474_p2 }
  0x8e   : > { %7482 = shalt.err (!%p7479_p4)
}
  0x8f   : > { %s7483_s7 = scalar_lea.vmem %s761_s24, 32  ;;  %p7491_p13 = scmp.lt.s32.totalorder %s761_s24, %s761_s24 }
  0x90   : > { %p7484_p7 = scmp.ne.s32.totalorder %s761_s24, %s7483_s7  ;;  %p7492_p1 = scmp.lt.s32.totalorder %s7483_s7, %s7483_s7 }
  0x92   : > { %p7486_p8 = pnand %p7484_p7, %p8137_p0  ;;  %p7493_p6 = por %p7492_p1, %p7491_p13 }
  0x94   : > { %p7487_p11 = pneg %p7486_p8 }
  0x96   : > { %p7494_p9 = pnand %p7493_p6, %p7487_p11 }
  0x98   : > { %7497 = shalt.err (!%p7494_p9)
}
  0x99   : > { %s9033_s11 = smov 16   ;;  %s9035_s13 = smov 1  }
  0x9a   : > { %6794 = dma.hbm_to_vmem [thread:$0]  (!%p8121_p12), %s8993_s16, 32, %s761_s24, [#allocation15], %s9033_s11, %s9033_s11, %s9035_s13  }
  0x9b   : > { %s7498_s30 = scalar_lea.hbm %s8995_s18, 32 }
  0x9c   : > { %p7499_p5 = scmp.ne.s32.totalorder %s8995_s18, %s7498_s30  ;;  %p7505_p3 = scmp.lt.u32.totalorder %s7498_s30, %s8995_s18 }
  0x9e   : > { %p7501_p10 = pnand %p7499_p5, %p8137_p0 }
  0xa0   : > { %p7502_p2 = pneg %p7501_p10 }
  0xa2   : > { %p7507_p4 = pnand %p7505_p3, %p7502_p2 }
  0xa4   : > { %7510 = shalt.err (!%p7507_p4)
}
  0xa5   : > { %s7511_s6 = scalar_lea.vmem %s787_s29, 32  ;;  %p7519_p13 = scmp.lt.s32.totalorder %s787_s29, %s787_s29 }
  0xa6   : > { %p7512_p7 = scmp.ne.s32.totalorder %s787_s29, %s7511_s6  ;;  %p7520_p1 = scmp.lt.s32.totalorder %s7511_s6, %s7511_s6 }
  0xa8   : > { %p7514_p8 = pnand %p7512_p7, %p8137_p0  ;;  %p7521_p6 = por %p7520_p1, %p7519_p13 }
  0xaa   : > { %p7515_p11 = pneg %p7514_p8 }
  0xac   : > { %p7522_p9 = pnand %p7521_p6, %p7515_p11 }
  0xae   : > { %7525 = shalt.err (!%p7522_p9)
}
  0xaf   : > { %6800 = dma.hbm_to_vmem [thread:$0]  (!%p8121_p12), %s8995_s18, 32, %s787_s29, [#allocation18], %s9033_s11, %s9033_s11, %s9035_s13  }
  0xb0   : > { %s7911_s5 = smov [#allocation20]   ;;  %s7912_s30 = smov [#allocation23]  }
  0xb1   : > { %s812_s0 = sshll.u32 %s7911_s5, 4  ;;  %s839_s26 = sshll.u32 %s7912_s30, 4  ;;  %s813_s0 = int_to_ptr.vmem [resolvable:$true] %s812_s0  ;;  %s840_s26 = int_to_ptr.vmem [resolvable:$true] %s839_s26 }
  0xb2   : > { %s7526_s7 = scalar_lea.hbm %s8997_s20, 32 }
  0xb3   : > { %p7527_p5 = scmp.ne.s32.totalorder %s8997_s20, %s7526_s7  ;;  %p7533_p3 = scmp.lt.u32.totalorder %s7526_s7, %s8997_s20 }
  0xb5   : > { %p7529_p10 = pnand %p7527_p5, %p8137_p0 }
  0xb7   : > { %p7530_p2 = pneg %p7529_p10 }
  0xb9   : > { %p7535_p4 = pnand %p7533_p3, %p7530_p2 }
  0xbb   : > { %7538 = shalt.err (!%p7535_p4)
}
  0xbc   : > { %s7539_s29 = scalar_lea.vmem %s813_s0, 32  ;;  %p7547_p13 = scmp.lt.s32.totalorder %s813_s0, %s813_s0 }
  0xbd   : > { %p7540_p7 = scmp.ne.s32.totalorder %s813_s0, %s7539_s29  ;;  %p7548_p1 = scmp.lt.s32.totalorder %s7539_s29, %s7539_s29 }
  0xbf   : > { %p7542_p8 = pnand %p7540_p7, %p8137_p0  ;;  %p7549_p6 = por %p7548_p1, %p7547_p13 }
  0xc1   : > { %p7543_p11 = pneg %p7542_p8 }
  0xc3   : > { %p7550_p9 = pnand %p7549_p6, %p7543_p11 }
  0xc5   : > { %7553 = shalt.err (!%p7550_p9)
}
  0xc6   : > { %6806 = dma.hbm_to_vmem [thread:$0]  (!%p8121_p12), %s8997_s20, 32, %s813_s0, [#allocation21], %s9033_s11, %s9033_s11, %s9035_s13  }
  0xc7   : > { %s7554_s30 = scalar_lea.hbm %s8999_s22, 16 }
  0xc8   : > { %p7555_p5 = scmp.ne.s32.totalorder %s8999_s22, %s7554_s30  ;;  %p7561_p3 = scmp.lt.u32.totalorder %s7554_s30, %s8999_s22 }
  0xca   : > { %p7557_p10 = pnand %p7555_p5, %p8137_p0 }
  0xcc   : > { %p7558_p2 = pneg %p7557_p10 }
  0xce   : > { %p7563_p4 = pnand %p7561_p3, %p7558_p2 }
  0xd0   : > { %7566 = shalt.err (!%p7563_p4)
}
  0xd1   : > { %s7567_s24 = scalar_lea.vmem %s840_s26, 16  ;;  %s7574_s0 = scalar_lea.vmem %s840_s26, 32 }
  0xd2   : > { %p7568_p7 = scmp.ne.s32.totalorder %s840_s26, %s7567_s24  ;;  %p7575_p13 = scmp.lt.s32.totalorder %s840_s26, %s840_s26 }
  0xd3   : > { %p7576_p1 = scmp.lt.s32.totalorder %s7574_s0, %s7567_s24 }
  0xd4   : > { %p7570_p8 = pnand %p7568_p7, %p8137_p0 }
  0xd5   : > { %p7577_p6 = por %p7576_p1, %p7575_p13 }
  0xd6   : > { %p7571_p11 = pneg %p7570_p8 }
  0xd8   : > { %p7578_p9 = pnand %p7577_p6, %p7571_p11 }
  0xda   : > { %7581 = shalt.err (!%p7578_p9)
}
  0xdb   : > { %6812 = dma.hbm_to_vmem [thread:$0]  (!%p8121_p12), %s8999_s22, 16, %s840_s26, [#allocation24]  }
  0xdc   : > { %s7913_s27 = smov [#allocation2]   ;;  %s9073_s1 = sld [smem:[#allocation48_spill]] }
  0xdd   : > { %s654_s3 = sshll.u32 %s7913_s27, 4  ;;  %s655_s3 = int_to_ptr.vmem [resolvable:$true] %s654_s3 }
  0xe2   : > { %s7582_s9 = scalar_lea.hbm %s9073_s1, 24576 }
  0xe3   : > { %p7583_p5 = scmp.ne.s32.totalorder %s9073_s1, %s7582_s9  ;;  %p7589_p3 = scmp.lt.u32.totalorder %s7582_s9, %s9073_s1 }
  0xe5   : > { %p7585_p10 = pnand %p7583_p5, %p8137_p0 }
  0xe7   : > { %p7586_p2 = pneg %p7585_p10 }
  0xe9   : > { %p7591_p4 = pnand %p7589_p3, %p7586_p2 }
  0xeb   : > { %7594 = shalt.err (!%p7591_p4)
}
  0xec   : > { %s7595_s26 = scalar_lea.vmem %s655_s3, 24576  ;;  %p7603_p13 = scmp.lt.s32.totalorder %s655_s3, %s655_s3 }
  0xed   : > { %p7596_p7 = scmp.ne.s32.totalorder %s655_s3, %s7595_s26  ;;  %p7604_p1 = scmp.lt.s32.totalorder %s7595_s26, %s7595_s26 }
  0xef   : > { %p7598_p8 = pnand %p7596_p7, %p8137_p0  ;;  %p7605_p6 = por %p7604_p1, %p7603_p13 }
  0xf1   : > { %p7599_p11 = pneg %p7598_p8 }
  0xf3   : > { %p7606_p9 = pnand %p7605_p6, %p7599_p11 }
  0xf5   : > { %7609 = shalt.err (!%p7606_p9)
}
  0xf6   : > { %s7914_s29 = smov 768   ;;  %s7915_s28 = smov 48  }
  0xf7   : > { %6773 = dma.hbm_to_vmem [thread:$0]  (!%p8121_p12), %s9073_s1, 24576, %s655_s3, [#allocation3], %s7914_s29, %s7914_s29, %s7915_s28  }
  0xf8   : > { %s7916_s30 = smov [#allocation7]   ;;  %s7917_s7 = smov [#allocation10]  }
  0xf9   : > { %s686_s9 = sshll.u32 %s7916_s30, 4  ;;  %s718_s6 = sshll.u32 %s7917_s7, 4  ;;  %s687_s9 = int_to_ptr.vmem [resolvable:$true] %s686_s9  ;;  %s8308_s6 = int_to_ptr.vmem [resolvable:$true] %s718_s6 }
  0xfa   : > { %s9074_s26 = sld [smem:[#allocation52_spill]] }
 0x100   : > { %s7610_s11 = scalar_lea.hbm %s9074_s26, 2048 }
 0x101   : > { %p7611_p5 = scmp.ne.s32.totalorder %s9074_s26, %s7610_s11  ;;  %p7617_p3 = scmp.lt.u32.totalorder %s7610_s11, %s9074_s26 }
 0x103   : > { %p7613_p10 = pnand %p7611_p5, %p8137_p0 }
 0x105   : > { %p7614_p2 = pneg %p7613_p10 }
 0x107   : > { %p7619_p4 = pnand %p7617_p3, %p7614_p2 }
 0x109   : > { %7622 = shalt.err (!%p7619_p4)
}
 0x10a   : > { %s7623_s29 = scalar_lea.vmem %s687_s9, 2048  ;;  %p7631_p13 = scmp.lt.s32.totalorder %s687_s9, %s687_s9 }
 0x10b   : > { %p7624_p7 = scmp.ne.s32.totalorder %s687_s9, %s7623_s29  ;;  %p7632_p1 = scmp.lt.s32.totalorder %s7623_s29, %s7623_s29 }
 0x10d   : > { %p7626_p8 = pnand %p7624_p7, %p8137_p0  ;;  %p7633_p6 = por %p7632_p1, %p7631_p13 }
 0x10f   : > { %p7627_p11 = pneg %p7626_p8 }
 0x111   : > { %p7634_p9 = pnand %p7633_p6, %p7627_p11 }
 0x113   : > { %7637 = shalt.err (!%p7634_p9)
}
 0x114   : > { %s9075_s14 = smov 4   ;;  %s9076_s13 = smov 64  }
 0x115   : > { %6779 = dma.hbm_to_vmem [thread:$0]  (!%p8121_p12), %s9074_s26, 2048, %s687_s9, [#allocation6], %s9076_s13, %s9076_s13, %s9075_s14  }
 0x116   : > { %s7638_s7 = scalar_lea.hbm %s8989_s12, 2048 }
 0x117   : > { %p7639_p5 = scmp.ne.s32.totalorder %s8989_s12, %s7638_s7  ;;  %p7645_p3 = scmp.lt.u32.totalorder %s7638_s7, %s8989_s12 }
 0x119   : > { %p7641_p10 = pnand %p7639_p5, %p8137_p0 }
 0x11b   : > { %p7642_p2 = pneg %p7641_p10 }
 0x11d   : > { %p7647_p4 = pnand %p7645_p3, %p7642_p2 }
 0x11f   : > { %7650 = shalt.err (!%p7647_p4)
}
 0x120   : > { %s7651_s9 = scalar_lea.vmem %s8308_s6, 2048  ;;  %p7659_p13 = scmp.lt.s32.totalorder %s8308_s6, %s8308_s6 }
 0x121   : > { %p7652_p7 = scmp.ne.s32.totalorder %s8308_s6, %s7651_s9  ;;  %p7660_p1 = scmp.lt.s32.totalorder %s7651_s9, %s7651_s9 }
 0x123   : > { %p7654_p8 = pnand %p7652_p7, %p8137_p0  ;;  %p7661_p6 = por %p7660_p1, %p7659_p13 }
 0x125   : > { %p7655_p11 = pneg %p7654_p8 }
 0x127   : > { %p7662_p9 = pnand %p7661_p6, %p7655_p11 }
 0x129   : > { %7665 = shalt.err (!%p7662_p9)
}
 0x12a   : > { %6785 = dma.hbm_to_vmem [thread:$0]  (!%p8121_p12), %s8989_s12, 2048, %s8308_s6, [#allocation9], %s9076_s13, %s9076_s13, %s9075_s14  }
 0x12b   : > { %s7918_s11 = smov [#allocation13]   ;;  %s7919_s30 = smov [#allocation16]  }
 0x12c   : > { %s747_s5 = sshll.u32 %s7918_s11, 4  ;;  %s773_s7 = sshll.u32 %s7919_s30, 4  ;;  %s748_s5 = int_to_ptr.vmem [resolvable:$true] %s747_s5  ;;  %s8357_s7 = int_to_ptr.vmem [resolvable:$true] %s773_s7 }
 0x12d   : > { %s7666_s27 = scalar_lea.hbm %s8992_s15, 32 }
 0x12e   : > { %p7667_p5 = scmp.ne.s32.totalorder %s8992_s15, %s7666_s27  ;;  %p7673_p3 = scmp.lt.u32.totalorder %s7666_s27, %s8992_s15 }
 0x130   : > { %p7669_p10 = pnand %p7667_p5, %p8137_p0 }
 0x132   : > { %p7670_p2 = pneg %p7669_p10 }
 0x134   : > { %p7675_p4 = pnand %p7673_p3, %p7670_p2 }
 0x136   : > { %7678 = shalt.err (!%p7675_p4)
}
 0x137   : > { %s7679_s14 = scalar_lea.vmem %s748_s5, 32  ;;  %p7687_p13 = scmp.lt.s32.totalorder %s748_s5, %s748_s5 }
 0x138   : > { %p7680_p7 = scmp.ne.s32.totalorder %s748_s5, %s7679_s14  ;;  %p7688_p1 = scmp.lt.s32.totalorder %s7679_s14, %s7679_s14 }
 0x13a   : > { %p7682_p8 = pnand %p7680_p7, %p8137_p0  ;;  %p7689_p6 = por %p7688_p1, %p7687_p13 }
 0x13c   : > { %p7683_p11 = pneg %p7682_p8 }
 0x13e   : > { %p7690_p9 = pnand %p7689_p6, %p7683_p11 }
 0x140   : > { %7693 = shalt.err (!%p7690_p9)
}
 0x141   : > { %s9077_s13 = smov 1   ;;  %s9078_s28 = smov 16  }
 0x142   : > { %6791 = dma.hbm_to_vmem [thread:$0]  (!%p8121_p12), %s8992_s15, 32, %s748_s5, [#allocation12], %s9078_s28, %s9078_s28, %s9077_s13  }
 0x143   : > { %s7694_s27 = scalar_lea.hbm %s8994_s17, 32 }
 0x144   : > { %p7695_p5 = scmp.ne.s32.totalorder %s8994_s17, %s7694_s27  ;;  %p7701_p3 = scmp.lt.u32.totalorder %s7694_s27, %s8994_s17 }
 0x146   : > { %p7697_p10 = pnand %p7695_p5, %p8137_p0 }
 0x148   : > { %p7698_p2 = pneg %p7697_p10 }
 0x14a   : > { %p7703_p4 = pnand %p7701_p3, %p7698_p2 }
 0x14c   : > { %7706 = shalt.err (!%p7703_p4)
}
 0x14d   : > { %s7707_s5 = scalar_lea.vmem %s8357_s7, 32  ;;  %p7715_p13 = scmp.lt.s32.totalorder %s8357_s7, %s8357_s7 }
 0x14e   : > { %p7708_p7 = scmp.ne.s32.totalorder %s8357_s7, %s7707_s5  ;;  %p7716_p1 = scmp.lt.s32.totalorder %s7707_s5, %s7707_s5 }
 0x150   : > { %p7710_p8 = pnand %p7708_p7, %p8137_p0  ;;  %p7717_p6 = por %p7716_p1, %p7715_p13 }
 0x152   : > { %p7711_p11 = pneg %p7710_p8 }
 0x154   : > { %p7718_p9 = pnand %p7717_p6, %p7711_p11 }
 0x156   : > { %7721 = shalt.err (!%p7718_p9)
}
 0x157   : > { %6797 = dma.hbm_to_vmem [thread:$0]  (!%p8121_p12), %s8994_s17, 32, %s8357_s7, [#allocation15], %s9078_s28, %s9078_s28, %s9077_s13  }
 0x158   : > { %s7920_s30 = smov [#allocation19]   ;;  %s7921_s0 = smov [#allocation22]  }
 0x159   : > { %s799_s24 = sshll.u32 %s7920_s30, 4  ;;  %s825_s27 = sshll.u32 %s7921_s0, 4  ;;  %s800_s24 = int_to_ptr.vmem [resolvable:$true] %s799_s24  ;;  %s8406_s27 = int_to_ptr.vmem [resolvable:$true] %s825_s27 }
 0x15a   : > { %s7722_s29 = scalar_lea.hbm %s8996_s19, 32 }
 0x15b   : > { %p7723_p5 = scmp.ne.s32.totalorder %s8996_s19, %s7722_s29  ;;  %p7729_p3 = scmp.lt.u32.totalorder %s7722_s29, %s8996_s19 }
 0x15d   : > { %p7725_p10 = pnand %p7723_p5, %p8137_p0 }
 0x15f   : > { %p7726_p2 = pneg %p7725_p10 }
 0x161   : > { %p7731_p4 = pnand %p7729_p3, %p7726_p2 }
 0x163   : > { %7734 = shalt.err (!%p7731_p4)
}
 0x164   : > { %s7735_s11 = scalar_lea.vmem %s800_s24, 32  ;;  %p7743_p13 = scmp.lt.s32.totalorder %s800_s24, %s800_s24 }
 0x165   : > { %p7736_p7 = scmp.ne.s32.totalorder %s800_s24, %s7735_s11  ;;  %p7744_p1 = scmp.lt.s32.totalorder %s7735_s11, %s7735_s11 }
 0x167   : > { %p7738_p8 = pnand %p7736_p7, %p8137_p0  ;;  %p7745_p6 = por %p7744_p1, %p7743_p13 }
 0x169   : > { %p7739_p11 = pneg %p7738_p8 }
 0x16b   : > { %p7746_p9 = pnand %p7745_p6, %p7739_p11 }
 0x16d   : > { %7749 = shalt.err (!%p7746_p9)
}
 0x16e   : > { %6803 = dma.hbm_to_vmem [thread:$0]  (!%p8121_p12), %s8996_s19, 32, %s800_s24, [#allocation18], %s9078_s28, %s9078_s28, %s9077_s13  }
 0x16f   : > { %s7750_s29 = scalar_lea.hbm %s8998_s21, 32 }
 0x170   : > { %p7751_p5 = scmp.ne.s32.totalorder %s8998_s21, %s7750_s29  ;;  %p7757_p3 = scmp.lt.u32.totalorder %s7750_s29, %s8998_s21 }
 0x172   : > { %p7753_p10 = pnand %p7751_p5, %p8137_p0 }
 0x174   : > { %p7754_p2 = pneg %p7753_p10 }
 0x176   : > { %p7759_p4 = pnand %p7757_p3, %p7754_p2 }
 0x178   : > { %7762 = shalt.err (!%p7759_p4)
}
 0x179   : > { %s7763_s24 = scalar_lea.vmem %s8406_s27, 32  ;;  %p7771_p13 = scmp.lt.s32.totalorder %s8406_s27, %s8406_s27 }
 0x17a   : > { %p7764_p7 = scmp.ne.s32.totalorder %s8406_s27, %s7763_s24  ;;  %p7772_p1 = scmp.lt.s32.totalorder %s7763_s24, %s7763_s24 }
 0x17c   : > { %p7766_p8 = pnand %p7764_p7, %p8137_p0  ;;  %p7773_p6 = por %p7772_p1, %p7771_p13 }
 0x17e   : > { %p7767_p11 = pneg %p7766_p8 }
 0x180   : > { %p7774_p9 = pnand %p7773_p6, %p7767_p11 }
 0x182   : > { %7777 = shalt.err (!%p7774_p9)
}
 0x183   : > { %6809 = dma.hbm_to_vmem [thread:$0]  (!%p8121_p12), %s8998_s21, 32, %s8406_s27, [#allocation21], %s9078_s28, %s9078_s28, %s9077_s13  }
 0x184   : > { %s7922_s0 = smov [#allocation25]   ;;  %s7778_s6 = scalar_lea.hbm %s9000_s23, 16 }
 0x185   : > { %s850_s3 = sshll.u32 %s7922_s0, 4  ;;  %p7779_p5 = scmp.ne.s32.totalorder %s9000_s23, %s7778_s6  ;;  %s851_s3 = int_to_ptr.vmem [resolvable:$true] %s850_s3 }
 0x186   : > { %p7785_p3 = scmp.lt.u32.totalorder %s7778_s6, %s9000_s23 }
 0x187   : > { %p7781_p10 = pnand %p7779_p5, %p8137_p0 }
 0x189   : > { %p7782_p2 = pneg %p7781_p10 }
 0x18b   : > { %p7787_p4 = pnand %p7785_p3, %p7782_p2 }
 0x18d   : > { %7790 = shalt.err (!%p7787_p4)
}
 0x18e   : > { %s7791_s13 = scalar_lea.vmem %s851_s3, 16  ;;  %s7798_s28 = scalar_lea.vmem %s851_s3, 32 }
 0x18f   : > { %p7792_p7 = scmp.ne.s32.totalorder %s851_s3, %s7791_s13  ;;  %p7799_p13 = scmp.lt.s32.totalorder %s851_s3, %s851_s3 }
 0x190   : > { %p7800_p1 = scmp.lt.s32.totalorder %s7798_s28, %s7791_s13 }
 0x191   : > { %p7794_p8 = pnand %p7792_p7, %p8137_p0 }
 0x192   : > { %p7801_p6 = por %p7800_p1, %p7799_p13 }
 0x193   : > { %p7795_p11 = pneg %p7794_p8 }
 0x195   : > { %p7802_p9 = pnand %p7801_p6, %p7795_p11 }
 0x197   : > { %7805 = shalt.err (!%p7802_p9)
}
 0x198   : > { %6815 = dma.hbm_to_vmem [thread:$0]  (!%p8121_p12), %s9000_s23, 16, %s851_s3, [#allocation24]  }
 0x199   : > { %p9079_p5 = scmp.ne.s32.totalorder %s9067_s10, 0 }
 0x19a   : > { %p9080_p10 = scmp.eq.s32.totalorder (!%p9079_p5), %s8083_s8, 0 }
 0x19b   : > { %888 = sbr.rel (%p9079_p5) target bundleno = 7233 (0x1c41), region = 124 }
 0x1a2   : > { %7851 = dma.done.wait (%p9080_p10), [#allocation3], 24576   ;;  %p9081_p0 = pmov %p9080_p10 }
 0x1a4   : > { %7853 = vsyncadd (%p9081_p0), [#allocation3], 4294942720  ;;  %p9082_p2 = pmov %p9081_p0 }
 0x1a5   : > { %p9083_p3 = pmov %p9081_p0 }
 0x1a6   : > { %7855 = dma.done.wait (%p9082_p2), [#allocation6], 10240  }
 0x1a7   : > { %7857 = vsyncadd (%p9083_p3), [#allocation6], 4294957056  ;;  %p9084_p4 = pmov %p9081_p0 }
 0x1a8   : > { %p9085_p12 = pmov %p9081_p0 }
 0x1a9   : > { %7859 = dma.done.wait (%p9084_p4), [#allocation9], 4096  }
 0x1aa   : > { %7861 = vsyncadd (%p9085_p12), [#allocation9], 4294963200  ;;  %p9086_p7 = pmov %p9081_p0 }
 0x1ab   : > { %p9087_p8 = pmov %p9081_p0 }
 0x1ac   : > { %7863 = dma.done.wait (%p9086_p7), [#allocation12], 2080  }
 0x1ad   : > { %7865 = vsyncadd (%p9087_p8), [#allocation12], 4294965216  ;;  %p9088_p11 = pmov %p9081_p0 }
 0x1ae   : > { %p9089_p13 = pmov %p9081_p0 }
 0x1af   : > { %7867 = dma.done.wait (%p9088_p11), [#allocation15], 64  }
 0x1b0   : > { %7869 = vsyncadd (%p9089_p13), [#allocation15], 4294967232  ;;  %p9090_p1 = pmov %p9081_p0 }
 0x1b1   : > { %p9091_p6 = pmov %p9081_p0 }
 0x1b2   : > { %7871 = dma.done.wait (%p9090_p1), [#allocation18], 64  }
 0x1b3   : > { %7873 = vsyncadd (%p9091_p6), [#allocation18], 4294967232  ;;  %p9092_p9 = pmov %p9081_p0 }
 0x1b4   : > { %p9093_p5 = pmov %p9081_p0 }
 0x1b5   : > { %7875 = dma.done.wait (%p9092_p9), [#allocation21], 64  }
 0x1b6   : > { %7877 = vsyncadd (%p9093_p5), [#allocation21], 4294967232  ;;  %p9094_p10 = pmov %p9081_p0 }
 0x1b8   : > { %7879 = dma.done.wait (%p9094_p10), [#allocation24], 32  }
 0x1b9   : > { %7881 = vsyncadd (%p9081_p0), [#allocation24], 4294967264  ;;  %p1019_p2 = scmp.lt.s32.totalorder %s8083_s8, 1  ;;  %s9095_s30 = sld [smem:[#allocation44_spill]]  ;;  %vm1036_vm0 = vcmask 1040384   ;;  %v7923_v2 = vmov 0.0   ;;  %v1030_v7 = vlaneseq }
 0x1ba   : > { %6432 = vmatprep.subr.bf16.mxu0 %v7923_v2  ;;  %6452 = vmatprep.subr.bf16.mxu1 %v7923_v2  ;;  %v6908_v3 = vld [vmem:[#allocation7] sm:$0xff]   ;;  %v6909_v4 = vld [vmem:[#allocation7 + $0x8] sm:$0xff]   ;;  %v6910_v5 = vld [vmem:[#allocation7 + $0x10] sm:$0xff]   ;;  %vm7924_vm2 = vmmov 0   ;;  %v7925_v20 = vmov 0   ;;  %s9096_s29 = sld [smem:[#allocation47_spill]] }
 0x1bb   : > { %s8509_s2 = scalar_select %p1019_p2, %s8083_s8, 1  ;;  %6433 = vmatpush3.bf16.msra.mxu0 %v6908_v3  ;;  %v6911_v6 = vld [vmem:[#allocation7 + $0x18] sm:$0xff]   ;;  %v1031_v8 = vand.u32 127, %v1030_v7  ;;  %v6912_v16 = vld [vmem:[#allocation7 + $0x20] sm:$0xff]   ;;  %v6913_v17 = vld [vmem:[#allocation7 + $0x28] sm:$0xff]   ;;  %6448 = vmatprep.mubr.msk.bf16.mxu0 %vm7924_vm2, %v7923_v2  ;;  %vm2418_vm3 = vcmask 64512  }
 0x1bc   : > { %6434 = vmatprep.subr.bf16.mxu0 %v7923_v2  ;;  %6468 = vmatprep.mubr.msk.bf16.mxu1 %vm7924_vm2, %v7923_v2  ;;  %v6914_v18 = vld [vmem:[#allocation7 + $0x30] sm:$0xff]   ;;  %v6915_v19 = vld [vmem:[#allocation7 + $0x38] sm:$0xff]   ;;  %v6972_v21 = vld [vmem:[#allocation8] sm:$0xff]   ;;  %s9097_s14 = sld [smem:[#allocation53_spill]]  ;;  %s9098_s27 = sld [smem:[#allocation49_spill]]  ;;  %vm2435_vm4 = vcmask 1043456  }
 0x1bd   : > { %vm1032_vm1 = vcmp.lt.s32.totalorder %v1031_v8, 32  ;;  %6907 = vset.pattern.permute.xlu0 %v7925_v20  ;;  %6453 = vmatpush3.bf16.msra.mxu1 %v6972_v21  ;;  %v6973_v22 = vld [vmem:[#allocation8 + $0x8] sm:$0xff]   ;;  %v6974_v23 = vld [vmem:[#allocation8 + $0x10] sm:$0xff]   ;;  %v6975_v24 = vld [vmem:[#allocation8 + $0x18] sm:$0xff]   ;;  %s9101_s7 = sld [smem:[#allocation51_spill]]  ;;  %s9103_s4 = sld [smem:[#allocation55_spill]] }
 0x1be   : > { %v8524_v11 = vsel %vm1032_vm1, 1.0, %v7923_v2  ;;  %6454 = vmatprep.subr.bf16.mxu1 %v7923_v2  ;;  %v6976_v27 = vld [vmem:[#allocation8 + $0x20] sm:$0xff]   ;;  %v6977_v29 = vld [vmem:[#allocation8 + $0x28] sm:$0xff]   ;;  %v6978_v30 = vld [vmem:[#allocation8 + $0x30] sm:$0xff]   ;;  %s9104_s9 = sld [smem:[#allocation56_spill]]  ;;  %s5861_s3 = sshll.u32 %s8509_s2, 3 }
 0x1bf   : > { %s1021_s0 = scalar_lea.vmem %s9095_s30, %s8509_s2  ;;  %6435 = vmatpush3.bf16.msra.mxu0 %v6909_v4  ;;  %v6916_v33 = vld [vmem:[#allocation7 + $0x40] sm:$0xff]   ;;  %v6917_v35 = vld [vmem:[#allocation7 + $0x48] sm:$0xff]   ;;  %v6918_v36 = vld [vmem:[#allocation7 + $0x50] sm:$0xff]   ;;  %s9100_s30 = sld [smem:[#allocation45_spill]] }
 0x1c0   : > { %v1035_v0 = vld [vmem:[%s1021_s0] sm:$0x1]  ;;  %6436 = vmatprep.subr.bf16.mxu0 %v7923_v2  ;;  %v6919_v37 = vld [vmem:[#allocation7 + $0x58] sm:$0xff]   ;;  %v6921_v39 = vld [vmem:[#allocation7 + $0x68] sm:$0xff]  }
 0x1c1   : > { %v1037_v1 = vsel %vm1036_vm0, %v1035_v0, 0.0  ;;  %6455 = vmatpush3.bf16.msra.mxu1 %v6973_v22  ;;  %v6920_v38 = vld [vmem:[#allocation7 + $0x60] sm:$0xff]   ;;  %v6922_v40 = vld [vmem:[#allocation7 + $0x70] sm:$0xff]   ;;  %v6923_v41 = vld [vmem:[#allocation7 + $0x78] sm:$0xff]  }
 0x1c2   : > { %1038 = vadd.xlane.f32.xlu0 %v1037_v1  ;;  %6456 = vmatprep.subr.bf16.mxu1 %v7923_v2  ;;  %v6926_v42 = vld [vmem:[#allocation2 + $0x4] ss:$48 sps:$4 sm:$0xff]   ;;  %v6924_v43 = vld [vmem:[#allocation2] ss:$48 sps:$4 sm:$0xff]   ;;  %s9099_s11 = smov %s9098_s27 }
 0x1c3   : > { %6437 = vmatpush3.bf16.msra.mxu0 %v6910_v5  ;;  %v6929_v44 = vld [vmem:[#allocation2 + $0x64] ss:$48 sps:$4 sm:$0xff]   ;;  %v6927_v45 = vld [vmem:[#allocation2 + $0x60] ss:$48 sps:$4 sm:$0xff]   ;;  %s9102_s24 = smov %s9101_s7 }
 0x1c4   : > { %6438 = vmatprep.subr.bf16.mxu0 %v7923_v2  ;;  %v6932_v46 = vld [vmem:[#allocation2 + $0xc4] ss:$48 sps:$4 sm:$0xff]   ;;  %v6930_v47 = vld [vmem:[#allocation2 + $0xc0] ss:$48 sps:$4 sm:$0xff]  }
 0x1c5   : > { %6457 = vmatpush3.bf16.msra.mxu1 %v6974_v23  ;;  %v6935_v48 = vld [vmem:[#allocation2 + $0x124] ss:$48 sps:$4 sm:$0xff]   ;;  %v6933_v49 = vld [vmem:[#allocation2 + $0x120] ss:$48 sps:$4 sm:$0xff]   ;;  %s8652_s0 = scalar_lea.vmem %s9100_s30, %s8509_s2  ;;  %s9109_s30 = sld [smem:[#allocation59_spill]] }
 0x1c6   : > { %6458 = vmatprep.subr.bf16.mxu1 %v7923_v2  ;;  %v6938_v50 = vld [vmem:[#allocation2 + $0x184] ss:$48 sps:$4 sm:$0xff]   ;;  %v6936_v51 = vld [vmem:[#allocation2 + $0x180] ss:$48 sps:$4 sm:$0xff]  }
 0x1c7   : > { %6439 = vmatpush3.bf16.msra.mxu0 %v6911_v6  ;;  %v6941_v52 = vld [vmem:[#allocation2 + $0x1e4] ss:$48 sps:$4 sm:$0xff]   ;;  %v6939_v53 = vld [vmem:[#allocation2 + $0x1e0] ss:$48 sps:$4 sm:$0xff]  }
 0x1c8   : > { %6440 = vmatprep.subr.bf16.mxu0 %v7923_v2  ;;  %v6944_v54 = vld [vmem:[#allocation2 + $0x244] ss:$48 sps:$4 sm:$0xff]   ;;  %v6942_v55 = vld [vmem:[#allocation2 + $0x240] ss:$48 sps:$4 sm:$0xff]  }
 0x1c9   : > { %6459 = vmatpush3.bf16.msra.mxu1 %v6975_v24  ;;  %v6947_v56 = vld [vmem:[#allocation2 + $0x2a4] ss:$48 sps:$4 sm:$0xff]   ;;  %v6945_v57 = vld [vmem:[#allocation2 + $0x2a0] ss:$48 sps:$4 sm:$0xff]  }
 0x1ca   : > { %6460 = vmatprep.subr.bf16.mxu1 %v7923_v2  ;;  %v1480_v58 = vld [vmem:[%s9096_s29] sm:$0xff] }
 0x1cb   : > { %6441 = vmatpush3.bf16.msra.mxu0 %v6912_v16  ;;  %v6950_v59 = vld [vmem:[#allocation2 + $0x14] ss:$48 sps:$4 sm:$0xff]   ;;  %v8557_v60 = vpack.c.bf16 %v1480_v58, %v1480_v58  ;;  %v6948_v61 = vld [vmem:[#allocation2 + $0x10] ss:$48 sps:$4 sm:$0xff]   ;;  %v7012_v58 = vld [vmem:[#allocation2 + $0x18] ss:$48 sps:$4 sm:$0xff]  }
 0x1cc   : > { %6442 = vmatprep.subr.bf16.mxu0 %v7923_v2  ;;  %v6953_v62 = vld [vmem:[#allocation2 + $0x74] ss:$48 sps:$4 sm:$0xff]   ;;  %v6951_v63 = vld [vmem:[#allocation2 + $0x70] ss:$48 sps:$4 sm:$0xff]  }
 0x1cd   : > { %6461 = vmatpush3.bf16.msra.mxu1 %v6976_v27  ;;  %v6954_v1 = vld [vmem:[#allocation2 + $0xd0] ss:$48 sps:$4 sm:$0xff]   ;;  %v6959_v3 = vld [vmem:[#allocation2 + $0x134] ss:$48 sps:$4 sm:$0xff]   ;;  %v6983_v27 = vld [vmem:[#allocation8 + $0x58] sm:$0xff]  }
 0x1ce   : > { %6462 = vmatprep.subr.bf16.mxu1 %v7923_v2  ;;  %v6957_v4 = vld [vmem:[#allocation2 + $0x130] ss:$48 sps:$4 sm:$0xff]   ;;  %v6962_v5 = vld [vmem:[#allocation2 + $0x194] ss:$48 sps:$4 sm:$0xff]  }
 0x1cf   : > { %6443 = vmatpush3.bf16.msra.mxu0 %v6913_v17  ;;  %v6960_v6 = vld [vmem:[#allocation2 + $0x190] ss:$48 sps:$4 sm:$0xff]   ;;  %v6965_v8 = vld [vmem:[#allocation2 + $0x1f4] ss:$48 sps:$4 sm:$0xff]  }
 0x1d0   : > { %6444 = vmatprep.subr.bf16.mxu0 %v7923_v2  ;;  %v1068_v16 = vld [vmem:[%s9097_s14] sm:$0x1] }
 0x1d1   : > { %6463 = vmatpush3.bf16.msra.mxu1 %v6977_v29  ;;  %v6980_v22 = vld [vmem:[#allocation8 + $0x40] sm:$0xff]   ;;  %v6985_v29 = vld [vmem:[#allocation8 + $0x68] sm:$0xff]  }
 0x1d2   : > { %6464 = vmatprep.subr.bf16.mxu1 %v7923_v2 }
 0x1d3   : > { %6445 = vmatpush3.bf16.msra.mxu0 %v6914_v18 }
 0x1d4   : > { %6446 = vmatprep.subr.bf16.mxu0 %v7923_v2 }
 0x1d5   : > { %6465 = vmatpush3.bf16.msra.mxu1 %v6978_v30  ;;  %v6986_v30 = vld [vmem:[#allocation8 + $0x70] sm:$0xff]  }
 0x1d6   : > { %6466 = vmatprep.subr.bf16.mxu1 %v7923_v2 }
 0x1d7   : > { %6447 = vmatpush3.bf16.msra.mxu0 %v6915_v19 }
 0x1d8   : > { %6472 = vmatprep.subr.bf16.mxu0 %v7923_v2 }
 0x24f   : > { %v1039_v9 = vpop.xlane.xlu0 %1038 }
 0x250   : > { %v1040_v10 = vmul.f32 0.03125, %v1039_v9  ;;  %v6963_v9 = vld [vmem:[#allocation2 + $0x1f0] ss:$48 sps:$4 sm:$0xff]  }
 0x252   : > { %v1041_v12 = vsub.f32 %v1035_v0, %v1040_v10  ;;  %v6956_v0 = vld [vmem:[#allocation2 + $0xd4] ss:$48 sps:$4 sm:$0xff]  }
 0x253   : > { %v6968_v10 = vld [vmem:[#allocation2 + $0x254] ss:$48 sps:$4 sm:$0xff]  }
 0x254   : > { %v1042_v13 = vmul.f32 %v8524_v11, %v1041_v12  ;;  %v6979_v12 = vld [vmem:[#allocation8 + $0x38] sm:$0xff]  }
 0x255   : > { %6467 = vmatpush3.bf16.msra.mxu1 %v6979_v12  ;;  %v7030_v12 = vld [vmem:[#allocation2 + $0x258] ss:$48 sps:$4 sm:$0xff]  }
 0x256   : > { %v1043_v14 = vmul.f32 %v1042_v13, %v1042_v13  ;;  %6492 = vmatprep.subr.bf16.mxu1 %v7923_v2 }
 0x258   : > { %v1044_v15 = vsel %vm1036_vm0, %v1043_v14, 0.0  ;;  %v6971_v14 = vld [vmem:[#allocation2 + $0x2b4] ss:$48 sps:$4 sm:$0xff]  }
 0x259   : > { %1045 = vadd.xlane.f32.xlu0 %v1044_v15  ;;  %v6969_v15 = vld [vmem:[#allocation2 + $0x2b0] ss:$48 sps:$4 sm:$0xff]  }
 0x2e6   : > { %v1046_v25 = vpop.xlane.xlu0 %1045 }
 0x2e7   : > { %v1047_v26 = vmul.f32 0.03125, %v1046_v25  ;;  %v6981_v25 = vld [vmem:[#allocation8 + $0x48] sm:$0xff]  }
 0x2e9   : > { %v1048_v28 = vadd.f32 1e-05, %v1047_v26  ;;  %v6982_v26 = vld [vmem:[#allocation8 + $0x50] sm:$0xff]  }
 0x2eb   : > { %7332 = vrsqrt.f32 %v1048_v28  ;;  %v6984_v28 = vld [vmem:[#allocation8 + $0x60] sm:$0xff]  }
 0x2f5   : > { %v7333_v31 = vpop.eup %7332 }
 0x2f6   : > { %v1050_v32 = vmul.f32 %v7333_v31, %v1042_v13  ;;  %v6966_v13 = vld [vmem:[#allocation2 + $0x250] ss:$48 sps:$4 sm:$0xff]  }
 0x2f7   : > { %v5879_v31 = vld [vmem:[%s9097_s14 + $0x1] sm:$0x1] }
 0x2f8   : > { %v1067_v34 = vpack.c.bf16 %v1050_v32, %v1050_v32  ;;  %v6987_v32 = vld [vmem:[#allocation8 + $0x78] sm:$0xff]  }
 0x2fa   : > { %6449 = vmatmul.mubr.bf16.vlgmr.msra.gmra.mrb[0].mxu0 %v1067_v34 }
 0x2fb   : > { %6473 = vmatpush3.bf16.msra.mxu0 %v6916_v33  ;;  %6488 = vmatprep.mubr.msk.bf16.mxu0 %vm7924_vm2, %v7923_v2  ;;  %v6990_v33 = vld [vmem:[#allocation2 + $0xc] ss:$48 sps:$4 sm:$0xff]  }
 0x2fc   : > { %6474 = vmatprep.subr.bf16.mxu0 %v7923_v2 }
 0x2ff   : > { %6475 = vmatpush3.bf16.msra.mxu0 %v6917_v35 }
 0x300   : > { %6476 = vmatprep.subr.bf16.mxu0 %v7923_v2 }
 0x303   : > { %6477 = vmatpush3.bf16.msra.mxu0 %v6918_v36 }
 0x304   : > { %6478 = vmatprep.subr.bf16.mxu0 %v7923_v2 }
 0x307   : > { %6479 = vmatpush3.bf16.msra.mxu0 %v6919_v37 }
 0x308   : > { %6480 = vmatprep.subr.bf16.mxu0 %v7923_v2 }
 0x30b   : > { %6481 = vmatpush3.bf16.msra.mxu0 %v6920_v38  ;;  %v6988_v38 = vld [vmem:[#allocation2 + $0x8] ss:$48 sps:$4 sm:$0xff]  }
 0x30c   : > { %6482 = vmatprep.subr.bf16.mxu0 %v7923_v2 }
 0x30f   : > { %6483 = vmatpush3.bf16.msra.mxu0 %v6921_v39 }
 0x310   : > { %6484 = vmatprep.subr.bf16.mxu0 %v7923_v2 }
 0x313   : > { %6485 = vmatpush3.bf16.msra.mxu0 %v6922_v40 }
 0x314   : > { %6486 = vmatprep.subr.bf16.mxu0 %v7923_v2 }
 0x317   : > { %6487 = vmatpush3.bf16.msra.mxu0 %v6923_v41  ;;  %v6993_v41 = vld [vmem:[#allocation2 + $0x6c] ss:$48 sps:$4 sm:$0xff]  }
 0x318   : > { %2122 = vmatprep.subr.bf16.mxu0 %v6926_v42  ;;  %v6991_v42 = vld [vmem:[#allocation2 + $0x68] ss:$48 sps:$4 sm:$0xff]  }
 0x31a   : > { %6489 = vmatmul.mubr.bf16.vlgmr.msra.gmra.mrb[4].mxu0 %v1067_v34 }
 0x31b   : > { %2123 = vmatpush1.bf16.msra.mxu0 %v6924_v43  ;;  %2154 = vmatprep.mubr.bf16.mxu0 %v7925_v20  ;;  %v6996_v43 = vld [vmem:[#allocation2 + $0xcc] ss:$48 sps:$4 sm:$0xff]  }
 0x31c   : > { %2124 = vmatprep.subr.bf16.mxu0 %v6929_v44  ;;  %v6994_v44 = vld [vmem:[#allocation2 + $0xc8] ss:$48 sps:$4 sm:$0xff]  }
 0x31f   : > { %2125 = vmatpush1.bf16.msra.mxu0 %v6927_v45  ;;  %v6999_v45 = vld [vmem:[#allocation2 + $0x12c] ss:$48 sps:$4 sm:$0xff]  }
 0x320   : > { %2126 = vmatprep.subr.bf16.mxu0 %v6932_v46  ;;  %v6997_v46 = vld [vmem:[#allocation2 + $0x128] ss:$48 sps:$4 sm:$0xff]  }
 0x323   : > { %2127 = vmatpush1.bf16.msra.mxu0 %v6930_v47  ;;  %v7002_v47 = vld [vmem:[#allocation2 + $0x18c] ss:$48 sps:$4 sm:$0xff]  }
 0x324   : > { %2128 = vmatprep.subr.bf16.mxu0 %v6935_v48  ;;  %v7000_v48 = vld [vmem:[#allocation2 + $0x188] ss:$48 sps:$4 sm:$0xff]  }
 0x327   : > { %2129 = vmatpush1.bf16.msra.mxu0 %v6933_v49  ;;  %v7005_v49 = vld [vmem:[#allocation2 + $0x1ec] ss:$48 sps:$4 sm:$0xff]  }
 0x328   : > { %2130 = vmatprep.subr.bf16.mxu0 %v6938_v50  ;;  %v7003_v50 = vld [vmem:[#allocation2 + $0x1e8] ss:$48 sps:$4 sm:$0xff]  }
 0x32b   : > { %2131 = vmatpush1.bf16.msra.mxu0 %v6936_v51  ;;  %v7008_v51 = vld [vmem:[#allocation2 + $0x24c] ss:$48 sps:$4 sm:$0xff]  }
 0x32c   : > { %2132 = vmatprep.subr.bf16.mxu0 %v6941_v52  ;;  %v7006_v52 = vld [vmem:[#allocation2 + $0x248] ss:$48 sps:$4 sm:$0xff]  }
 0x32f   : > { %2133 = vmatpush1.bf16.msra.mxu0 %v6939_v53  ;;  %v7011_v53 = vld [vmem:[#allocation2 + $0x2ac] ss:$48 sps:$4 sm:$0xff]  }
 0x330   : > { %2134 = vmatprep.subr.bf16.mxu0 %v6944_v54  ;;  %v7009_v54 = vld [vmem:[#allocation2 + $0x2a8] ss:$48 sps:$4 sm:$0xff]  }
 0x333   : > { %2135 = vmatpush1.bf16.msra.mxu0 %v6942_v55  ;;  %v7014_v55 = vld [vmem:[#allocation2 + $0x1c] ss:$48 sps:$4 sm:$0xff]  }
 0x334   : > { %2136 = vmatprep.subr.bf16.mxu0 %v6947_v56 }
 0x337   : > { %2137 = vmatpush1.bf16.msra.mxu0 %v6945_v57 }
 0x338   : > { %2204 = vmatprep.subr.bf16.mxu0 %v6950_v59 }
 0x33a   : > { %2155 = vmatmul.mubr.bf16.vlgmr.msra.gmra.mrb[8].mxu0 %v8557_v60 }
 0x33b   : > { %2205 = vmatpush1.bf16.msra.mxu0 %v6948_v61  ;;  %2236 = vmatprep.mubr.bf16.mxu0 %v7925_v20  ;;  %v7017_v61 = vld [vmem:[#allocation2 + $0x7c] ss:$48 sps:$4 sm:$0xff]  }
 0x33c   : > { %2206 = vmatprep.subr.bf16.mxu0 %v6953_v62 }
 0x33f   : > { %2207 = vmatpush1.bf16.msra.mxu0 %v6951_v63  ;;  %v7015_v63 = vld [vmem:[#allocation2 + $0x78] ss:$48 sps:$4 sm:$0xff]  }
 0x340   : > { %2208 = vmatprep.subr.bf16.mxu0 %v6956_v0  ;;  %v7020_v0 = vld [vmem:[#allocation2 + $0xdc] ss:$48 sps:$4 sm:$0xff]  }
 0x343   : > { %2209 = vmatpush1.bf16.msra.mxu0 %v6954_v1  ;;  %v7018_v1 = vld [vmem:[#allocation2 + $0xd8] ss:$48 sps:$4 sm:$0xff]  }
 0x344   : > { %2210 = vmatprep.subr.bf16.mxu0 %v6959_v3  ;;  %v7023_v3 = vld [vmem:[#allocation2 + $0x13c] ss:$48 sps:$4 sm:$0xff]  }
 0x347   : > { %2211 = vmatpush1.bf16.msra.mxu0 %v6957_v4  ;;  %v7021_v4 = vld [vmem:[#allocation2 + $0x138] ss:$48 sps:$4 sm:$0xff]  }
 0x348   : > { %2212 = vmatprep.subr.bf16.mxu0 %v6962_v5  ;;  %v7026_v5 = vld [vmem:[#allocation2 + $0x19c] ss:$48 sps:$4 sm:$0xff]  }
 0x34b   : > { %2213 = vmatpush1.bf16.msra.mxu0 %v6960_v6  ;;  %v7024_v6 = vld [vmem:[#allocation2 + $0x198] ss:$48 sps:$4 sm:$0xff]  }
 0x34c   : > { %2214 = vmatprep.subr.bf16.mxu0 %v6965_v8  ;;  %v7029_v8 = vld [vmem:[#allocation2 + $0x1fc] ss:$48 sps:$4 sm:$0xff]  }
 0x34f   : > { %2215 = vmatpush1.bf16.msra.mxu0 %v6963_v9  ;;  %v7027_v9 = vld [vmem:[#allocation2 + $0x1f8] ss:$48 sps:$4 sm:$0xff]  }
 0x350   : > { %2216 = vmatprep.subr.bf16.mxu0 %v6968_v10  ;;  %v7032_v10 = vld [vmem:[#allocation2 + $0x25c] ss:$48 sps:$4 sm:$0xff]  }
 0x353   : > { %2217 = vmatpush1.bf16.msra.mxu0 %v6966_v13  ;;  %v7035_v13 = vld [vmem:[#allocation2 + $0x2bc] ss:$48 sps:$4 sm:$0xff]  }
 0x354   : > { %2218 = vmatprep.subr.bf16.mxu0 %v6971_v14  ;;  %v7033_v14 = vld [vmem:[#allocation2 + $0x2b8] ss:$48 sps:$4 sm:$0xff]  }
 0x357   : > { %2219 = vmatpush1.bf16.msra.mxu0 %v6969_v15  ;;  %v7038_v15 = vld [vmem:[#allocation2 + $0x2c] ss:$48 sps:$4 sm:$0xff]  }
 0x35a   : > { %2237 = vmatmul.mubr.bf16.vlgmr.msra.gmra.mrb[12].mxu0 %v8557_v60 }
 0x35b   : > { %2318 = vmatprep.mubr.bf16.mxu0 %v7925_v20 }
 0x3cd   : > { %v1151_v17 = vpop.f32.mrb[0].mxu0 }
 0x3ce   : > { %v1152_v18 = vadd.f32 %v1151_v17, %v1068_v16  ;;  %v6450_v19 = vpop.f32.mrb[1].mxu0 }
 0x3cf   : > { %v1154_v21 = vpop.f32.mrb[2].mxu0 }
 0x3d0   : > { %v1173_v23 = vpack.c.bf16 %v1152_v18, %v1152_v18  ;;  %v6451_v24 = vpop.f32.mrb[3].mxu0  ;;  %v7036_v18 = vld [vmem:[#allocation2 + $0x28] ss:$48 sps:$4 sm:$0xff]   ;;  %v7041_v21 = vld [vmem:[#allocation2 + $0x8c] ss:$48 sps:$4 sm:$0xff]  }
 0x3d1   : > { %v7044_v24 = vld [vmem:[#allocation2 + $0xec] ss:$48 sps:$4 sm:$0xff]  }
 0x3d2   : > { %6469 = vmatmul.mubr.bf16.vlgmr.msra.gmra.mrb[0].mxu1 %v1173_v23  ;;  %v7039_v23 = vld [vmem:[#allocation2 + $0x88] ss:$48 sps:$4 sm:$0xff]  }
 0x3d3   : > { %6493 = vmatpush3.bf16.msra.mxu1 %v6980_v22  ;;  %6508 = vmatprep.mubr.msk.bf16.mxu1 %vm7924_vm2, %v7923_v2 }
 0x3d4   : > { %6494 = vmatprep.subr.bf16.mxu1 %v7923_v2 }
 0x3d7   : > { %6495 = vmatpush3.bf16.msra.mxu1 %v6981_v25  ;;  %v7042_v25 = vld [vmem:[#allocation2 + $0xe8] ss:$48 sps:$4 sm:$0xff]  }
 0x3d8   : > { %6496 = vmatprep.subr.bf16.mxu1 %v7923_v2 }
 0x3db   : > { %6497 = vmatpush3.bf16.msra.mxu1 %v6982_v26  ;;  %v7047_v26 = vld [vmem:[#allocation2 + $0x14c] ss:$48 sps:$4 sm:$0xff]  }
 0x3dc   : > { %6498 = vmatprep.subr.bf16.mxu1 %v7923_v2 }
 0x3df   : > { %6499 = vmatpush3.bf16.msra.mxu1 %v6983_v27  ;;  %v7045_v27 = vld [vmem:[#allocation2 + $0x148] ss:$48 sps:$4 sm:$0xff]  }
 0x3e0   : > { %6500 = vmatprep.subr.bf16.mxu1 %v7923_v2 }
 0x3e3   : > { %6501 = vmatpush3.bf16.msra.mxu1 %v6984_v28  ;;  %v7050_v28 = vld [vmem:[#allocation2 + $0x1ac] ss:$48 sps:$4 sm:$0xff]  }
 0x3e4   : > { %6502 = vmatprep.subr.bf16.mxu1 %v7923_v2 }
 0x3e7   : > { %6503 = vmatpush3.bf16.msra.mxu1 %v6985_v29  ;;  %v7048_v29 = vld [vmem:[#allocation2 + $0x1a8] ss:$48 sps:$4 sm:$0xff]  }
 0x3e8   : > { %6504 = vmatprep.subr.bf16.mxu1 %v7923_v2 }
 0x3eb   : > { %6505 = vmatpush3.bf16.msra.mxu1 %v6986_v30  ;;  %v7053_v30 = vld [vmem:[#allocation2 + $0x20c] ss:$48 sps:$4 sm:$0xff]  }
 0x3ec   : > { %6506 = vmatprep.subr.bf16.mxu1 %v7923_v2 }
 0x3ed   : > { %v1364_v34 = vpop.f32.mrb[4].mxu0 }
 0x3ee   : > { %v1365_v35 = vadd.f32 %v5879_v31, %v1364_v34  ;;  %v6490_v36 = vpop.f32.mrb[5].mxu0  ;;  %v7051_v31 = vld [vmem:[#allocation2 + $0x208] ss:$48 sps:$4 sm:$0xff]  }
 0x3ef   : > { %v1367_v37 = vpop.f32.mrb[6].mxu0  ;;  %6507 = vmatpush3.bf16.msra.mxu1 %v6987_v32  ;;  %v7056_v32 = vld [vmem:[#allocation2 + $0x26c] ss:$48 sps:$4 sm:$0xff]   ;;  %v7054_v34 = vld [vmem:[#allocation2 + $0x268] ss:$48 sps:$4 sm:$0xff]  }
 0x3f0   : > { %v1387_v39 = vpack.c.bf16 %v1365_v35, %v1365_v35  ;;  %v6491_v40 = vpop.f32.mrb[7].mxu0  ;;  %2163 = vmatprep.subr.bf16.mxu1 %v6990_v33  ;;  %v8591_v33 = vshrl.u32 %v1030_v7, 7  ;;  %v7059_v35 = vld [vmem:[#allocation2 + $0x2cc] ss:$48 sps:$4 sm:$0xff]   ;;  %v7060_v37 = vld [vmem:[#allocation2 + $0x20] ss:$48 sps:$4 sm:$0xff]  }
 0x3f1   : > { %v7057_v40 = vld [vmem:[#allocation2 + $0x2c8] ss:$48 sps:$4 sm:$0xff]  }
 0x3f2   : > { %6509 = vmatmul.mubr.bf16.vlgmr.msra.gmra.mrb[4].mxu1 %v1387_v39  ;;  %v1600_v36 = vsub.s32 4, %v8591_v33  ;;  %v8597_v39 = vld [vmem:[%s9098_s27] sm:$0xff] }
 0x3f3   : > { %2164 = vmatpush1.bf16.msra.mxu1 %v6988_v38  ;;  %2195 = vmatprep.mubr.bf16.mxu1 %v7925_v20  ;;  %v7062_v38 = vld [vmem:[#allocation2 + $0x24] ss:$48 sps:$4 sm:$0xff]  }
 0x3f4   : > { %2165 = vmatprep.subr.bf16.mxu1 %v6993_v41  ;;  %2286 = vmatprep.subr.bf16.mxu0 %v7062_v38  ;;  %v1601_v7 = vrot.slane %v8597_v39, %v1600_v36 }
 0x3f5   : > { %2287 = vmatpush1.bf16.msra.mxu0 %v7060_v37 }
 0x3f7   : > { %2166 = vmatpush1.bf16.msra.mxu1 %v6991_v42  ;;  %v8604_v42 = vsub.s32 0, %v8591_v33 }
 0x3f8   : > { %2167 = vmatprep.subr.bf16.mxu1 %v6996_v43 }
 0x3fb   : > { %2168 = vmatpush1.bf16.msra.mxu1 %v6994_v44  ;;  %v1585_v44 = vrot.slane %v8597_v39, %v8604_v42 }
 0x3fc   : > { %2169 = vmatprep.subr.bf16.mxu1 %v6999_v45 }
 0x3ff   : > { %2170 = vmatpush1.bf16.msra.mxu1 %v6997_v46 }
 0x400   : > { %2171 = vmatprep.subr.bf16.mxu1 %v7002_v47  ;;  %v7065_v47 = vld [vmem:[#allocation2 + $0x84] ss:$48 sps:$4 sm:$0xff]  }
 0x401   : > { %2288 = vmatprep.subr.bf16.mxu0 %v7065_v47 }
 0x403   : > { %2172 = vmatpush1.bf16.msra.mxu1 %v7000_v48  ;;  %v7063_v48 = vld [vmem:[#allocation2 + $0x80] ss:$48 sps:$4 sm:$0xff]  }
 0x404   : > { %2173 = vmatprep.subr.bf16.mxu1 %v7005_v49  ;;  %2289 = vmatpush1.bf16.msra.mxu0 %v7063_v48  ;;  %v7066_v49 = vld [vmem:[#allocation2 + $0xe0] ss:$48 sps:$4 sm:$0xff]  }
 0x407   : > { %2174 = vmatpush1.bf16.msra.mxu1 %v7003_v50  ;;  %v7068_v50 = vld [vmem:[#allocation2 + $0xe4] ss:$48 sps:$4 sm:$0xff]  }
 0x408   : > { %2175 = vmatprep.subr.bf16.mxu1 %v7008_v51  ;;  %v7071_v51 = vld [vmem:[#allocation2 + $0x144] ss:$48 sps:$4 sm:$0xff]   ;;  %2290 = vmatprep.subr.bf16.mxu0 %v7068_v50  ;;  %v8662_v50 = vld [vmem:[%s9099_s11 + $0x8] sm:$0xf] }
 0x409   : > { %2291 = vmatpush1.bf16.msra.mxu0 %v7066_v49 }
 0x40a   : > { %2292 = vmatprep.subr.bf16.mxu0 %v7071_v51  ;;  %v1617_v51 = vrot.slane %v8662_v50, %v8604_v42 }
 0x40b   : > { %2176 = vmatpush1.bf16.msra.mxu1 %v7006_v52  ;;  %v7069_v52 = vld [vmem:[#allocation2 + $0x140] ss:$48 sps:$4 sm:$0xff]  }
 0x40c   : > { %2177 = vmatprep.subr.bf16.mxu1 %v7011_v53  ;;  %v7074_v53 = vld [vmem:[#allocation2 + $0x1a4] ss:$48 sps:$4 sm:$0xff]  }
 0x40d   : > { %v8580_v56 = vpop.f32.mrb[8].mxu0  ;;  %2293 = vmatpush1.bf16.msra.mxu0 %v7069_v52 }
 0x40e   : > { %v8582_v57 = vpop.f32.mrb[9].mxu0  ;;  %v2157_v45 = vadd.f32 %v8580_v56, %v1585_v44  ;;  %2294 = vmatprep.subr.bf16.mxu0 %v7074_v53  ;;  %v7075_v56 = vld [vmem:[#allocation2 + $0x200] ss:$48 sps:$4 sm:$0xff]  }
 0x40f   : > { %2178 = vmatpush1.bf16.msra.mxu1 %v7009_v54  ;;  %v2160_v59 = vpop.f32.mrb[10].mxu0  ;;  %v7072_v54 = vld [vmem:[#allocation2 + $0x1a0] ss:$48 sps:$4 sm:$0xff]  }
 0x410   : > { %2245 = vmatprep.subr.bf16.mxu1 %v7014_v55  ;;  %v2161_v62 = vpop.f32.mrb[11].mxu0  ;;  %v2368_v46 = vpack.c.bf16 %v2157_v45, %v2157_v45  ;;  %v7077_v55 = vld [vmem:[#allocation2 + $0x204] ss:$48 sps:$4 sm:$0xff]   ;;  %v7078_v59 = vld [vmem:[#allocation2 + $0x260] ss:$48 sps:$4 sm:$0xff]  }
 0x411   : > { %2295 = vmatpush1.bf16.msra.mxu0 %v7072_v54  ;;  %v7081_v62 = vld [vmem:[#allocation2 + $0x2c0] ss:$48 sps:$4 sm:$0xff]  }
 0x412   : > { %2196 = vmatmul.mubr.bf16.vlgmr.msra.gmra.mrb[8].mxu1 %v8557_v60  ;;  %2296 = vmatprep.subr.bf16.mxu0 %v7077_v55 }
 0x413   : > { %2246 = vmatpush1.bf16.msra.mxu1 %v7012_v58  ;;  %2277 = vmatprep.mubr.bf16.mxu1 %v7925_v20  ;;  %v7080_v58 = vld [vmem:[#allocation2 + $0x264] ss:$48 sps:$4 sm:$0xff]  }
 0x414   : > { %2247 = vmatprep.subr.bf16.mxu1 %v7017_v61  ;;  %v7083_v61 = vld [vmem:[#allocation2 + $0x2c4] ss:$48 sps:$4 sm:$0xff]  }
 0x415   : > { %2297 = vmatpush1.bf16.msra.mxu0 %v7075_v56 }
 0x416   : > { %2298 = vmatprep.subr.bf16.mxu0 %v7080_v58 }
 0x417   : > { %2248 = vmatpush1.bf16.msra.mxu1 %v7015_v63 }
 0x418   : > { %2249 = vmatprep.subr.bf16.mxu1 %v7020_v0 }
 0x419   : > { %2299 = vmatpush1.bf16.msra.mxu0 %v7078_v59 }
 0x41a   : > { %2300 = vmatprep.subr.bf16.mxu0 %v7083_v61 }
 0x41b   : > { %2250 = vmatpush1.bf16.msra.mxu1 %v7018_v1 }
 0x41c   : > { %2251 = vmatprep.subr.bf16.mxu1 %v7023_v3 }
 0x41d   : > { %2301 = vmatpush1.bf16.msra.mxu0 %v7081_v62 }
 0x41e   : > { %6536 = vmatprep.subr.bf16.mxu0 %v7923_v2 }
 0x41f   : > { %2252 = vmatpush1.bf16.msra.mxu1 %v7021_v4 }
 0x420   : > { %2253 = vmatprep.subr.bf16.mxu1 %v7026_v5  ;;  %2319 = vmatmul.mubr.bf16.vlgmr.msra.gmra.mrb[16].mxu0 %v8557_v60 }
 0x421   : > { %6538 = vmatprep.mubr.msk.bf16.mxu0 %vm7924_vm2, %v7923_v2 }
 0x423   : > { %2254 = vmatpush1.bf16.msra.mxu1 %v7024_v6 }
 0x424   : > { %2255 = vmatprep.subr.bf16.mxu1 %v7029_v8 }
 0x427   : > { %2256 = vmatpush1.bf16.msra.mxu1 %v7027_v9 }
 0x428   : > { %2257 = vmatprep.subr.bf16.mxu1 %v7032_v10 }
 0x42b   : > { %2258 = vmatpush1.bf16.msra.mxu1 %v7030_v12 }
 0x42c   : > { %2259 = vmatprep.subr.bf16.mxu1 %v7035_v13 }
 0x42d   : > { %v2238_v16 = vpop.f32.mrb[12].mxu0 }
 0x42e   : > { %v8586_v17 = vpop.f32.mrb[13].mxu0  ;;  %v2239_v41 = vadd.f32 %v2238_v16, %v1601_v7  ;;  %v1612_v16 = vsub.s32 7, %v8591_v33 }
 0x42f   : > { %2260 = vmatpush1.bf16.msra.mxu1 %v7033_v14  ;;  %v2242_v19 = vpop.f32.mrb[14].mxu0  ;;  %v1608_v14 = vsub.s32 6, %v8591_v33 }
 0x430   : > { %2327 = vmatprep.subr.bf16.mxu1 %v7038_v15  ;;  %v2243_v22 = vpop.f32.mrb[15].mxu0  ;;  %v2369_v43 = vpack.c.bf16 %v2239_v41, %v2239_v41  ;;  %v8628_v15 = vsub.s32 2, %v8591_v33  ;;  %v8655_v41 = vld [vmem:[%s8652_s0] ss:$0 sm:$0xff] }
 0x432   : > { %2278 = vmatmul.mubr.bf16.vlgmr.msra.gmra.mrb[12].mxu1 %v8557_v60  ;;  %v1593_v22 = vrot.slane %v8597_v39, %v8628_v15 }
 0x433   : > { %2328 = vmatpush1.bf16.msra.mxu1 %v7036_v18  ;;  %2359 = vmatprep.mubr.bf16.mxu1 %v7925_v20 }
 0x434   : > { %2329 = vmatprep.subr.bf16.mxu1 %v7041_v21 }
 0x437   : > { %2330 = vmatpush1.bf16.msra.mxu1 %v7039_v23 }
 0x438   : > { %2331 = vmatprep.subr.bf16.mxu1 %v7044_v24 }
 0x43b   : > { %2332 = vmatpush1.bf16.msra.mxu1 %v7042_v25  ;;  %v1613_v25 = vrot.slane %v8597_v39, %v1612_v16 }
 0x43c   : > { %2333 = vmatprep.subr.bf16.mxu1 %v7047_v26 }
 0x43f   : > { %2334 = vmatpush1.bf16.msra.mxu1 %v7045_v27 }
 0x440   : > { %2335 = vmatprep.subr.bf16.mxu1 %v7050_v28  ;;  %v8637_v28 = vsub.s32 3, %v8591_v33 }
 0x443   : > { %2336 = vmatpush1.bf16.msra.mxu1 %v7048_v29 }
 0x444   : > { %2337 = vmatprep.subr.bf16.mxu1 %v7053_v30 }
 0x447   : > { %2338 = vmatpush1.bf16.msra.mxu1 %v7051_v31  ;;  %v1597_v31 = vrot.slane %v8597_v39, %v8637_v28 }
 0x448   : > { %2339 = vmatprep.subr.bf16.mxu1 %v7056_v32 }
 0x44b   : > { %2340 = vmatpush1.bf16.msra.mxu1 %v7054_v34 }
 0x44c   : > { %2341 = vmatprep.subr.bf16.mxu1 %v7059_v35 }
 0x44f   : > { %2342 = vmatpush1.bf16.msra.mxu1 %v7057_v40 }
 0x450   : > { %6512 = vmatprep.subr.bf16.mxu1 %v7923_v2 }
 0x452   : > { %2360 = vmatmul.mubr.bf16.vlgmr.msra.gmra.mrb[16].mxu1 %v8557_v60  ;;  %v1609_v60 = vrot.slane %v8597_v39, %v1608_v14 }
 0x453   : > { %6514 = vmatprep.mubr.msk.bf16.mxu1 %vm7924_vm2, %v7923_v2 }
 0x458   : > { %6513 = vmatpush3.bf16.xpose.msra.mxu1 %v2369_v43 }
 0x459   : > { %6518 = vmatprep.subr.bf16.mxu1 %v7923_v2 }
 0x45f   : > { %6515 = vmatmul.mubr.bf16.vlgmr.msra.gmra.mrb[20].mxu1 %v2368_v46 }
 0x460   : > { %6520 = vmatprep.mubr.msk.bf16.mxu1 %vm7924_vm2, %v7923_v2 }
 0x4a5   : > { %v8619_v63 = vpop.f32.mrb[0].mxu1 }
 0x4a6   : > { %v6470_v0 = vpop.f32.mrb[1].mxu1 }
 0x4a7   : > { %v1260_v1 = vpop.f32.mrb[2].mxu1 }
 0x4a8   : > { %v6471_v3 = vpop.f32.mrb[3].mxu1 }
 0x4c5   : > { %v8621_v4 = vpop.f32.mrb[4].mxu1 }
 0x4c6   : > { %v6510_v5 = vpop.f32.mrb[5].mxu1 }
 0x4c7   : > { %v1475_v6 = vpop.f32.mrb[6].mxu1 }
 0x4c8   : > { %v6511_v8 = vpop.f32.mrb[7].mxu1 }
 0x4e5   : > { %v2197_v9 = vpop.f32.mrb[8].mxu1 }
 0x4e6   : > { %v2199_v10 = vpop.f32.mrb[9].mxu1  ;;  %v2198_v27 = vadd.f32 %v2197_v9, %v1593_v22 }
 0x4e7   : > { %v2201_v12 = vpop.f32.mrb[10].mxu1  ;;  %v2200_v34 = vadd.f32 %v2199_v10, %v1597_v31 }
 0x4e8   : > { %v2202_v13 = vpop.f32.mrb[11].mxu1  ;;  %v2582_v30 = vpack.c.bf16 %v2198_v27, %v2198_v27 }
 0x4e9   : > { %v2685_v35 = vpack.c.bf16 %v2200_v34, %v2200_v34 }
 0x4f3   : > { %v2320_v52 = vpop.f32.mrb[16].mxu0 }
 0x4f4   : > { %v2321_v53 = vadd.f32 %v2320_v52, %v1617_v51  ;;  %v2322_v54 = vpop.f32.mrb[17].mxu0 }
 0x4f5   : > { %v2324_v55 = vpop.f32.mrb[18].mxu0 }
 0x4f6   : > { %v2431_v56 = vpack.c.bf16 %v2321_v53, %v2321_v53  ;;  %v2325_v58 = vpop.f32.mrb[19].mxu0 }
 0x4f8   : > { %v2437_v59 = vsel %vm2435_vm4, %v2431_v56, 0 }
 0x4f9   : > { %6519 = vmatpush3.bf16.msra.mxu1 %v2437_v59 }
 0x4fa   : > { %6524 = vmatprep.subr.bf16.mxu1 %v7923_v2 }
 0x505   : > { %v2279_v18 = vpop.f32.mrb[12].mxu1 }
 0x506   : > { %v2280_v19 = vadd.f32 %v2279_v18, %v1609_v60  ;;  %v2281_v21 = vpop.f32.mrb[13].mxu1 }
 0x507   : > { %v2283_v23 = vpop.f32.mrb[14].mxu1  ;;  %v2282_v29 = vadd.f32 %v2281_v21, %v1613_v25  ;;  %v8676_v25 = vsub.s32 1, %v8591_v33 }
 0x508   : > { %v2583_v24 = vpack.c.bf16 %v2280_v19, %v2280_v19  ;;  %v2284_v26 = vpop.f32.mrb[15].mxu1  ;;  %v1604_v23 = vsub.s32 5, %v8591_v33 }
 0x509   : > { %v2686_v32 = vpack.c.bf16 %v2282_v29, %v2282_v29  ;;  %v1621_v29 = vrot.slane %v8662_v50, %v8676_v25  ;;  %v1589_v31 = vrot.slane %v8597_v39, %v8676_v25 }
 0x50a   : > { %6537 = vmatpush3.bf16.xpose.msra.mxu0 %v2583_v24  ;;  %v1605_v24 = vrot.slane %v8597_v39, %v1604_v23 }
 0x50b   : > { %6548 = vmatprep.subr.bf16.mxu0 %v7923_v2 }
 0x50c   : > { %v2241_v27 = vadd.f32 %v8586_v17, %v1605_v24  ;;  %v7089_v24 = vld [vmem:[#allocation5 + $0x10] sm:$0xff]  }
 0x50e   : > { %v2480_v34 = vpack.c.bf16 %v2241_v27, %v2241_v27  ;;  %v7091_v27 = vld [vmem:[#allocation5 + $0x18] sm:$0xff]  }
 0x511   : > { %6539 = vmatmul.mubr.bf16.vlgmr.msra.gmra.mrb[20].mxu0 %v2582_v30 }
 0x512   : > { %6549 = vmatpush3.bf16.xpose.msra.mxu0 %v2686_v32  ;;  %6550 = vmatprep.mubr.msk.bf16.mxu0 %vm7924_vm2, %v7923_v2 }
 0x519   : > { %6551 = vmatmul.mubr.bf16.vlgmr.msra.gmra.mrb[24].mxu0 %v2685_v35  ;;  %v2323_v35 = vadd.f32 %v2322_v54, %v1621_v29  ;;  %v7092_v29 = vld [vmem:[#allocation5 + $0x60] sm:$0xff]  }
 0x51b   : > { %v2535_v17 = vpack.c.bf16 %v2323_v35, %v2323_v35  ;;  %v7102_v35 = vld [vmem:[#allocation5 + $0x30] sm:$0xff]  }
 0x525   : > { %v8644_v37 = vpop.f32.mrb[16].mxu1 }
 0x526   : > { %v8646_v38 = vpop.f32.mrb[17].mxu1 }
 0x527   : > { %v2365_v40 = vpop.f32.mrb[18].mxu1 }
 0x528   : > { %v2366_v7 = vpop.f32.mrb[19].mxu1  ;;  %v2159_v40 = vadd.f32 %v8582_v57, %v1589_v31  ;;  %v7096_v31 = vld [vmem:[#allocation5 + $0x68] sm:$0xff]  }
 0x52a   : > { %v2479_v7 = vpack.c.bf16 %v2159_v40, %v2159_v40 }
 0x532   : > { %v2404_v43 = vpop.f32.mrb[20].mxu1 }
 0x533   : > { %v2410_v44 = vmul.f32 0.35355338, %v2404_v43  ;;  %v6516_v45 = vpop.f32.mrb[21].mxu1  ;;  %v2540_v43 = vsel %vm2435_vm4, %v2535_v17, 0 }
 0x534   : > { %v2407_v46 = vpop.f32.mrb[22].mxu1 }
 0x535   : > { %v6517_v47 = vpop.f32.mrb[23].mxu1  ;;  %v2417_v48 = vadd.f32 %v8655_v41, %v2410_v44 }
 0x537   : > { %v2419_v49 = vsel %vm2418_vm3, %v2417_v48, -inf }
 0x538   : > { %2420 = vmax.xlane.f32.xlu1 %v2419_v49 }
 0x5c5   : > { %v2421_v61 = vpop.xlane.xlu1 %2420 }
 0x5c6   : > { %v2422_v62 = vsub.f32 %v2417_v48, %v2421_v61 }
 0x5c8   : > { %v2423_v0 = vmul.f32 1.442695, %v2422_v62 }
 0x5ca   : > { %7334 = vpow2.f32 %v2423_v0 }
 0x5d4   : > { %v7335_v1 = vpop.eup %7334 }
 0x5d5   : > { %v2425_v3 = vsel %vm2418_vm3, %v7335_v1, 0.0 }
 0x5d6   : > { %2426 = vadd.xlane.f32.xlu1 %v2425_v3 }
 0x5e4   : > { %v2618_v5 = vpop.f32.mrb[20].mxu0 }
 0x5e5   : > { %v2624_v6 = vmul.f32 0.35355338, %v2618_v5  ;;  %v6540_v8 = vpop.f32.mrb[21].mxu0 }
 0x5e6   : > { %v2621_v9 = vpop.f32.mrb[22].mxu0 }
 0x5e7   : > { %v6541_v10 = vpop.f32.mrb[23].mxu0  ;;  %v2625_v12 = vadd.f32 %v8655_v41, %v2624_v6 }
 0x5e9   : > { %v2626_v13 = vsel %vm2418_vm3, %v2625_v12, -inf }
 0x5ea   : > { %2627 = vmax.xlane.f32.xlu1 %v2626_v13 }
 0x5ec   : > { %v2721_v60 = vpop.f32.mrb[24].mxu0 }
 0x5ed   : > { %v6552_v18 = vpop.f32.mrb[25].mxu0  ;;  %v2727_v51 = vmul.f32 0.35355338, %v2721_v60  ;;  %v7084_v60 = vld [vmem:[#allocation5 + $0x40] sm:$0xff]  }
 0x5ee   : > { %v2724_v19 = vpop.f32.mrb[26].mxu0  ;;  %v7085_v18 = vld [vmem:[#allocation5] sm:$0xff]   ;;  %6283 = vmatprep.subr.bf16.mxu0 %v7084_v60  ;;  %v7113_v60 = vld [vmem:[#allocation5 + $0xb0] sm:$0xff]  }
 0x5ef   : > { %v6553_v21 = vpop.f32.mrb[27].mxu0  ;;  %v2728_v59 = vadd.f32 %v8655_v41, %v2727_v51  ;;  %v7086_v19 = vld [vmem:[#allocation5 + $0x48] sm:$0xff]   ;;  %6284 = vmatpush3.bf16.msra.mxu0 %v7085_v18  ;;  %v7114_v18 = vld [vmem:[#allocation5 + $0xf8] sm:$0xff]  }
 0x5f0   : > { %v7087_v21 = vld [vmem:[#allocation5 + $0x8] sm:$0xff]   ;;  %6285 = vmatprep.subr.bf16.mxu0 %v7086_v19  ;;  %v7115_v19 = vld [vmem:[#allocation5 + $0xb8] sm:$0xff]  }
 0x5f1   : > { %v2729_v61 = vsel %vm2418_vm3, %v2728_v59, -inf }
 0x5f3   : > { %6286 = vmatpush3.bf16.msra.mxu0 %v7087_v21 }
 0x663   : > { %v2427_v22 = vpop.xlane.xlu1 %2426 }
 0x664   : > { %7336 = vrcp.f32 %v2427_v22  ;;  %v7088_v22 = vld [vmem:[#allocation5 + $0x50] sm:$0xff]  }
 0x665   : > { %6287 = vmatprep.subr.bf16.mxu0 %v7088_v22 }
 0x666   : > { %6288 = vmatpush3.bf16.msra.mxu0 %v7089_v24 }
 0x66e   : > { %v7337_v26 = vpop.eup %7336 }
 0x66f   : > { %v2429_v30 = vmul.f32 %v7337_v26, %v7335_v1  ;;  %v7090_v26 = vld [vmem:[#allocation5 + $0x58] sm:$0xff]  }
 0x670   : > { %6289 = vmatprep.subr.bf16.mxu0 %v7090_v26 }
 0x671   : > { %v2430_v32 = vpack.c.bf16 %v2429_v30, %v2429_v30  ;;  %6290 = vmatpush3.bf16.msra.mxu0 %v7091_v27  ;;  %v7094_v30 = vld [vmem:[#allocation5 + $0x20] sm:$0xff]  }
 0x672   : > { %6291 = vmatprep.subr.bf16.mxu0 %v7092_v29 }
 0x673   : > { %6521 = vmatmul.mubr.msk.bf16.vlgmr.msra.gmra.mrb[24].mxu1 %vm2418_vm3, %v2430_v32  ;;  %v7098_v32 = vld [vmem:[#allocation5 + $0x28] sm:$0xff]  }
 0x674   : > { %6525 = vmatpush3.bf16.xpose.msra.mxu1 %v2480_v34  ;;  %6526 = vmatprep.mubr.msk.bf16.mxu1 %vm7924_vm2, %v7923_v2  ;;  %v7100_v34 = vld [vmem:[#allocation5 + $0x70] sm:$0xff]  }
 0x675   : > { %6530 = vmatprep.subr.bf16.mxu1 %v7923_v2  ;;  %6292 = vmatpush3.bf16.msra.mxu0 %v7094_v30 }
 0x676   : > { %6293 = vmatprep.subr.bf16.mxu0 %v7096_v31 }
 0x677   : > { %v2628_v39 = vpop.xlane.xlu1 %2627 }
 0x678   : > { %v2629_v44 = vsub.f32 %v2625_v12, %v2628_v39 }
 0x679   : > { %6294 = vmatpush3.bf16.msra.mxu0 %v7098_v32 }
 0x67a   : > { %v2630_v48 = vmul.f32 1.442695, %v2629_v44  ;;  %6295 = vmatprep.subr.bf16.mxu0 %v7100_v34 }
 0x67b   : > { %6527 = vmatmul.mubr.bf16.vlgmr.msra.gmra.mrb[28].mxu1 %v2479_v7  ;;  %v1625_v7 = vrot.slane %v8662_v50, %v8628_v15 }
 0x67c   : > { %6531 = vmatpush3.bf16.msra.mxu1 %v2540_v43  ;;  %6532 = vmatprep.mubr.msk.bf16.mxu1 %vm7924_vm2, %v7923_v2  ;;  %7338 = vpow2.f32 %v2630_v48 }
 0x67d   : > { %6542 = vmatprep.subr.bf16.mxu1 %v7923_v2  ;;  %6296 = vmatpush3.bf16.msra.mxu0 %v7102_v35  ;;  %v2362_v43 = vadd.f32 %v8644_v37, %v1625_v7 }
 0x686   : > { %v8698_v62 = vpop.eup %7338 }
 0x687   : > { %v2632_v0 = vsel %vm2418_vm3, %v8698_v62, 0.0 }
 0x746   : > { %v8692_v45 = vpop.f32.mrb[24].mxu1 }
 0x747   : > { %v6522_v46 = vpop.f32.mrb[25].mxu1  ;;  %v2852_v26 = vpack.c.bf16 %v8692_v45, %v8692_v45 }
 0x748   : > { %v2476_v47 = vpop.f32.mrb[26].mxu1  ;;  %v2638_v46 = vpack.c.bf16 %v2362_v43, %v2362_v43 }
 0x749   : > { %v6523_v57 = vpop.f32.mrb[27].mxu1  ;;  %v1629_v47 = vrot.slane %v8662_v50, %v8637_v28 }
 0x74a   : > { %v2643_v51 = vsel %vm2435_vm4, %v2638_v46, 0 }
 0x74e   : > { %v2515_v49 = vpop.f32.mrb[28].mxu1 }
 0x74f   : > { %v2521_v52 = vmul.f32 0.35355338, %v2515_v49  ;;  %v6528_v53 = vpop.f32.mrb[29].mxu1 }
 0x750   : > { %v2518_v54 = vpop.f32.mrb[30].mxu1 }
 0x751   : > { %v6529_v55 = vpop.f32.mrb[31].mxu1  ;;  %v2522_v56 = vadd.f32 %v8655_v41, %v2521_v52  ;;  %v2364_v52 = vadd.f32 %v8646_v38, %v1629_v47  ;;  %v7093_v54 = vld [vmem:[#allocation5 + $0xc0] sm:$0xff]  }
 0x753   : > { %v2523_v58 = vsel %vm2418_vm3, %v2522_v56, -inf  ;;  %v2741_v53 = vpack.c.bf16 %v2364_v52, %v2364_v52 }
 0x754   : > { %2524 = vmax.xlane.f32.xlu0 %v2523_v58  ;;  %v7095_v58 = vld [vmem:[#allocation5 + $0x80] sm:$0xff]  }
 0x758   : > { %2730 = vmax.xlane.f32.xlu0 %v2729_v61  ;;  %v7097_v61 = vld [vmem:[#allocation5 + $0xc8] sm:$0xff]  }
 0x75c   : > { %2633 = vadd.xlane.f32.xlu0 %v2632_v0  ;;  %v7101_v0 = vld [vmem:[#allocation5 + $0xd0] sm:$0xff]  }
 0x7e1   : > { %v2525_v1 = vpop.xlane.xlu0 %2524 }
 0x7e2   : > { %v2526_v3 = vsub.f32 %v2522_v56, %v2525_v1  ;;  %v2746_v56 = vsel %vm2435_vm4, %v2741_v53, 0  ;;  %v7103_v1 = vld [vmem:[#allocation5 + $0x90] sm:$0xff]  }
 0x7e4   : > { %v2527_v5 = vmul.f32 1.442695, %v2526_v3  ;;  %v7104_v3 = vld [vmem:[#allocation5 + $0x78] sm:$0xff]  }
 0x7e5   : > { %v2731_v6 = vpop.xlane.xlu0 %2730  ;;  %6297 = vmatprep.subr.bf16.mxu0 %v7104_v3 }
 0x7e6   : > { %7340 = vpow2.f32 %v2527_v5  ;;  %v2732_v8 = vsub.f32 %v2728_v59, %v2731_v6  ;;  %v7105_v5 = vld [vmem:[#allocation5 + $0xd8] sm:$0xff]  }
 0x7e7   : > { %v7106_v6 = vld [vmem:[#allocation5 + $0x38] sm:$0xff]  }
 0x7e8   : > { %v2733_v9 = vmul.f32 1.442695, %v2732_v8  ;;  %v7107_v8 = vld [vmem:[#allocation5 + $0x98] sm:$0xff]   ;;  %6298 = vmatpush3.bf16.msra.mxu0 %v7106_v6 }
 0x7e9   : > { %v2634_v17 = vpop.xlane.xlu0 %2633  ;;  %6560 = vmatprep.subr.bf16.mxu0 %v7923_v2 }
 0x7ea   : > { %7342 = vpow2.f32 %v2733_v9  ;;  %v7108_v9 = vld [vmem:[#allocation5 + $0xe0] sm:$0xff]  }
 0x7f0   : > { %v7341_v10 = vpop.eup %7340 }
 0x7f1   : > { %v2529_v41 = vsel %vm2418_vm3, %v7341_v10, 0.0 }
 0x7f2   : > { %2530 = vadd.xlane.f32.xlu1 %v2529_v41  ;;  %v7110_v41 = vld [vmem:[#allocation5 + $0xe8] sm:$0xff]  }
 0x7f4   : > { %v7343_v12 = vpop.eup %7342 }
 0x7f5   : > { %v2735_v13 = vsel %vm2418_vm3, %v7343_v12, 0.0 }
 0x7f6   : > { %2736 = vadd.xlane.f32.xlu1 %v2735_v13  ;;  %v7112_v13 = vld [vmem:[#allocation5 + $0xf0] sm:$0xff]  }
 0x87f   : > { %v2531_v40 = vpop.xlane.xlu1 %2530 }
 0x880   : > { %7344 = vrcp.f32 %v2531_v40 }
 0x881   : > { %7346 = vrcp.f32 %v2634_v17 }
 0x883   : > { %v2737_v39 = vpop.xlane.xlu1 %2736 }
 0x884   : > { %7348 = vrcp.f32 %v2737_v39 }
 0x88a   : > { %v7345_v44 = vpop.eup %7344 }
 0x88b   : > { %v2533_v57 = vmul.f32 %v7345_v44, %v7341_v10  ;;  %v7347_v49 = vpop.eup %7346  ;;  %v7109_v10 = vld [vmem:[#allocation5 + $0xa0] sm:$0xff]  }
 0x88c   : > { %v2636_v37 = vmul.f32 %v7347_v49, %v8698_v62  ;;  %v7099_v62 = vld [vmem:[#allocation5 + $0x88] sm:$0xff]  }
 0x88d   : > { %v2534_v48 = vpack.c.bf16 %v2533_v57, %v2533_v57 }
 0x88e   : > { %v2637_v50 = vpack.c.bf16 %v2636_v37, %v2636_v37  ;;  %v7349_v55 = vpop.eup %7348 }
 0x88f   : > { %6533 = vmatmul.mubr.msk.bf16.vlgmr.msra.gmra.mrb[32].mxu1 %vm2418_vm3, %v2534_v48  ;;  %v2739_v38 = vmul.f32 %v7349_v55, %v7343_v12  ;;  %v7111_v12 = vld [vmem:[#allocation5 + $0xa8] sm:$0xff]   ;;  %v5998_v48 = vld [vmem:[%s9101_s7] ss:$0 sm:$0xff]  ;;  %s9105_s7 = sld [smem:[#allocation58_spill]] }
 0x890   : > { %6543 = vmatpush3.bf16.msra.mxu1 %v2643_v51  ;;  %6544 = vmatprep.mubr.msk.bf16.mxu1 %vm7924_vm2, %v7923_v2  ;;  %v7384_v55 = vld [vmem:[%s9096_s29] sm:$0xff] }
 0x891   : > { %6554 = vmatprep.subr.bf16.mxu1 %v7923_v2  ;;  %v2740_v59 = vpack.c.bf16 %v2739_v38, %v2739_v38 }
 0x895   : > { %s9106_s13 = smov %s9105_s7 }
 0x897   : > { %6545 = vmatmul.mubr.msk.bf16.vlgmr.msra.gmra.mrb[36].mxu1 %vm2418_vm3, %v2637_v50 }
 0x898   : > { %6555 = vmatpush3.bf16.msra.mxu1 %v2746_v56  ;;  %6556 = vmatprep.mubr.msk.bf16.mxu1 %vm7924_vm2, %v7923_v2 }
 0x899   : > { %6305 = vmatprep.subr.bf16.mxu1 %v7093_v54 }
 0x89f   : > { %6557 = vmatmul.mubr.msk.bf16.vlgmr.msra.gmra.mrb[40].mxu1 %vm2418_vm3, %v2740_v59 }
 0x8a0   : > { %6306 = vmatpush3.bf16.msra.mxu1 %v7095_v58 }
 0x8a1   : > { %6307 = vmatprep.subr.bf16.mxu1 %v7097_v61 }
 0x8a4   : > { %6308 = vmatpush3.bf16.msra.mxu1 %v7099_v62 }
 0x8a5   : > { %6309 = vmatprep.subr.bf16.mxu1 %v7101_v0 }
 0x8a8   : > { %6310 = vmatpush3.bf16.msra.mxu1 %v7103_v1 }
 0x8a9   : > { %6311 = vmatprep.subr.bf16.mxu1 %v7105_v5  ;;  %v1174_v5 = vld [vmem:[%s9103_s4] sm:$0x1] }
 0x8ac   : > { %6312 = vmatpush3.bf16.msra.mxu1 %v7107_v8  ;;  %v6031_v8 = vld [vmem:[#allocation14] ss:$0 sm:$0xff] }
 0x8ad   : > { %6313 = vmatprep.subr.bf16.mxu1 %v7108_v9  ;;  %v1258_v9 = vadd.f32 %v8619_v63, %v1174_v5 }
 0x8b0   : > { %6314 = vmatpush3.bf16.msra.mxu1 %v7109_v10 }
 0x8b1   : > { %6315 = vmatprep.subr.bf16.mxu1 %v7110_v41  ;;  %v6032_v41 = vld [vmem:[#allocation16] ss:$0 sm:$0xff] }
 0x8b4   : > { %6316 = vmatpush3.bf16.msra.mxu1 %v7111_v12 }
 0x8b5   : > { %6317 = vmatprep.subr.bf16.mxu1 %v7112_v13  ;;  %v3167_v13 = vrot.slane %v1258_v9, %v8604_v42 }
 0x8b8   : > { %6318 = vmatpush3.bf16.msra.mxu1 %v7113_v60 }
 0x8b9   : > { %6319 = vmatprep.subr.bf16.mxu1 %v7114_v18 }
 0x8bc   : > { %6320 = vmatpush3.bf16.msra.mxu1 %v7115_v19  ;;  %v7116_v19 = vld [vmem:[#allocation10] sm:$0xff]  }
 0x8bd   : > { %6580 = vmatprep.subr.bf16.mxu1 %v7923_v2 }
 0x962   : > { %v2576_v21 = vpop.f32.mrb[32].mxu1 }
 0x963   : > { %v2853_v22 = vpack.c.bf16 %v2576_v21, %v2576_v21  ;;  %v6534_v24 = vpop.f32.mrb[33].mxu1  ;;  %v7117_v21 = vld [vmem:[#allocation10 + $0x8] sm:$0xff]  }
 0x964   : > { %v2579_v27 = vpop.f32.mrb[34].mxu1 }
 0x965   : > { %v6535_v29 = vpop.f32.mrb[35].mxu1  ;;  %3087 = vmatprep.mubr.bf16.mxu0 %v2853_v22 }
 0x966   : > { %3088 = vmatmul.mubr.bf16.vlgmr.msra.gmra.mrb[28].mxu0 %v2852_v26  ;;  %v7118_v29 = vld [vmem:[#allocation10 + $0x10] sm:$0xff]  }
 0x967   : > { %6576 = vmatprep.mubr.msk.bf16.mxu0 %vm7924_vm2, %v7923_v2  ;;  %6561 = vmatpush3.bf16.msra.mxu0 %v7116_v19 }
 0x968   : > { %6562 = vmatprep.subr.bf16.mxu0 %v7923_v2 }
 0x96a   : > { %v2679_v30 = vpop.f32.mrb[36].mxu1 }
 0x96b   : > { %v6546_v31 = vpop.f32.mrb[37].mxu1  ;;  %v2854_v7 = vpack.c.bf16 %v2679_v30, %v2679_v30  ;;  %6563 = vmatpush3.bf16.msra.mxu0 %v7117_v21  ;;  %v7119_v30 = vld [vmem:[#allocation10 + $0x18] sm:$0xff]  }
 0x96c   : > { %v2682_v32 = vpop.f32.mrb[38].mxu1  ;;  %6564 = vmatprep.subr.bf16.mxu0 %v7923_v2  ;;  %v7120_v31 = vld [vmem:[#allocation10 + $0x20] sm:$0xff]  }
 0x96d   : > { %v6547_v34 = vpop.f32.mrb[39].mxu1  ;;  %v7121_v32 = vld [vmem:[#allocation10 + $0x28] sm:$0xff]  }
 0x96e   : > { %v7122_v34 = vld [vmem:[#allocation10 + $0x30] sm:$0xff]  }
 0x96f   : > { %6565 = vmatpush3.bf16.msra.mxu0 %v7118_v29  ;;  %v7140_v29 = vld [vmem:[#allocation2 + $0x364] ss:$48 sps:$4 sm:$0xff]  }
 0x970   : > { %6566 = vmatprep.subr.bf16.mxu0 %v7923_v2 }
 0x972   : > { %v2782_v35 = vpop.f32.mrb[40].mxu1 }
 0x973   : > { %v2855_v40 = vpack.c.bf16 %v2782_v35, %v2782_v35  ;;  %v6558_v17 = vpop.f32.mrb[41].mxu1  ;;  %6567 = vmatpush3.bf16.msra.mxu0 %v7119_v30  ;;  %v7123_v35 = vld [vmem:[#allocation10 + $0x38] sm:$0xff]  }
 0x974   : > { %v2785_v43 = vpop.f32.mrb[42].mxu1  ;;  %6568 = vmatprep.subr.bf16.mxu0 %v7923_v2  ;;  %v7143_v30 = vld [vmem:[#allocation2 + $0x36c] ss:$48 sps:$4 sm:$0xff]  }
 0x975   : > { %v6559_v39 = vpop.f32.mrb[43].mxu1  ;;  %3127 = vmatprep.mubr.bf16.mxu1 %v2855_v40  ;;  %v7124_v40 = vld [vmem:[#allocation11] sm:$0xff]  }
 0x976   : > { %3128 = vmatmul.mubr.bf16.vlgmr.msra.gmra.mrb[44].mxu1 %v2854_v7 }
 0x977   : > { %6596 = vmatprep.mubr.msk.bf16.mxu1 %vm7924_vm2, %v7923_v2  ;;  %6569 = vmatpush3.bf16.msra.mxu0 %v7120_v31  ;;  %v7138_v31 = vld [vmem:[#allocation2 + $0x360] ss:$48 sps:$4 sm:$0xff]  }
 0x978   : > { %6570 = vmatprep.subr.bf16.mxu0 %v7923_v2  ;;  %6581 = vmatpush3.bf16.msra.mxu1 %v7124_v40  ;;  %v7144_v40 = vld [vmem:[#allocation2 + $0x3c0] ss:$48 sps:$4 sm:$0xff]  }
 0x979   : > { %6582 = vmatprep.subr.bf16.mxu1 %v7923_v2 }
 0x97b   : > { %6571 = vmatpush3.bf16.msra.mxu0 %v7121_v32  ;;  %v7141_v32 = vld [vmem:[#allocation2 + $0x368] ss:$48 sps:$4 sm:$0xff]  }
 0x97c   : > { %6572 = vmatprep.subr.bf16.mxu0 %v7923_v2 }
 0x97f   : > { %6573 = vmatpush3.bf16.msra.mxu0 %v7122_v34  ;;  %v7146_v34 = vld [vmem:[#allocation2 + $0x3c4] ss:$48 sps:$4 sm:$0xff]  }
 0x980   : > { %6574 = vmatprep.subr.bf16.mxu0 %v7923_v2 }
 0x983   : > { %6575 = vmatpush3.bf16.msra.mxu0 %v7123_v35  ;;  %v7149_v35 = vld [vmem:[#allocation2 + $0x3cc] ss:$48 sps:$4 sm:$0xff]  }
 0xa39   : > { %v6299_v45 = vpop.f32.mrb[28].mxu0 }
 0xa3a   : > { %v6300_v44 = vpop.f32.mrb[29].mxu0 }
 0xa3b   : > { %v6301_v46 = vadd.f32 %v6300_v44, %v6299_v45  ;;  %v6302_v47 = vpop.f32.mrb[30].mxu0  ;;  %v6033_v45 = vld [vmem:[#allocation17] ss:$0 sm:$0xff] }
 0xa3c   : > { %v6303_v57 = vpop.f32.mrb[31].mxu0 }
 0xa3d   : > { %v3090_v52 = vadd.f32 %v6301_v46, %v5998_v48  ;;  %v6034_v46 = vld [vmem:[#allocation19] ss:$0 sm:$0xff] }
 0xa49   : > { %v6321_v49 = vpop.f32.mrb[44].mxu1 }
 0xa4a   : > { %v6322_v51 = vpop.f32.mrb[45].mxu1 }
 0xa4b   : > { %v6323_v37 = vadd.f32 %v6322_v51, %v6321_v49  ;;  %v6324_v53 = vpop.f32.mrb[46].mxu1  ;;  %v7125_v49 = vld [vmem:[#allocation11 + $0x8] sm:$0xff]   ;;  %v7126_v51 = vld [vmem:[#allocation11 + $0x10] sm:$0xff]  }
 0xa4c   : > { %v6325_v50 = vpop.f32.mrb[47].mxu1  ;;  %6583 = vmatpush3.bf16.msra.mxu1 %v7125_v49  ;;  %v7129_v53 = vld [vmem:[#allocation11 + $0x28] sm:$0xff]   ;;  %v7158_v49 = vld [vmem:[#allocation2 + $0x484] ss:$48 sps:$4 sm:$0xff]  }
 0xa4d   : > { %v3130_v54 = vadd.f32 %v6323_v37, %v3090_v52  ;;  %6584 = vmatprep.subr.bf16.mxu1 %v7923_v2  ;;  %v7127_v52 = vld [vmem:[#allocation11 + $0x18] sm:$0xff]   ;;  %v7128_v37 = vld [vmem:[#allocation11 + $0x20] sm:$0xff]   ;;  %v7130_v50 = vld [vmem:[#allocation11 + $0x30] sm:$0xff]  }
 0xa4f   : > { %v3135_v56 = vadd.f32 %v7384_v55, %v3130_v54  ;;  %v7131_v54 = vld [vmem:[#allocation11 + $0x38] sm:$0xff]   ;;  %v6035_v55 = vld [vmem:[%s9104_s9] ss:$0 sm:$0xff] }
 0xa50   : > { %6585 = vmatpush3.bf16.msra.mxu1 %v7126_v51  ;;  %v7161_v51 = vld [vmem:[#allocation2 + $0x48c] ss:$48 sps:$4 sm:$0xff]  }
 0xa51   : > { %3138 = vadd.xlane.f32.xlu0 %v3135_v56  ;;  %6586 = vmatprep.subr.bf16.mxu1 %v7923_v2 }
 0xa54   : > { %6587 = vmatpush3.bf16.msra.mxu1 %v7127_v52  ;;  %v7156_v52 = vld [vmem:[#allocation2 + $0x480] ss:$48 sps:$4 sm:$0xff]  }
 0xa55   : > { %6588 = vmatprep.subr.bf16.mxu1 %v7923_v2 }
 0xa58   : > { %6589 = vmatpush3.bf16.msra.mxu1 %v7128_v37  ;;  %v7159_v37 = vld [vmem:[#allocation2 + $0x488] ss:$48 sps:$4 sm:$0xff]  }
 0xa59   : > { %6590 = vmatprep.subr.bf16.mxu1 %v7923_v2 }
 0xa5c   : > { %6591 = vmatpush3.bf16.msra.mxu1 %v7129_v53  ;;  %v7164_v53 = vld [vmem:[#allocation2 + $0x4e4] ss:$48 sps:$4 sm:$0xff]  }
 0xa5d   : > { %6592 = vmatprep.subr.bf16.mxu1 %v7923_v2 }
 0xa60   : > { %6593 = vmatpush3.bf16.msra.mxu1 %v7130_v50  ;;  %v7167_v50 = vld [vmem:[#allocation2 + $0x4ec] ss:$48 sps:$4 sm:$0xff]  }
 0xa61   : > { %6594 = vmatprep.subr.bf16.mxu1 %v7923_v2 }
 0xa64   : > { %6595 = vmatpush3.bf16.msra.mxu1 %v7131_v54  ;;  %v7162_v54 = vld [vmem:[#allocation2 + $0x4e0] ss:$48 sps:$4 sm:$0xff]  }
 0xade   : > { %v3139_v38 = vpop.xlane.xlu0 %3138 }
 0xadf   : > { %v3140_v58 = vmul.f32 0.03125, %v3139_v38 }
 0xae1   : > { %v3141_v59 = vsub.f32 %v3135_v56, %v3140_v58 }
 0xae3   : > { %v3142_v61 = vmul.f32 %v8524_v11, %v3141_v59 }
 0xae5   : > { %v3143_v62 = vmul.f32 %v3142_v61, %v3142_v61 }
 0xae7   : > { %3144 = vadd.xlane.f32.xlu1 %v3143_v62 }
 0xb74   : > { %v3145_v0 = vpop.xlane.xlu1 %3144 }
 0xb75   : > { %v3146_v1 = vmul.f32 0.03125, %v3145_v0 }
 0xb77   : > { %v3147_v3 = vadd.f32 1e-05, %v3146_v1 }
 0xb79   : > { %7350 = vrsqrt.f32 %v3147_v3 }
 0xb83   : > { %v7351_v6 = vpop.eup %7350 }
 0xb84   : > { %v3149_v10 = vmul.f32 %v7351_v6, %v3142_v61 }
 0xb86   : > { %v3156_v12 = vmul.f32 %v6031_v8, %v3149_v10 }
 0xb88   : > { %v3163_v60 = vadd.f32 %v6032_v41, %v3156_v12  ;;  %v6044_v12 = vld [vmem:[#allocation13] ss:$0 sm:$0xff] }
 0xb8a   : > { %v3168_v18 = vadd.f32 %v3167_v13, %v3163_v60 }
 0xb8c   : > { %3171 = vadd.xlane.f32.xlu0 %v3168_v18 }
 0xc19   : > { %v3172_v22 = vpop.xlane.xlu0 %3171 }
 0xc1a   : > { %v3173_v24 = vmul.f32 0.03125, %v3172_v22 }
 0xc1c   : > { %v3174_v26 = vsub.f32 %v3168_v18, %v3173_v24  ;;  %v7132_v24 = vld [vmem:[#allocation2 + $0x300] ss:$48 sps:$4 sm:$0xff]  }
 0xc1e   : > { %v3175_v63 = vmul.f32 %v8524_v11, %v3174_v26  ;;  %v7134_v26 = vld [vmem:[#allocation2 + $0x304] ss:$48 sps:$4 sm:$0xff]  }
 0xc1f   : > { %4102 = vmatprep.subr.bf16.mxu0 %v7134_v26  ;;  %v7191_v26 = vld [vmem:[#allocation2 + $0x37c] ss:$48 sps:$4 sm:$0xff]  }
 0xc20   : > { %v3176_v27 = vmul.f32 %v3175_v63, %v3175_v63 }
 0xc22   : > { %3177 = vadd.xlane.f32.xlu1 %v3176_v27  ;;  %v7137_v27 = vld [vmem:[#allocation2 + $0x30c] ss:$48 sps:$4 sm:$0xff]  }
 0xc23   : > { %4143 = vmatprep.subr.bf16.mxu1 %v7137_v27  ;;  %v7189_v27 = vld [vmem:[#allocation2 + $0x378] ss:$48 sps:$4 sm:$0xff]  }
 0xcaf   : > { %v3178_v17 = vpop.xlane.xlu1 %3177 }
 0xcb0   : > { %v3179_v7 = vmul.f32 0.03125, %v3178_v17  ;;  %v7147_v17 = vld [vmem:[#allocation2 + $0x3c8] ss:$48 sps:$4 sm:$0xff]  }
 0xcb2   : > { %v3180_v43 = vadd.f32 1e-05, %v3179_v7 }
 0xcb4   : > { %7352 = vrsqrt.f32 %v3180_v43 }
 0xcbe   : > { %v7353_v39 = vpop.eup %7352 }
 0xcbf   : > { %v3182_v44 = vmul.f32 %v7353_v39, %v3175_v63  ;;  %v7135_v63 = vld [vmem:[#allocation2 + $0x308] ss:$48 sps:$4 sm:$0xff]  }
 0xcc1   : > { %v3189_v47 = vmul.f32 %v6033_v45, %v3182_v44 }
 0xcc3   : > { %v3196_v57 = vadd.f32 %v6034_v46, %v3189_v47  ;;  %v7152_v46 = vld [vmem:[#allocation2 + $0x424] ss:$48 sps:$4 sm:$0xff]   ;;  %v7155_v47 = vld [vmem:[#allocation2 + $0x42c] ss:$48 sps:$4 sm:$0xff]  }
 0xcc5   : > { %v3213_v48 = vpack.c.bf16 %v3196_v57, %v3196_v57 }
 0xcc7   : > { %6577 = vmatmul.mubr.bf16.vlgmr.msra.gmra.mrb[32].mxu0 %v3213_v48  ;;  %v7153_v48 = vld [vmem:[#allocation2 + $0x428] ss:$48 sps:$4 sm:$0xff]  }
 0xcc8   : > { %4134 = vmatprep.mubr.bf16.mxu0 %v7925_v20  ;;  %4103 = vmatpush1.bf16.msra.mxu0 %v7132_v24  ;;  %v7188_v24 = vld [vmem:[#allocation2 + $0x374] ss:$48 sps:$4 sm:$0xff]  }
 0xcc9   : > { %4104 = vmatprep.subr.bf16.mxu0 %v7140_v29  ;;  %v7194_v29 = vld [vmem:[#allocation2 + $0x3d4] ss:$48 sps:$4 sm:$0xff]  }
 0xccc   : > { %4105 = vmatpush1.bf16.msra.mxu0 %v7138_v31  ;;  %v7192_v31 = vld [vmem:[#allocation2 + $0x3d0] ss:$48 sps:$4 sm:$0xff]  }
 0xccd   : > { %4106 = vmatprep.subr.bf16.mxu0 %v7146_v34  ;;  %v7200_v34 = vld [vmem:[#allocation2 + $0x434] ss:$48 sps:$4 sm:$0xff]  }
 0xcd0   : > { %4107 = vmatpush1.bf16.msra.mxu0 %v7144_v40  ;;  %v7198_v40 = vld [vmem:[#allocation2 + $0x430] ss:$48 sps:$4 sm:$0xff]  }
 0xcd1   : > { %4108 = vmatprep.subr.bf16.mxu0 %v7152_v46  ;;  %v7215_v46 = vld [vmem:[#allocation2 + $0x4fc] ss:$48 sps:$4 sm:$0xff]  }
 0xd9a   : > { %v3303_v56 = vpop.f32.mrb[32].mxu0 }
 0xd9b   : > { %v3304_v38 = vadd.f32 %v6035_v55, %v3303_v56  ;;  %v6578_v58 = vpop.f32.mrb[33].mxu0  ;;  %v7165_v55 = vld [vmem:[#allocation2 + $0x4e8] ss:$48 sps:$4 sm:$0xff]   ;;  %v7170_v56 = vld [vmem:[#allocation2 + $0x544] ss:$48 sps:$4 sm:$0xff]  }
 0xd9c   : > { %v3306_v59 = vpop.f32.mrb[34].mxu0  ;;  %v7168_v58 = vld [vmem:[#allocation2 + $0x540] ss:$48 sps:$4 sm:$0xff]  }
 0xd9d   : > { %v3310_v61 = vmul.f32 0.044715, %v3304_v38  ;;  %v6579_v62 = vpop.f32.mrb[35].mxu0  ;;  %v3309_v8 = vmul.f32 0.5, %v3304_v38  ;;  %v7171_v59 = vld [vmem:[#allocation2 + $0x548] ss:$48 sps:$4 sm:$0xff]  }
 0xd9e   : > { %v7179_v62 = vld [vmem:[#allocation2 + $0x5ac] ss:$48 sps:$4 sm:$0xff]  }
 0xd9f   : > { %v3311_v0 = vmul.f32 %v3310_v61, %v3304_v38  ;;  %v7176_v61 = vld [vmem:[#allocation2 + $0x5a4] ss:$48 sps:$4 sm:$0xff]  }
 0xda1   : > { %v3312_v1 = vmul.f32 %v3311_v0, %v3304_v38  ;;  %v7174_v0 = vld [vmem:[#allocation2 + $0x5a0] ss:$48 sps:$4 sm:$0xff]  }
 0xda3   : > { %v3313_v3 = vadd.f32 %v3312_v1, %v3304_v38  ;;  %v7173_v38 = vld [vmem:[#allocation2 + $0x54c] ss:$48 sps:$4 sm:$0xff]   ;;  %v7177_v1 = vld [vmem:[#allocation2 + $0x5a8] ss:$48 sps:$4 sm:$0xff]  }
 0xda5   : > { %v3314_v5 = vmul.f32 0.7978846, %v3313_v3  ;;  %v7182_v3 = vld [vmem:[#allocation2 + $0x314] ss:$48 sps:$4 sm:$0xff]  }
 0xda7   : > { %7354 = vtanh.f32 %v3314_v5  ;;  %v7185_v5 = vld [vmem:[#allocation2 + $0x31c] ss:$48 sps:$4 sm:$0xff]  }
 0xdb1   : > { %v7355_v6 = vpop.eup %7354 }
 0xdb2   : > { %v3316_v9 = vadd.f32 1.0, %v7355_v6 }
 0xdb4   : > { %v3317_v10 = vmul.f32 %v3316_v9, %v3309_v8 }
 0xdb6   : > { %v3334_v41 = vpack.c.bf16 %v3317_v10, %v3317_v10 }
 0xdb8   : > { %6597 = vmatmul.mubr.bf16.vlgmr.msra.gmra.mrb[48].mxu1 %v3334_v41  ;;  %v6053_v41 = vld [vmem:[#allocation20] ss:$0 sm:$0xff] }
 0xdb9   : > { %4175 = vmatprep.mubr.bf16.mxu1 %v7925_v20  ;;  %4144 = vmatpush1.bf16.msra.mxu1 %v7135_v63  ;;  %v7186_v63 = vld [vmem:[#allocation2 + $0x370] ss:$48 sps:$4 sm:$0xff]  }
 0xdba   : > { %4145 = vmatprep.subr.bf16.mxu1 %v7143_v30  ;;  %v7197_v30 = vld [vmem:[#allocation2 + $0x3dc] ss:$48 sps:$4 sm:$0xff]  }
 0xdbd   : > { %4146 = vmatpush1.bf16.msra.mxu1 %v7141_v32  ;;  %v7195_v32 = vld [vmem:[#allocation2 + $0x3d8] ss:$48 sps:$4 sm:$0xff]  }
 0xdbe   : > { %4147 = vmatprep.subr.bf16.mxu1 %v7149_v35  ;;  %v7203_v35 = vld [vmem:[#allocation2 + $0x43c] ss:$48 sps:$4 sm:$0xff]  }
 0xdc1   : > { %4148 = vmatpush1.bf16.msra.mxu1 %v7147_v17  ;;  %v7201_v17 = vld [vmem:[#allocation2 + $0x438] ss:$48 sps:$4 sm:$0xff]  }
 0xdc2   : > { %4149 = vmatprep.subr.bf16.mxu1 %v7155_v47  ;;  %v7210_v47 = vld [vmem:[#allocation2 + $0x4f0] ss:$48 sps:$4 sm:$0xff]  }
 0xdc5   : > { %4150 = vmatpush1.bf16.msra.mxu1 %v7153_v48  ;;  %v7218_v48 = vld [vmem:[#allocation2 + $0x554] ss:$48 sps:$4 sm:$0xff]  }
 0xdc6   : > { %4151 = vmatprep.subr.bf16.mxu1 %v7161_v51  ;;  %v7216_v51 = vld [vmem:[#allocation2 + $0x550] ss:$48 sps:$4 sm:$0xff]  }
 0xdc9   : > { %4152 = vmatpush1.bf16.msra.mxu1 %v7159_v37  ;;  %v7224_v37 = vld [vmem:[#allocation2 + $0x5b4] ss:$48 sps:$4 sm:$0xff]  }
 0xdca   : > { %4153 = vmatprep.subr.bf16.mxu1 %v7167_v50  ;;  %v7222_v50 = vld [vmem:[#allocation2 + $0x5b0] ss:$48 sps:$4 sm:$0xff]  }
 0xdcd   : > { %4154 = vmatpush1.bf16.msra.mxu1 %v7165_v55  ;;  %v7230_v55 = vld [vmem:[#allocation2 + $0x324] ss:$48 sps:$4 sm:$0xff]  }
 0xdce   : > { %4155 = vmatprep.subr.bf16.mxu1 %v7173_v38  ;;  %v7228_v38 = vld [vmem:[#allocation2 + $0x320] ss:$48 sps:$4 sm:$0xff]  }
 0xdd1   : > { %4156 = vmatpush1.bf16.msra.mxu1 %v7171_v59  ;;  %v7236_v59 = vld [vmem:[#allocation2 + $0x384] ss:$48 sps:$4 sm:$0xff]  }
 0xdd2   : > { %4157 = vmatprep.subr.bf16.mxu1 %v7179_v62  ;;  %v7234_v62 = vld [vmem:[#allocation2 + $0x380] ss:$48 sps:$4 sm:$0xff]  }
 0xdd5   : > { %4158 = vmatpush1.bf16.msra.mxu1 %v7177_v1  ;;  %v7242_v1 = vld [vmem:[#allocation2 + $0x3e4] ss:$48 sps:$4 sm:$0xff]  }
 0xdd6   : > { %4225 = vmatprep.subr.bf16.mxu1 %v7185_v5  ;;  %v7240_v5 = vld [vmem:[#allocation2 + $0x3e0] ss:$48 sps:$4 sm:$0xff]  }
 0xe8b   : > { %v3424_v13 = vpop.f32.mrb[48].mxu1 }
 0xe8c   : > { %v3425_v60 = vadd.f32 %v6044_v12, %v3424_v13  ;;  %v6598_v18 = vpop.f32.mrb[49].mxu1  ;;  %v6054_v13 = vld [vmem:[#allocation22] ss:$0 sm:$0xff] }
 0xe8d   : > { %v3427_v19 = vpop.f32.mrb[50].mxu1 }
 0xe8e   : > { %v6599_v21 = vpop.f32.mrb[51].mxu1  ;;  %v3430_v22 = vadd.f32 %v3425_v60, %v3196_v57  ;;  %v7150_v57 = vld [vmem:[#allocation2 + $0x420] ss:$48 sps:$4 sm:$0xff]  }
 0xe8f   : > { %4109 = vmatpush1.bf16.msra.mxu0 %v7150_v57  ;;  %v7180_v19 = vld [vmem:[#allocation2 + $0x310] ss:$48 sps:$4 sm:$0xff]   ;;  %v7183_v21 = vld [vmem:[#allocation2 + $0x318] ss:$48 sps:$4 sm:$0xff]  }
 0xe90   : > { %3433 = vadd.xlane.f32.xlu0 %v3430_v22  ;;  %4110 = vmatprep.subr.bf16.mxu0 %v7158_v49  ;;  %v7213_v57 = vld [vmem:[#allocation2 + $0x4f8] ss:$48 sps:$4 sm:$0xff]   ;;  %v7221_v49 = vld [vmem:[#allocation2 + $0x55c] ss:$48 sps:$4 sm:$0xff]  }
 0xe93   : > { %4111 = vmatpush1.bf16.msra.mxu0 %v7156_v52  ;;  %v7219_v52 = vld [vmem:[#allocation2 + $0x558] ss:$48 sps:$4 sm:$0xff]  }
 0xe94   : > { %4112 = vmatprep.subr.bf16.mxu0 %v7164_v53  ;;  %v7227_v53 = vld [vmem:[#allocation2 + $0x5bc] ss:$48 sps:$4 sm:$0xff]  }
 0xe97   : > { %4113 = vmatpush1.bf16.msra.mxu0 %v7162_v54  ;;  %v7225_v54 = vld [vmem:[#allocation2 + $0x5b8] ss:$48 sps:$4 sm:$0xff]  }
 0xe98   : > { %4114 = vmatprep.subr.bf16.mxu0 %v7170_v56  ;;  %v7233_v56 = vld [vmem:[#allocation2 + $0x32c] ss:$48 sps:$4 sm:$0xff]  }
 0xe9b   : > { %4115 = vmatpush1.bf16.msra.mxu0 %v7168_v58  ;;  %v7231_v58 = vld [vmem:[#allocation2 + $0x328] ss:$48 sps:$4 sm:$0xff]  }
 0xe9c   : > { %4116 = vmatprep.subr.bf16.mxu0 %v7176_v61  ;;  %v7239_v61 = vld [vmem:[#allocation2 + $0x38c] ss:$48 sps:$4 sm:$0xff]  }
 0xe9f   : > { %4117 = vmatpush1.bf16.msra.mxu0 %v7174_v0  ;;  %v7237_v0 = vld [vmem:[#allocation2 + $0x388] ss:$48 sps:$4 sm:$0xff]  }
 0xea0   : > { %4184 = vmatprep.subr.bf16.mxu0 %v7182_v3  ;;  %v7245_v3 = vld [vmem:[#allocation2 + $0x3ec] ss:$48 sps:$4 sm:$0xff]  }
 0xf1d   : > { %v3434_v7 = vpop.xlane.xlu0 %3433 }
 0xf1e   : > { %v3435_v43 = vmul.f32 0.03125, %v3434_v7  ;;  %v7206_v7 = vld [vmem:[#allocation2 + $0x494] ss:$48 sps:$4 sm:$0xff]  }
 0xf20   : > { %v3436_v39 = vsub.f32 %v3430_v22, %v3435_v43  ;;  %v7209_v43 = vld [vmem:[#allocation2 + $0x49c] ss:$48 sps:$4 sm:$0xff]  }
 0xf22   : > { %v3437_v45 = vmul.f32 %v8524_v11, %v3436_v39  ;;  %v7204_v39 = vld [vmem:[#allocation2 + $0x490] ss:$48 sps:$4 sm:$0xff]  }
 0xf24   : > { %v3438_v44 = vmul.f32 %v3437_v45, %v3437_v45 }
 0xf26   : > { %3439 = vadd.xlane.f32.xlu1 %v3438_v44  ;;  %v7212_v44 = vld [vmem:[#allocation2 + $0x4f4] ss:$48 sps:$4 sm:$0xff]  }
 0xfb3   : > { %v3440_v6 = vpop.xlane.xlu1 %3439 }
 0xfb4   : > { %v3441_v8 = vmul.f32 0.03125, %v3440_v6  ;;  %v7243_v6 = vld [vmem:[#allocation2 + $0x3e8] ss:$48 sps:$4 sm:$0xff]  }
 0xfb6   : > { %v3442_v9 = vadd.f32 1e-05, %v3441_v8  ;;  %v7248_v8 = vld [vmem:[#allocation2 + $0x444] ss:$48 sps:$4 sm:$0xff]  }
 0xfb8   : > { %7356 = vrsqrt.f32 %v3442_v9  ;;  %v7251_v9 = vld [vmem:[#allocation2 + $0x44c] ss:$48 sps:$4 sm:$0xff]  }
 0xfc2   : > { %v7357_v10 = vpop.eup %7356 }
 0xfc3   : > { %v3444_v12 = vmul.f32 %v7357_v10, %v3437_v45  ;;  %v7207_v45 = vld [vmem:[#allocation2 + $0x498] ss:$48 sps:$4 sm:$0xff]   ;;  %v7246_v10 = vld [vmem:[#allocation2 + $0x440] ss:$48 sps:$4 sm:$0xff]  }
 0xfc5   : > { %v3451_v60 = vmul.f32 %v6053_v41, %v3444_v12  ;;  %v7249_v41 = vld [vmem:[#allocation2 + $0x448] ss:$48 sps:$4 sm:$0xff]   ;;  %v7254_v12 = vld [vmem:[#allocation2 + $0x4a4] ss:$48 sps:$4 sm:$0xff]  }
 0xfc7   : > { %v8762_v18 = vadd.f32 %v6054_v13, %v3451_v60  ;;  %v7257_v13 = vld [vmem:[#allocation2 + $0x4ac] ss:$48 sps:$4 sm:$0xff]   ;;  %v7252_v60 = vld [vmem:[#allocation2 + $0x4a0] ss:$48 sps:$4 sm:$0xff]  }
 0xfc9   : > { %v8766_v22 = vpack.c.bf16 %v8762_v18, %v8762_v18 }
 0xfcb   : > { %4135 = vmatmul.mubr.bf16.vlgmr.msra.gmra.mrb[36].mxu0 %v8766_v22  ;;  %4176 = vmatmul.mubr.bf16.vlgmr.msra.gmra.mrb[52].mxu1 %v8766_v22 }
 0xfcc   : > { %4185 = vmatpush1.bf16.msra.mxu0 %v7180_v19  ;;  %4226 = vmatpush1.bf16.msra.mxu1 %v7183_v21  ;;  %v7260_v19 = vld [vmem:[#allocation2 + $0x504] ss:$48 sps:$4 sm:$0xff]   ;;  %v7263_v21 = vld [vmem:[#allocation2 + $0x50c] ss:$48 sps:$4 sm:$0xff]  }
 0xfcd   : > { %4186 = vmatprep.subr.bf16.mxu0 %v7188_v24  ;;  %4227 = vmatprep.subr.bf16.mxu1 %v7191_v26  ;;  %v7258_v24 = vld [vmem:[#allocation2 + $0x500] ss:$48 sps:$4 sm:$0xff]   ;;  %v7261_v26 = vld [vmem:[#allocation2 + $0x508] ss:$48 sps:$4 sm:$0xff]  }
 0xfce   : > { %4216 = vmatprep.mubr.bf16.mxu0 %v7925_v20  ;;  %4257 = vmatprep.mubr.bf16.mxu1 %v7925_v20 }
 0xfd0   : > { %4187 = vmatpush1.bf16.msra.mxu0 %v7186_v63  ;;  %4228 = vmatpush1.bf16.msra.mxu1 %v7189_v27  ;;  %v7266_v63 = vld [vmem:[#allocation2 + $0x564] ss:$48 sps:$4 sm:$0xff]   ;;  %v7269_v27 = vld [vmem:[#allocation2 + $0x56c] ss:$48 sps:$4 sm:$0xff]  }
 0xfd1   : > { %4188 = vmatprep.subr.bf16.mxu0 %v7194_v29  ;;  %4229 = vmatprep.subr.bf16.mxu1 %v7197_v30  ;;  %v7264_v29 = vld [vmem:[#allocation2 + $0x560] ss:$48 sps:$4 sm:$0xff]   ;;  %v7267_v30 = vld [vmem:[#allocation2 + $0x568] ss:$48 sps:$4 sm:$0xff]  }
 0xfd4   : > { %4189 = vmatpush1.bf16.msra.mxu0 %v7192_v31  ;;  %4230 = vmatpush1.bf16.msra.mxu1 %v7195_v32  ;;  %v7272_v31 = vld [vmem:[#allocation2 + $0x5c4] ss:$48 sps:$4 sm:$0xff]   ;;  %v7275_v32 = vld [vmem:[#allocation2 + $0x5cc] ss:$48 sps:$4 sm:$0xff]  }
 0xfd5   : > { %4190 = vmatprep.subr.bf16.mxu0 %v7200_v34  ;;  %4231 = vmatprep.subr.bf16.mxu1 %v7203_v35  ;;  %v7270_v34 = vld [vmem:[#allocation2 + $0x5c0] ss:$48 sps:$4 sm:$0xff]   ;;  %v7273_v35 = vld [vmem:[#allocation2 + $0x5c8] ss:$48 sps:$4 sm:$0xff]  }
 0xfd8   : > { %4191 = vmatpush1.bf16.msra.mxu0 %v7198_v40  ;;  %4232 = vmatpush1.bf16.msra.mxu1 %v7201_v17 }
 0xfd9   : > { %4192 = vmatprep.subr.bf16.mxu0 %v7206_v7  ;;  %4233 = vmatprep.subr.bf16.mxu1 %v7209_v43 }
 0xfdc   : > { %4193 = vmatpush1.bf16.msra.mxu0 %v7204_v39  ;;  %4234 = vmatpush1.bf16.msra.mxu1 %v7207_v45 }
 0xfdd   : > { %4194 = vmatprep.subr.bf16.mxu0 %v7212_v44  ;;  %4235 = vmatprep.subr.bf16.mxu1 %v7215_v46 }
 0xfe0   : > { %4195 = vmatpush1.bf16.msra.mxu0 %v7210_v47  ;;  %4236 = vmatpush1.bf16.msra.mxu1 %v7213_v57  ;;  %v6055_v47 = vld [vmem:[%s9099_s11 + $0xc] sm:$0xff] }
 0xfe1   : > { %4196 = vmatprep.subr.bf16.mxu0 %v7218_v48  ;;  %4237 = vmatprep.subr.bf16.mxu1 %v7221_v49 }
 0xfe4   : > { %4197 = vmatpush1.bf16.msra.mxu0 %v7216_v51  ;;  %4238 = vmatpush1.bf16.msra.mxu1 %v7219_v52 }
 0xfe5   : > { %4198 = vmatprep.subr.bf16.mxu0 %v7224_v37  ;;  %4239 = vmatprep.subr.bf16.mxu1 %v7227_v53  ;;  %v3565_v37 = vrot.slane %v6055_v47, %v8604_v42 }
 0xfe8   : > { %4199 = vmatpush1.bf16.msra.mxu0 %v7222_v50  ;;  %4240 = vmatpush1.bf16.msra.mxu1 %v7225_v54 }
 0xfe9   : > { %4266 = vmatprep.subr.bf16.mxu0 %v7230_v55  ;;  %4307 = vmatprep.subr.bf16.mxu1 %v7233_v56  ;;  %v3585_v55 = vrot.slane %v6055_v47, %v1604_v23 }
 0xfeb   : > { %4217 = vmatmul.mubr.bf16.vlgmr.msra.gmra.mrb[40].mxu0 %v8766_v22  ;;  %4258 = vmatmul.mubr.bf16.vlgmr.msra.gmra.mrb[56].mxu1 %v8766_v22 }
 0xfec   : > { %4267 = vmatpush1.bf16.msra.mxu0 %v7228_v38  ;;  %4308 = vmatpush1.bf16.msra.mxu1 %v7231_v58 }
 0xfed   : > { %4268 = vmatprep.subr.bf16.mxu0 %v7236_v59  ;;  %4309 = vmatprep.subr.bf16.mxu1 %v7239_v61  ;;  %v3569_v61 = vrot.slane %v6055_v47, %v8676_v25 }
 0xfee   : > { %4298 = vmatprep.mubr.bf16.mxu0 %v7925_v20  ;;  %4339 = vmatprep.mubr.bf16.mxu1 %v7925_v20  ;;  %v7255_v20 = vld [vmem:[#allocation2 + $0x4a8] ss:$48 sps:$4 sm:$0xff]  }
 0xff0   : > { %4269 = vmatpush1.bf16.msra.mxu0 %v7234_v62  ;;  %4310 = vmatpush1.bf16.msra.mxu1 %v7237_v0  ;;  %v3589_v62 = vrot.slane %v6055_v47, %v1608_v14 }
 0xff1   : > { %4270 = vmatprep.subr.bf16.mxu0 %v7242_v1  ;;  %4311 = vmatprep.subr.bf16.mxu1 %v7245_v3  ;;  %v3573_v3 = vrot.slane %v6055_v47, %v8628_v15 }
 0xff4   : > { %4271 = vmatpush1.bf16.msra.mxu0 %v7240_v5  ;;  %4312 = vmatpush1.bf16.msra.mxu1 %v7243_v6 }
 0xff5   : > { %4272 = vmatprep.subr.bf16.mxu0 %v7248_v8  ;;  %4313 = vmatprep.subr.bf16.mxu1 %v7251_v9  ;;  %v3593_v8 = vrot.slane %v6055_v47, %v1612_v16 }
 0xff8   : > { %4273 = vmatpush1.bf16.msra.mxu0 %v7246_v10  ;;  %4314 = vmatpush1.bf16.msra.mxu1 %v7249_v41  ;;  %v3577_v41 = vrot.slane %v6055_v47, %v8637_v28 }
 0xff9   : > { %4274 = vmatprep.subr.bf16.mxu0 %v7254_v12  ;;  %4315 = vmatprep.subr.bf16.mxu1 %v7257_v13  ;;  %v6056_v12 = vld [vmem:[%s9099_s11 + $0x14] sm:$0xf] }
 0xffa   : > { %v3597_v33 = vrot.slane %v6056_v12, %v8604_v42  ;;  %v3605_v16 = vrot.slane %v6056_v12, %v8628_v15 }
 0xffc   : > { %4275 = vmatpush1.bf16.msra.mxu0 %v7252_v60  ;;  %4316 = vmatpush1.bf16.msra.mxu1 %v7255_v20  ;;  %v3601_v20 = vrot.slane %v6056_v12, %v8676_v25 }
 0xffd   : > { %4276 = vmatprep.subr.bf16.mxu0 %v7260_v19  ;;  %4317 = vmatprep.subr.bf16.mxu1 %v7263_v21  ;;  %v3609_v19 = vrot.slane %v6056_v12, %v8637_v28 }
0x1000   : > { %4277 = vmatpush1.bf16.msra.mxu0 %v7258_v24  ;;  %4318 = vmatpush1.bf16.msra.mxu1 %v7261_v26 }
0x1001   : > { %4278 = vmatprep.subr.bf16.mxu0 %v7266_v63  ;;  %4319 = vmatprep.subr.bf16.mxu1 %v7269_v27 }
0x1004   : > { %4279 = vmatpush1.bf16.msra.mxu0 %v7264_v29  ;;  %4320 = vmatpush1.bf16.msra.mxu1 %v7267_v30 }
0x1005   : > { %4280 = vmatprep.subr.bf16.mxu0 %v7272_v31  ;;  %4321 = vmatprep.subr.bf16.mxu1 %v7275_v32 }
0x1008   : > { %4281 = vmatpush1.bf16.msra.mxu0 %v7270_v34  ;;  %4322 = vmatpush1.bf16.msra.mxu1 %v7273_v35 }
0x1009   : > { %6600 = vmatprep.subr.bf16.mxu0 %v7923_v2  ;;  %6606 = vmatprep.subr.bf16.mxu1 %v7923_v2 }
0x100b   : > { %4299 = vmatmul.mubr.bf16.vlgmr.msra.gmra.mrb[44].mxu0 %v8766_v22  ;;  %4340 = vmatmul.mubr.bf16.vlgmr.msra.gmra.mrb[60].mxu1 %v8766_v22  ;;  %v3581_v22 = vrot.slane %v6055_v47, %v1600_v36 }
0x100c   : > { %6602 = vmatprep.mubr.msk.bf16.mxu0 %vm7924_vm2, %v7923_v2  ;;  %6608 = vmatprep.mubr.msk.bf16.mxu1 %vm7924_vm2, %v7923_v2 }
0x109e   : > { %v4136_v40 = vpop.f32.mrb[36].mxu0  ;;  %v4177_v17 = vpop.f32.mrb[52].mxu1 }
0x109f   : > { %v4138_v7 = vpop.f32.mrb[37].mxu0  ;;  %v4179_v43 = vpop.f32.mrb[53].mxu1  ;;  %v4137_v58 = vadd.f32 %v4136_v40, %v3565_v37  ;;  %v4178_v14 = vadd.f32 %v4177_v17, %v3573_v3 }
0x10a0   : > { %v4140_v39 = vpop.f32.mrb[38].mxu0  ;;  %v4181_v45 = vpop.f32.mrb[54].mxu1  ;;  %v4139_v23 = vadd.f32 %v4138_v7, %v3569_v61  ;;  %v4180_v60 = vadd.f32 %v4179_v43, %v3577_v41 }
0x10a1   : > { %v4141_v44 = vpop.f32.mrb[39].mxu0  ;;  %v4182_v46 = vpop.f32.mrb[55].mxu1  ;;  %v4348_v59 = vpack.c.bf16 %v4137_v58, %v4137_v58  ;;  %v4554_v10 = vpack.c.bf16 %v4178_v14, %v4178_v14 }
0x10a2   : > { %v4451_v5 = vpack.c.bf16 %v4139_v23, %v4139_v23  ;;  %v4657_v30 = vpack.c.bf16 %v4180_v60, %v4180_v60  ;;  %v7385_v44 = vld [vmem:[%s8652_s0] ss:$0 sm:$0xff]  ;;  %s9108_s0 = sld [smem:[#allocation37_spill]] }
0x10a8   : > { %s1016_s2 = sand.u32 1, %s9108_s0  }
0x10a9   : > { %s5860_s28 = sshll.u32 %s1016_s2, 3  ;;  %s5591_s27 = scalar_lea.sflag [#allocation4], %s1016_s2 }
0x10aa   : > { %s1018_s6 = scalar_lea.vmem [#allocation26], %s5860_s28  ;;  %s7926_s28 = smov [#allocation26]  }
0x10ab   : > { %s5604_s5 = sshll.u32 %s1018_s6, 4  ;;  %s7810_s10 = sshll.u32 %s7926_s28, 4  ;;  %s8937_s5 = int_to_ptr.vmem [resolvable:$true] %s5604_s5  ;;  %s7811_s10 = int_to_ptr.vmem [resolvable:$false] %s7810_s10 }
0x10ac   : > { %p7813_p8 = scmp.lt.s32.totalorder %s8937_s5, %s7811_s10 }
0x10be   : > { %v4218_v57 = vpop.f32.mrb[40].mxu0  ;;  %v4259_v48 = vpop.f32.mrb[56].mxu1 }
0x10bf   : > { %v4219_v49 = vadd.f32 %v4218_v57, %v3581_v22  ;;  %v4220_v51 = vpop.f32.mrb[41].mxu0  ;;  %v4261_v52 = vpop.f32.mrb[57].mxu1  ;;  %v4260_v1 = vadd.f32 %v4259_v48, %v3589_v62 }
0x10c0   : > { %v4222_v53 = vpop.f32.mrb[42].mxu0  ;;  %v4263_v50 = vpop.f32.mrb[58].mxu1  ;;  %v4221_v36 = vadd.f32 %v4220_v51, %v3585_v55  ;;  %v4262_v9 = vadd.f32 %v4261_v52, %v3593_v8 }
0x10c1   : > { %v4349_v54 = vpack.c.bf16 %v4219_v49, %v4219_v49  ;;  %v4223_v56 = vpop.f32.mrb[43].mxu0  ;;  %v4264_v38 = vpop.f32.mrb[59].mxu1  ;;  %v4555_v6 = vpack.c.bf16 %v4260_v1, %v4260_v1 }
0x10c2   : > { %v4452_v0 = vpack.c.bf16 %v4221_v36, %v4221_v36  ;;  %v4658_v13 = vpack.c.bf16 %v4262_v9, %v4262_v9 }
0x10c3   : > { %6601 = vmatpush3.bf16.xpose.msra.mxu0 %v4349_v54 }
0x10c4   : > { %6612 = vmatprep.subr.bf16.mxu0 %v7923_v2 }
0x10ca   : > { %6603 = vmatmul.mubr.bf16.vlgmr.msra.gmra.mrb[48].mxu0 %v4348_v59 }
0x10cb   : > { %6613 = vmatpush3.bf16.xpose.msra.mxu0 %v4452_v0  ;;  %6614 = vmatprep.mubr.msk.bf16.mxu0 %vm7924_vm2, %v7923_v2 }
0x10cc   : > { %6624 = vmatprep.subr.bf16.mxu0 %v7923_v2 }
0x10d2   : > { %6615 = vmatmul.mubr.bf16.vlgmr.msra.gmra.mrb[52].mxu0 %v4451_v5 }
0x10d3   : > { %6625 = vmatpush3.bf16.xpose.msra.mxu0 %v4555_v6  ;;  %6626 = vmatprep.mubr.msk.bf16.mxu0 %vm7924_vm2, %v7923_v2 }
0x10d4   : > { %6636 = vmatprep.subr.bf16.mxu0 %v7923_v2 }
0x10da   : > { %6627 = vmatmul.mubr.bf16.vlgmr.msra.gmra.mrb[56].mxu0 %v4554_v10 }
0x10db   : > { %6637 = vmatpush3.bf16.xpose.msra.mxu0 %v4658_v13  ;;  %6638 = vmatprep.mubr.msk.bf16.mxu0 %vm7924_vm2, %v7923_v2 }
0x10de   : > { %v4300_v21 = vpop.f32.mrb[44].mxu0  ;;  %v4341_v24 = vpop.f32.mrb[60].mxu1 }
0x10df   : > { %v4301_v26 = vadd.f32 %v4300_v21, %v3597_v33  ;;  %v8815_v63 = vadd.f32 %v4341_v24, %v3605_v16  ;;  %v4302_v27 = vpop.f32.mrb[45].mxu0  ;;  %v4343_v29 = vpop.f32.mrb[61].mxu1 }
0x10e0   : > { %v8817_v31 = vadd.f32 %v4302_v27, %v3601_v20  ;;  %v8819_v15 = vadd.f32 %v4343_v29, %v3609_v19  ;;  %v4304_v32 = vpop.f32.mrb[46].mxu0  ;;  %v4345_v34 = vpop.f32.mrb[62].mxu1 }
0x10e1   : > { %v4404_v35 = vpack.c.bf16 %v4301_v26, %v4301_v26  ;;  %v4305_v40 = vpop.f32.mrb[47].mxu0  ;;  %v4346_v25 = vpop.f32.mrb[63].mxu1  ;;  %v7277_v32 = vld [vmem:[#allocation5 + $0x100] sm:$0xff]   ;;  %v7278_v34 = vld [vmem:[#allocation5 + $0x148] sm:$0xff]  }
0x10e2   : > { %6639 = vmatmul.mubr.bf16.vlgmr.msra.gmra.mrb[60].mxu0 %v4657_v30  ;;  %v7276_v30 = vld [vmem:[#allocation5 + $0x140] sm:$0xff]   ;;  %v7280_v40 = vld [vmem:[#allocation5 + $0x150] sm:$0xff]  }
0x10e3   : > { %v4409_v28 = vsel %vm2435_vm4, %v4404_v35, 0  ;;  %6361 = vmatprep.subr.bf16.mxu0 %v7276_v30  ;;  %v7279_v35 = vld [vmem:[#allocation5 + $0x108] sm:$0xff]   ;;  %v7281_v25 = vld [vmem:[#allocation5 + $0x110] sm:$0xff]  }
0x10e4   : > { %6607 = vmatpush3.bf16.msra.mxu1 %v4409_v28  ;;  %6362 = vmatpush3.bf16.msra.mxu0 %v7277_v32  ;;  %v7282_v28 = vld [vmem:[#allocation5 + $0x158] sm:$0xff]  }
0x10e5   : > { %6618 = vmatprep.subr.bf16.mxu1 %v7923_v2  ;;  %6363 = vmatprep.subr.bf16.mxu0 %v7278_v34 }
0x10e8   : > { %6364 = vmatpush3.bf16.msra.mxu0 %v7279_v35 }
0x10e9   : > { %6365 = vmatprep.subr.bf16.mxu0 %v7280_v40 }
0x10ec   : > { %6366 = vmatpush3.bf16.msra.mxu0 %v7281_v25 }
0x10ed   : > { %6367 = vmatprep.subr.bf16.mxu0 %v7282_v28 }
0x119d   : > { %v4384_v17 = vpop.f32.mrb[48].mxu0 }
0x119e   : > { %v4390_v7 = vmul.f32 0.35355338, %v4384_v17  ;;  %v6604_v43 = vpop.f32.mrb[49].mxu0  ;;  %v7283_v17 = vld [vmem:[#allocation5 + $0x118] sm:$0xff]  }
0x119f   : > { %v4387_v39 = vpop.f32.mrb[50].mxu0  ;;  %6368 = vmatpush3.bf16.msra.mxu0 %v7283_v17  ;;  %v7286_v43 = vld [vmem:[#allocation5 + $0x120] sm:$0xff]  }
0x11a0   : > { %v6605_v45 = vpop.f32.mrb[51].mxu0  ;;  %v4391_v46 = vadd.f32 %v7385_v44, %v4390_v7  ;;  %v7284_v7 = vld [vmem:[#allocation5 + $0x160] sm:$0xff]  }
0x11a1   : > { %6369 = vmatprep.subr.bf16.mxu0 %v7284_v7 }
0x11a2   : > { %v4392_v47 = vsel %vm2418_vm3, %v4391_v46, -inf }
0x11a3   : > { %4393 = vmax.xlane.f32.xlu0 %v4392_v47  ;;  %6370 = vmatpush3.bf16.msra.mxu0 %v7286_v43 }
0x11a5   : > { %v4487_v22 = vpop.f32.mrb[52].mxu0 }
0x11a6   : > { %v4493_v57 = vmul.f32 0.35355338, %v4487_v22  ;;  %v6616_v48 = vpop.f32.mrb[53].mxu0 }
0x11a7   : > { %v4490_v49 = vpop.f32.mrb[54].mxu0 }
0x11a8   : > { %v6617_v51 = vpop.f32.mrb[55].mxu0  ;;  %v4494_v52 = vadd.f32 %v7385_v44, %v4493_v57 }
0x11a9   : > { %v4610_v51 = vpack.c.bf16 %v8815_v63, %v8815_v63 }
0x11aa   : > { %v4495_v37 = vsel %vm2418_vm3, %v4494_v52, -inf }
0x11ab   : > { %4496 = vmax.xlane.f32.xlu1 %v4495_v37  ;;  %v4615_v37 = vsel %vm2435_vm4, %v4610_v51, 0 }
0x11ad   : > { %v4590_v53 = vpop.f32.mrb[56].mxu0 }
0x11ae   : > { %v4596_v50 = vmul.f32 0.35355338, %v4590_v53  ;;  %v6628_v54 = vpop.f32.mrb[57].mxu0 }
0x11af   : > { %v4593_v55 = vpop.f32.mrb[58].mxu0  ;;  %v4713_v54 = vpack.c.bf16 %v8819_v15, %v8819_v15  ;;  %v7288_v15 = vld [vmem:[#allocation5 + $0x168] sm:$0xff]  }
0x11b0   : > { %v6629_v56 = vpop.f32.mrb[59].mxu0  ;;  %v4597_v38 = vadd.f32 %v7385_v44, %v4596_v50  ;;  %6371 = vmatprep.subr.bf16.mxu0 %v7288_v15 }
0x11b1   : > { %v7285_v56 = vld [vmem:[#allocation5 + $0x1c0] sm:$0xff]  }
0x11b2   : > { %v4598_v58 = vsel %vm2418_vm3, %v4597_v38, -inf }
0x11b3   : > { %4599 = vmax.xlane.f32.xlu0 %v4598_v58 }
0x11b5   : > { %v4693_v36 = vpop.f32.mrb[60].mxu0 }
0x11b6   : > { %v4699_v59 = vmul.f32 0.35355338, %v4693_v36  ;;  %v6640_v61 = vpop.f32.mrb[61].mxu0 }
0x11b7   : > { %v4696_v62 = vpop.f32.mrb[62].mxu0 }
0x11b8   : > { %v6641_v0 = vpop.f32.mrb[63].mxu0  ;;  %v4700_v23 = vadd.f32 %v7385_v44, %v4699_v59  ;;  %v7287_v59 = vld [vmem:[#allocation5 + $0x180] sm:$0xff]   ;;  %v7289_v62 = vld [vmem:[#allocation5 + $0x1c8] sm:$0xff]  }
0x11b9   : > { %v7290_v0 = vld [vmem:[#allocation5 + $0x128] sm:$0xff]  }
0x11ba   : > { %v4701_v1 = vsel %vm2418_vm3, %v4700_v23, -inf  ;;  %6372 = vmatpush3.bf16.msra.mxu0 %v7290_v0 }
0x11bb   : > { %4702 = vmax.xlane.f32.xlu1 %v4701_v1  ;;  %v7292_v1 = vld [vmem:[#allocation5 + $0x170] sm:$0xff]  }
0x11bc   : > { %6373 = vmatprep.subr.bf16.mxu0 %v7292_v1 }
0x1230   : > { %v4394_v3 = vpop.xlane.xlu0 %4393 }
0x1231   : > { %v4395_v5 = vsub.f32 %v4391_v46, %v4394_v3  ;;  %v4507_v46 = vpack.c.bf16 %v8817_v31, %v8817_v31  ;;  %v7293_v3 = vld [vmem:[#allocation5 + $0x1d0] sm:$0xff]  }
0x1233   : > { %v4396_v6 = vmul.f32 1.442695, %v4395_v5  ;;  %v4512_v57 = vsel %vm2435_vm4, %v4507_v46, 0  ;;  %v7294_v5 = vld [vmem:[#allocation5 + $0x130] sm:$0xff]  }
0x1234   : > { %6374 = vmatpush3.bf16.msra.mxu0 %v7294_v5 }
0x1235   : > { %7358 = vpow2.f32 %v4396_v6  ;;  %v7295_v6 = vld [vmem:[#allocation5 + $0x190] sm:$0xff]  }
0x1238   : > { %v4497_v8 = vpop.xlane.xlu1 %4496 }
0x1239   : > { %v4498_v14 = vsub.f32 %v4494_v52, %v4497_v8  ;;  %v7296_v8 = vld [vmem:[#allocation5 + $0x178] sm:$0xff]  }
0x123a   : > { %6375 = vmatprep.subr.bf16.mxu0 %v7296_v8 }
0x123b   : > { %v4499_v9 = vmul.f32 1.442695, %v4498_v14  ;;  %v7297_v14 = vld [vmem:[#allocation5 + $0x1d8] sm:$0xff]  }
0x123d   : > { %7360 = vpow2.f32 %v4499_v9  ;;  %v7298_v9 = vld [vmem:[#allocation5 + $0x138] sm:$0xff]  }
0x123e   : > { %6376 = vmatpush3.bf16.msra.mxu0 %v7298_v9 }
0x123f   : > { %v7359_v10 = vpop.eup %7358  ;;  %6648 = vmatprep.subr.bf16.mxu0 %v7923_v2 }
0x1240   : > { %v4600_v41 = vpop.xlane.xlu0 %4599  ;;  %v4398_v12 = vsel %vm2418_vm3, %v7359_v10, 0.0 }
0x1241   : > { %v4601_v13 = vsub.f32 %v4597_v38, %v4600_v41  ;;  %4399 = vadd.xlane.f32.xlu0 %v4398_v12  ;;  %v4718_v38 = vsel %vm2435_vm4, %v4713_v54, 0  ;;  %v7300_v41 = vld [vmem:[#allocation5 + $0x1e0] sm:$0xff]  }
0x1242   : > { %v7301_v12 = vld [vmem:[#allocation5 + $0x1a0] sm:$0xff]  }
0x1243   : > { %v4602_v33 = vmul.f32 1.442695, %v4601_v13  ;;  %v7302_v13 = vld [vmem:[#allocation5 + $0x1e8] sm:$0xff]  }
0x1245   : > { %7362 = vpow2.f32 %v4602_v33  ;;  %v7303_v33 = vld [vmem:[#allocation5 + $0x1a8] sm:$0xff]  }
0x1247   : > { %v7361_v16 = vpop.eup %7360 }
0x1248   : > { %v4703_v60 = vpop.xlane.xlu1 %4702  ;;  %v4501_v20 = vsel %vm2418_vm3, %v7361_v16, 0.0 }
0x1249   : > { %v4704_v19 = vsub.f32 %v4700_v23, %v4703_v60  ;;  %4502 = vadd.xlane.f32.xlu1 %v4501_v20  ;;  %v7291_v23 = vld [vmem:[#allocation5 + $0x188] sm:$0xff]   ;;  %v7305_v60 = vld [vmem:[#allocation5 + $0x1b0] sm:$0xff]   ;;  %v7306_v20 = vld [vmem:[#allocation5 + $0x1f8] sm:$0xff]  }
0x124b   : > { %v4705_v21 = vmul.f32 1.442695, %v4704_v19  ;;  %v7307_v19 = vld [vmem:[#allocation5 + $0x1b8] sm:$0xff]  }
0x124d   : > { %7364 = vpow2.f32 %v4705_v21 }
0x124f   : > { %v7363_v24 = vpop.eup %7362 }
0x1250   : > { %v4604_v26 = vsel %vm2418_vm3, %v7363_v24, 0.0 }
0x1251   : > { %4605 = vadd.xlane.f32.xlu0 %v4604_v26 }
0x1257   : > { %v7365_v27 = vpop.eup %7364 }
0x1258   : > { %v4707_v29 = vsel %vm2418_vm3, %v7365_v27, 0.0 }
0x1259   : > { %4708 = vadd.xlane.f32.xlu1 %v4707_v29 }
0x12ce   : > { %v4400_v39 = vpop.xlane.xlu0 %4399 }
0x12cf   : > { %7366 = vrcp.f32 %v4400_v39 }
0x12d6   : > { %v4503_v45 = vpop.xlane.xlu1 %4502 }
0x12d7   : > { %7368 = vrcp.f32 %v4503_v45 }
0x12d9   : > { %v7367_v44 = vpop.eup %7366 }
0x12da   : > { %v4402_v47 = vmul.f32 %v7367_v44, %v7359_v10  ;;  %v7299_v10 = vld [vmem:[#allocation5 + $0x198] sm:$0xff]  }
0x12dc   : > { %v4403_v22 = vpack.c.bf16 %v4402_v47, %v4402_v47 }
0x12de   : > { %6609 = vmatmul.mubr.msk.bf16.vlgmr.msra.gmra.mrb[64].mxu1 %vm2418_vm3, %v4403_v22  ;;  %v4606_v48 = vpop.xlane.xlu0 %4605 }
0x12df   : > { %6619 = vmatpush3.bf16.msra.mxu1 %v4512_v57  ;;  %7370 = vrcp.f32 %v4606_v48  ;;  %6620 = vmatprep.mubr.msk.bf16.mxu1 %vm7924_vm2, %v7923_v2 }
0x12e0   : > { %6630 = vmatprep.subr.bf16.mxu1 %v7923_v2 }
0x12e1   : > { %v7369_v49 = vpop.eup %7368 }
0x12e2   : > { %v4505_v52 = vmul.f32 %v7369_v49, %v7361_v16  ;;  %v7304_v16 = vld [vmem:[#allocation5 + $0x1f0] sm:$0xff]  }
0x12e4   : > { %v4506_v31 = vpack.c.bf16 %v4505_v52, %v4505_v52  ;;  %v6158_v52 = vld [vmem:[%s9102_s24 + $0x1] ss:$0 sm:$0xff] }
0x12e6   : > { %6621 = vmatmul.mubr.msk.bf16.vlgmr.msra.gmra.mrb[68].mxu1 %vm2418_vm3, %v4506_v31  ;;  %v4709_v53 = vpop.xlane.xlu1 %4708 }
0x12e7   : > { %6631 = vmatpush3.bf16.msra.mxu1 %v4615_v37  ;;  %7372 = vrcp.f32 %v4709_v53  ;;  %6632 = vmatprep.mubr.msk.bf16.mxu1 %vm7924_vm2, %v7923_v2 }
0x12e8   : > { %6642 = vmatprep.subr.bf16.mxu1 %v7923_v2 }
0x12e9   : > { %v7371_v50 = vpop.eup %7370 }
0x12ea   : > { %v4608_v55 = vmul.f32 %v7371_v50, %v7363_v24 }
0x12ec   : > { %v4609_v63 = vpack.c.bf16 %v4608_v55, %v4608_v55 }
0x12ee   : > { %6633 = vmatmul.mubr.msk.bf16.vlgmr.msra.gmra.mrb[72].mxu1 %vm2418_vm3, %v4609_v63 }
0x12ef   : > { %6643 = vmatpush3.bf16.msra.mxu1 %v4718_v38  ;;  %6644 = vmatprep.mubr.msk.bf16.mxu1 %vm7924_vm2, %v7923_v2 }
0x12f0   : > { %6383 = vmatprep.subr.bf16.mxu1 %v7285_v56 }
0x12f1   : > { %v7373_v58 = vpop.eup %7372 }
0x12f2   : > { %v4711_v36 = vmul.f32 %v7373_v58, %v7365_v27 }
0x12f4   : > { %v4712_v61 = vpack.c.bf16 %v4711_v36, %v4711_v36 }
0x12f6   : > { %6645 = vmatmul.mubr.msk.bf16.vlgmr.msra.gmra.mrb[76].mxu1 %vm2418_vm3, %v4712_v61 }
0x12f7   : > { %6384 = vmatpush3.bf16.msra.mxu1 %v7287_v59 }
0x12f8   : > { %6385 = vmatprep.subr.bf16.mxu1 %v7289_v62 }
0x12fb   : > { %6386 = vmatpush3.bf16.msra.mxu1 %v7291_v23  ;;  %v5888_v23 = vld [vmem:[%s9103_s4 + $0x1] sm:$0x1] }
0x12fc   : > { %6387 = vmatprep.subr.bf16.mxu1 %v7293_v3  ;;  %v6191_v3 = vld [vmem:[#allocation14 + $0x1] ss:$0 sm:$0xff] }
0x12ff   : > { %6388 = vmatpush3.bf16.msra.mxu1 %v7295_v6  ;;  %v6192_v6 = vld [vmem:[#allocation16 + $0x1] ss:$0 sm:$0xff] }
0x1300   : > { %6389 = vmatprep.subr.bf16.mxu1 %v7297_v14 }
0x1303   : > { %6390 = vmatpush3.bf16.msra.mxu1 %v7299_v10 }
0x1304   : > { %6391 = vmatprep.subr.bf16.mxu1 %v7300_v41  ;;  %v7308_v41 = vld [vmem:[#allocation10 + $0x40] sm:$0xff]  }
0x1307   : > { %6392 = vmatpush3.bf16.msra.mxu1 %v7301_v12  ;;  %v7309_v12 = vld [vmem:[#allocation10 + $0x48] sm:$0xff]  }
0x1308   : > { %6393 = vmatprep.subr.bf16.mxu1 %v7302_v13 }
0x130b   : > { %6394 = vmatpush3.bf16.msra.mxu1 %v7303_v33 }
0x130c   : > { %6395 = vmatprep.subr.bf16.mxu1 %v7304_v16 }
0x130f   : > { %6396 = vmatpush3.bf16.msra.mxu1 %v7305_v60 }
0x1310   : > { %6397 = vmatprep.subr.bf16.mxu1 %v7306_v20  ;;  %v7310_v20 = vld [vmem:[#allocation10 + $0x50] sm:$0xff]  }
0x1313   : > { %6398 = vmatpush3.bf16.msra.mxu1 %v7307_v19  ;;  %v7312_v19 = vld [vmem:[#allocation10 + $0x60] sm:$0xff]  }
0x1314   : > { %6668 = vmatprep.subr.bf16.mxu1 %v7923_v2 }
0x13b1   : > { %v4445_v21 = vpop.f32.mrb[64].mxu1 }
0x13b2   : > { %v6610_v24 = vpop.f32.mrb[65].mxu1  ;;  %v4825_v34 = vpack.c.bf16 %v4445_v21, %v4445_v21  ;;  %v7313_v21 = vld [vmem:[#allocation10 + $0x68] sm:$0xff]  }
0x13b3   : > { %v4448_v26 = vpop.f32.mrb[66].mxu1  ;;  %v7314_v24 = vld [vmem:[#allocation10 + $0x70] sm:$0xff]  }
0x13b4   : > { %v6611_v27 = vpop.f32.mrb[67].mxu1  ;;  %v7315_v26 = vld [vmem:[#allocation10 + $0x78] sm:$0xff]  }
0x13b5   : > { %v7316_v27 = vld [vmem:[#allocation11 + $0x40] sm:$0xff]  }
0x13b9   : > { %v4548_v29 = vpop.f32.mrb[68].mxu1 }
0x13ba   : > { %v4826_v30 = vpack.c.bf16 %v4548_v29, %v4548_v29  ;;  %v6622_v32 = vpop.f32.mrb[69].mxu1 }
0x13bb   : > { %v4551_v35 = vpop.f32.mrb[70].mxu1 }
0x13bc   : > { %v6623_v40 = vpop.f32.mrb[71].mxu1  ;;  %5061 = vmatprep.mubr.bf16.mxu0 %v4826_v30  ;;  %v6193_v35 = vld [vmem:[#allocation17 + $0x1] ss:$0 sm:$0xff] }
0x13bd   : > { %5062 = vmatmul.mubr.bf16.vlgmr.msra.gmra.mrb[64].mxu0 %v4825_v34 }
0x13be   : > { %6664 = vmatprep.mubr.msk.bf16.mxu0 %vm7924_vm2, %v7923_v2  ;;  %6649 = vmatpush3.bf16.msra.mxu0 %v7308_v41 }
0x13bf   : > { %6650 = vmatprep.subr.bf16.mxu0 %v7923_v2 }
0x13c1   : > { %v4651_v25 = vpop.f32.mrb[72].mxu1 }
0x13c2   : > { %v6634_v28 = vpop.f32.mrb[73].mxu1  ;;  %v4827_v44 = vpack.c.bf16 %v4651_v25, %v4651_v25  ;;  %6651 = vmatpush3.bf16.msra.mxu0 %v7309_v12  ;;  %v6194_v25 = vld [vmem:[#allocation19 + $0x1] ss:$0 sm:$0xff]  ;;  %v6214_v12 = vld [vmem:[#allocation20 + $0x1] ss:$0 sm:$0xff] }
0x13c3   : > { %v4654_v17 = vpop.f32.mrb[74].mxu1  ;;  %6652 = vmatprep.subr.bf16.mxu0 %v7923_v2 }
0x13c4   : > { %v6635_v7 = vpop.f32.mrb[75].mxu1 }
0x13c6   : > { %6653 = vmatpush3.bf16.msra.mxu0 %v7310_v20  ;;  %v7325_v20 = vld [vmem:[%s9106_s13 + $0x8] sm:$0xff]  }
0x13c7   : > { %6654 = vmatprep.subr.bf16.mxu0 %v7923_v2 }
0x13c9   : > { %v4754_v43 = vpop.f32.mrb[76].mxu1 }
0x13ca   : > { %v4828_v39 = vpack.c.bf16 %v4754_v43, %v4754_v43  ;;  %v6646_v45 = vpop.f32.mrb[77].mxu1  ;;  %v7317_v43 = vld [vmem:[#allocation11 + $0x48] sm:$0xff]  }
0x13cb   : > { %v4757_v46 = vpop.f32.mrb[78].mxu1  ;;  %v7319_v45 = vld [vmem:[#allocation11 + $0x58] sm:$0xff]  }
0x13cc   : > { %v6647_v47 = vpop.f32.mrb[79].mxu1  ;;  %5101 = vmatprep.mubr.bf16.mxu1 %v4828_v39  ;;  %v7318_v39 = vld [vmem:[#allocation11 + $0x50] sm:$0xff]   ;;  %v7321_v46 = vld [vmem:[#allocation11 + $0x68] sm:$0xff]  }
0x13cd   : > { %5102 = vmatmul.mubr.bf16.vlgmr.msra.gmra.mrb[80].mxu1 %v4827_v44  ;;  %v7320_v44 = vld [vmem:[#allocation11 + $0x60] sm:$0xff]   ;;  %v7322_v47 = vld [vmem:[#allocation11 + $0x70] sm:$0xff]  }
0x13ce   : > { %6684 = vmatprep.mubr.msk.bf16.mxu1 %vm7924_vm2, %v7923_v2  ;;  %6669 = vmatpush3.bf16.msra.mxu1 %v7316_v27  ;;  %v7326_v27 = vld [vmem:[%s9106_s13 + $0x10] sm:$0xff]  }
0x13cf   : > { %6670 = vmatprep.subr.bf16.mxu1 %v7923_v2 }
0x13d2   : > { %6671 = vmatpush3.bf16.msra.mxu1 %v7317_v43 }
0x13d3   : > { %6672 = vmatprep.subr.bf16.mxu1 %v7923_v2 }
0x13d6   : > { %6673 = vmatpush3.bf16.msra.mxu1 %v7318_v39  ;;  %v6217_v39 = vld [vmem:[#allocation25] ss:$0 sm:$0xff] }
0x13d7   : > { %6674 = vmatprep.subr.bf16.mxu1 %v7923_v2 }
0x13da   : > { %6675 = vmatpush3.bf16.msra.mxu1 %v7319_v45 }
0x13db   : > { %6676 = vmatprep.subr.bf16.mxu1 %v7923_v2 }
0x13de   : > { %6677 = vmatpush3.bf16.msra.mxu1 %v7320_v44 }
0x13df   : > { %6678 = vmatprep.subr.bf16.mxu1 %v7923_v2 }
0x13e2   : > { %6679 = vmatpush3.bf16.msra.mxu1 %v7321_v46  ;;  %v6218_v46 = vld [vmem:[%s9109_s30] ss:$0 sm:$0xff]  ;;  %s7812_s30 = scalar_lea.vmem %s7811_s10, 256 }
0x13e3   : > { %6680 = vmatprep.subr.bf16.mxu1 %v7923_v2 }
0x13e6   : > { %6681 = vmatpush3.bf16.msra.mxu1 %v7322_v47 }
0x13e7   : > { %6682 = vmatprep.subr.bf16.mxu1 %v7923_v2 }
0x1490   : > { %v6377_v22 = vpop.f32.mrb[64].mxu0 }
0x1491   : > { %v6378_v57 = vpop.f32.mrb[65].mxu0 }
0x1492   : > { %v6379_v48 = vadd.f32 %v6378_v57, %v6377_v22  ;;  %v6380_v49 = vpop.f32.mrb[66].mxu0  ;;  %v7323_v22 = vld [vmem:[#allocation11 + $0x78] sm:$0xff]   ;;  %v6196_v57 = vld [vmem:[%s9104_s9 + $0x1] ss:$0 sm:$0xff]  ;;  %s9111_s9 = sld [smem:[#allocation60_spill]] }
0x1493   : > { %v6381_v51 = vpop.f32.mrb[67].mxu0  ;;  %6683 = vmatpush3.bf16.msra.mxu1 %v7323_v22 }
0x1494   : > { %v5064_v53 = vadd.f32 %v6379_v48, %v6158_v52 }
0x14a0   : > { %v6399_v31 = vpop.f32.mrb[80].mxu1 }
0x14a1   : > { %v6400_v37 = vpop.f32.mrb[81].mxu1 }
0x14a2   : > { %v6401_v50 = vadd.f32 %v6400_v37, %v6399_v31  ;;  %v6402_v54 = vpop.f32.mrb[82].mxu1 }
0x14a3   : > { %v6403_v55 = vpop.f32.mrb[83].mxu1 }
0x14a4   : > { %v5104_v63 = vadd.f32 %v6401_v50, %v5064_v53 }
0x14a6   : > { %v5109_v56 = vadd.f32 %v5104_v63, %v8762_v18  ;;  %v1473_v18 = vadd.f32 %v5888_v23, %v8621_v4 }
0x14a8   : > { %5114 = vadd.xlane.f32.xlu0 %v5109_v56  ;;  %v5143_v14 = vrot.slane %v1473_v18, %v8604_v42  ;;  %v7311_v42 = vld [vmem:[#allocation10 + $0x58] sm:$0xff]  }
0x14a9   : > { %6655 = vmatpush3.bf16.msra.mxu0 %v7311_v42 }
0x14aa   : > { %6656 = vmatprep.subr.bf16.mxu0 %v7923_v2 }
0x14ad   : > { %6657 = vmatpush3.bf16.msra.mxu0 %v7312_v19 }
0x14ae   : > { %6658 = vmatprep.subr.bf16.mxu0 %v7923_v2 }
0x14b1   : > { %6659 = vmatpush3.bf16.msra.mxu0 %v7313_v21 }
0x14b2   : > { %6660 = vmatprep.subr.bf16.mxu0 %v7923_v2 }
0x14b5   : > { %6661 = vmatpush3.bf16.msra.mxu0 %v7314_v24 }
0x14b6   : > { %6662 = vmatprep.subr.bf16.mxu0 %v7923_v2 }
0x14b9   : > { %6663 = vmatpush3.bf16.msra.mxu0 %v7315_v26 }
0x14ba   : > { %6688 = vmatprep.subr.bf16.mxu0 %v7923_v2 }
0x1535   : > { %v5115_v38 = vpop.xlane.xlu0 %5114 }
0x1536   : > { %v5116_v58 = vmul.f32 0.03125, %v5115_v38 }
0x1538   : > { %v5117_v36 = vsub.f32 %v5109_v56, %v5116_v58 }
0x153a   : > { %v5118_v59 = vmul.f32 %v8524_v11, %v5117_v36 }
0x153c   : > { %v5119_v61 = vmul.f32 %v5118_v59, %v5118_v59 }
0x153e   : > { %5120 = vadd.xlane.f32.xlu1 %v5119_v61 }
0x15cb   : > { %v5121_v15 = vpop.xlane.xlu1 %5120 }
0x15cc   : > { %v5122_v62 = vmul.f32 0.03125, %v5121_v15 }
0x15ce   : > { %v5123_v0 = vadd.f32 1e-05, %v5122_v62 }
0x15d0   : > { %7374 = vrsqrt.f32 %v5123_v0 }
0x15da   : > { %v7375_v1 = vpop.eup %7374 }
0x15db   : > { %v5125_v5 = vmul.f32 %v7375_v1, %v5118_v59  ;;  %v6205_v59 = vld [vmem:[#allocation13 + $0x1] ss:$0 sm:$0xff] }
0x15dd   : > { %v5132_v8 = vmul.f32 %v6191_v3, %v5125_v5 }
0x15df   : > { %v5139_v9 = vadd.f32 %v6192_v6, %v5132_v8 }
0x15e1   : > { %v5144_v10 = vadd.f32 %v5143_v14, %v5139_v9 }
0x15e3   : > { %5149 = vadd.xlane.f32.xlu0 %v5144_v10 }
0x1670   : > { %v5150_v13 = vpop.xlane.xlu0 %5149 }
0x1671   : > { %v5151_v33 = vmul.f32 0.03125, %v5150_v13 }
0x1673   : > { %v5152_v16 = vsub.f32 %v5144_v10, %v5151_v33  ;;  %v6215_v33 = vld [vmem:[#allocation22 + $0x1] ss:$0 sm:$0xff] }
0x1675   : > { %v5153_v4 = vmul.f32 %v8524_v11, %v5152_v16 }
0x1677   : > { %v5154_v60 = vmul.f32 %v5153_v4, %v5153_v4 }
0x1679   : > { %5155 = vadd.xlane.f32.xlu1 %v5154_v60  ;;  %v7324_v60 = vld [vmem:[%s9105_s7] sm:$0xff]   ;;  %s9107_s7 = sld [smem:[#allocation46_spill]] }
0x167f   : > { %s1028_s1 = scalar_lea.vmem %s9107_s7, %s5861_s3  ;;  %s6228_s3 = sshll.u32 %s8083_s8, 7 }
0x1680   : > { %s8935_s0 = scalar_lea.hbm %s9111_s9, %s6228_s3  ;;  %s7806_s8 = scalar_lea.vmem %s8937_s5, 128 }
0x1681   : > { %p7807_p3 = scmp.ne.s32.totalorder %s8937_s5, %s7806_s8  ;;  %p7814_p11 = scmp.lt.s32.totalorder %s7812_s30, %s7806_s8 }
0x1683   : > { %p7815_p13 = por %p7814_p11, %p7813_p8 }
0x1706   : > { %v5156_v29 = vpop.xlane.xlu1 %5155 }
0x1707   : > { %v5157_v30 = vmul.f32 0.03125, %v5156_v29  ;;  %v7327_v29 = vld [vmem:[%s9106_s13 + $0x18] sm:$0xff]  }
0x1709   : > { %v5158_v32 = vadd.f32 1e-05, %v5157_v30  ;;  %v7329_v30 = vld [vmem:[%s9106_s13 + $0x28] sm:$0xff]  }
0x170b   : > { %7376 = vrsqrt.f32 %v5158_v32  ;;  %v7330_v32 = vld [vmem:[%s9106_s13 + $0x30] sm:$0xff]  }
0x1715   : > { %v7377_v34 = vpop.eup %7376 }
0x1716   : > { %v5160_v40 = vmul.f32 %v7377_v34, %v5153_v4  ;;  %v7331_v34 = vld [vmem:[%s9106_s13 + $0x38] sm:$0xff]  }
0x1718   : > { %v5167_v28 = vmul.f32 %v6193_v35, %v5160_v40  ;;  %v1479_v35 = vld [vmem:[%s1028_s1] sm:$0xff]  ;;  %s9110_s1 = sld [smem:[#allocation42_spill]] }
0x171a   : > { %v5174_v17 = vadd.f32 %v6194_v25, %v5167_v28 }
0x171c   : > { %v5192_v7 = vpack.c.bf16 %v5174_v17, %v5174_v17 }
0x171e   : > { %6665 = vmatmul.mubr.bf16.vlgmr.msra.gmra.mrb[68].mxu0 %v5192_v7  ;;  %v6216_v7 = vld [vmem:[#allocation23] ss:$0 sm:$0xff]  ;;  %p9112_p4 = scmp.ne.s32.totalorder %s9110_s1, 0 }
0x171f   : > { %6704 = vmatprep.mubr.msk.bf16.mxu0 %vm7924_vm2, %v7923_v2  ;;  %6689 = vmatpush3.bf16.msra.mxu0 %v7324_v60 }
0x1720   : > { %6690 = vmatprep.subr.bf16.mxu0 %v7923_v2  ;;  %p7808_p12 = pnand %p7807_p3, %p9112_p4 }
0x1722   : > { %p7809_p7 = pneg %p7808_p12 }
0x1723   : > { %6691 = vmatpush3.bf16.msra.mxu0 %v7325_v20 }
0x1724   : > { %6692 = vmatprep.subr.bf16.mxu0 %v7923_v2  ;;  %p7816_p1 = pnand %p7815_p13, %p7809_p7 }
0x1727   : > { %6693 = vmatpush3.bf16.msra.mxu0 %v7326_v27 }
0x1728   : > { %6694 = vmatprep.subr.bf16.mxu0 %v7923_v2 }
0x172b   : > { %6695 = vmatpush3.bf16.msra.mxu0 %v7327_v29 }
0x172c   : > { %6696 = vmatprep.subr.bf16.mxu0 %v7923_v2 }
0x17f1   : > { %v5283_v48 = vpop.f32.mrb[68].mxu0 }
0x17f2   : > { %v5284_v49 = vadd.f32 %v6196_v57, %v5283_v48  ;;  %v6666_v51 = vpop.f32.mrb[69].mxu0 }
0x17f3   : > { %v5286_v52 = vpop.f32.mrb[70].mxu0 }
0x17f4   : > { %v5290_v31 = vmul.f32 0.044715, %v5284_v49  ;;  %v6667_v37 = vpop.f32.mrb[71].mxu0  ;;  %v5289_v56 = vmul.f32 0.5, %v5284_v49 }
0x17f6   : > { %v5291_v53 = vmul.f32 %v5290_v31, %v5284_v49 }
0x17f8   : > { %v5292_v50 = vmul.f32 %v5291_v53, %v5284_v49 }
0x17fa   : > { %v5293_v54 = vadd.f32 %v5292_v50, %v5284_v49 }
0x17fc   : > { %v5294_v55 = vmul.f32 0.7978846, %v5293_v54 }
0x17fe   : > { %7378 = vtanh.f32 %v5294_v55 }
0x1808   : > { %v7379_v63 = vpop.eup %7378 }
0x1809   : > { %v5296_v38 = vadd.f32 1.0, %v7379_v63 }
0x180b   : > { %v5297_v58 = vmul.f32 %v5296_v38, %v5289_v56 }
0x180d   : > { %v5315_v36 = vpack.c.bf16 %v5297_v58, %v5297_v58 }
0x180f   : > { %6685 = vmatmul.mubr.bf16.vlgmr.msra.gmra.mrb[84].mxu1 %v5315_v36 }
0x18e2   : > { %v5406_v61 = vpop.f32.mrb[84].mxu1 }
0x18e3   : > { %v5407_v15 = vadd.f32 %v6205_v59, %v5406_v61  ;;  %v6686_v62 = vpop.f32.mrb[85].mxu1 }
0x18e4   : > { %v5409_v0 = vpop.f32.mrb[86].mxu1 }
0x18e5   : > { %v6687_v23 = vpop.f32.mrb[87].mxu1  ;;  %v5412_v1 = vadd.f32 %v5407_v15, %v5174_v17 }
0x18e7   : > { %5417 = vadd.xlane.f32.xlu0 %v5412_v1 }
0x1974   : > { %v5418_v3 = vpop.xlane.xlu0 %5417 }
0x1975   : > { %v5419_v18 = vmul.f32 0.03125, %v5418_v3 }
0x1977   : > { %v5420_v5 = vsub.f32 %v5412_v1, %v5419_v18 }
0x1979   : > { %v5421_v6 = vmul.f32 %v8524_v11, %v5420_v5 }
0x197b   : > { %v5422_v8 = vmul.f32 %v5421_v6, %v5421_v6 }
0x197d   : > { %5423 = vadd.xlane.f32.xlu1 %v5422_v8 }
0x1a0a   : > { %v5424_v14 = vpop.xlane.xlu1 %5423 }
0x1a0b   : > { %v5425_v9 = vmul.f32 0.03125, %v5424_v14 }
0x1a0d   : > { %v5426_v10 = vadd.f32 1e-05, %v5425_v9 }
0x1a0f   : > { %7380 = vrsqrt.f32 %v5426_v10 }
0x1a19   : > { %v7381_v41 = vpop.eup %7380 }
0x1a1a   : > { %v5428_v13 = vmul.f32 %v7381_v41, %v5421_v6 }
0x1a1c   : > { %v5435_v16 = vmul.f32 %v6214_v12, %v5428_v13 }
0x1a1e   : > { %v5442_v4 = vadd.f32 %v6215_v33, %v5435_v16 }
0x1a20   : > { %5445 = vadd.xlane.f32.xlu0 %v5442_v4 }
0x1a36   : > { %5585 = vperm.xlu0 %6907, %v1479_v35  }
0x1aad   : > { %v5446_v42 = vpop.xlane.xlu0 %5445 }
0x1aae   : > { %v5447_v19 = vmul.f32 0.03125, %v5446_v42 }
0x1ab0   : > { %v5448_v21 = vsub.f32 %v5442_v4, %v5447_v19 }
0x1ab2   : > { %v5449_v24 = vmul.f32 %v8524_v11, %v5448_v21  ;;  %v7328_v11 = vld [vmem:[%s9106_s13 + $0x20] sm:$0xff]  }
0x1ab3   : > { %6697 = vmatpush3.bf16.msra.mxu0 %v7328_v11 }
0x1ab4   : > { %v5450_v26 = vmul.f32 %v5449_v24, %v5449_v24  ;;  %6698 = vmatprep.subr.bf16.mxu0 %v7923_v2 }
0x1ab5   : > { %v5586_v22 = vpop.permute.xlu0 %5585 }
0x1ab6   : > { %5451 = vadd.xlane.f32.xlu1 %v5450_v26 }
0x1ab7   : > { %6699 = vmatpush3.bf16.msra.mxu0 %v7329_v30 }
0x1ab8   : > { %6700 = vmatprep.subr.bf16.mxu0 %v7923_v2 }
0x1abb   : > { %6701 = vmatpush3.bf16.msra.mxu0 %v7330_v32 }
0x1abc   : > { %6702 = vmatprep.subr.bf16.mxu0 %v7923_v2 }
0x1abf   : > { %6703 = vmatpush3.bf16.msra.mxu0 %v7331_v34 }
0x1b43   : > { %v5452_v40 = vpop.xlane.xlu1 %5451 }
0x1b44   : > { %v5453_v25 = vmul.f32 0.03125, %v5452_v40 }
0x1b46   : > { %v5454_v28 = vadd.f32 1e-05, %v5453_v25 }
0x1b48   : > { %7382 = vrsqrt.f32 %v5454_v28 }
0x1b52   : > { %v7383_v17 = vpop.eup %7382 }
0x1b53   : > { %v5456_v43 = vmul.f32 %v7383_v17, %v5449_v24 }
0x1b55   : > { %v5463_v45 = vmul.f32 %v6216_v7, %v5456_v43 }
0x1b57   : > { %v5470_v2 = vadd.f32 %v6217_v39, %v5463_v45 }
0x1b59   : > { %v5487_v44 = vpack.c.bf16 %v5470_v2, %v5470_v2 }
0x1b5b   : > { %6705 = vmatmul.mubr.bf16.vlgmr.msra.gmra.mrb[72].mxu0 %v5487_v44 }
0x1c2e   : > { %v5577_v47 = vpop.f32.mrb[72].mxu0 }
0x1c2f   : > { %v5578_v57 = vadd.f32 %v6218_v46, %v5577_v47  ;;  %v6706_v48 = vpop.f32.mrb[73].mxu0 }
0x1c30   : > { %v5580_v49 = vpop.f32.mrb[74].mxu0 }
0x1c31   : > { %v5588_v51 = vmul.f32 %v5586_v22, %v5578_v57  ;;  %v6707_v52 = vpop.f32.mrb[75].mxu0 }
0x1c33   : > { %5589 = vst [vmem:[%s1018_s6] sm:$0xff] %v5588_v51 }
0x1c34   : > { %7819 = shalt.err (!%p7816_p1)
}
0x1c35   : > { %s7820_s4 = scalar_lea.hbm %s8935_s0, 128  ;;  %s7824_s6 = scalar_lea.hbm %s9111_s9, 256 }
0x1c36   : > { %p7821_p6 = scmp.ne.s32.totalorder %s8935_s0, %s7820_s4  ;;  %p7825_p10 = scmp.lt.u32.totalorder %s8935_s0, %s9111_s9 }
0x1c37   : > { %p7826_p0 = scmp.lt.u32.totalorder %s7824_s6, %s7820_s4  ;;  %p7828_p3 = scmp.lt.u32.totalorder %s7820_s4, %s8935_s0 }
0x1c38   : > { %p7822_p9 = pnand %p7821_p6, %p9112_p4 }
0x1c39   : > { %p7827_p2 = por %p7826_p0, %p7825_p10 }
0x1c3a   : > { %p7823_p5 = pneg %p7822_p9 }
0x1c3b   : > { %p7829_p12 = por %p7828_p3, %p7827_p2 }
0x1c3d   : > { %p7830_p7 = pnand %p7829_p12, %p7823_p5 }
0x1c3f   : > { %7833 = shalt.err (!%p7830_p7)
}
0x1c40   : > { %6768 = dma.vmem_to_hbm [thread:$0]  (%p9112_p4), %s8937_s5, 128, %s8935_s0, %s5591_s27  }
0x1c41 PF: > { %s9113_s8 = sld [smem:[#allocation39_spill]]  ;;  %s9114_s10 = sld [smem:[#allocation36_spill]] }
0x1c42   : > { %s9115_s30 = sld [smem:[#allocation43_spill]] }
0x1c47   : > { %p6850_p8 = scmp.ge.s32.totalorder %s9113_s8, 2  ;;  %s5616_s2 = sand.u32 1, %s9114_s10  }
0x1c48   : > { %p9116_p11 = scmp.ne.s32.totalorder %s9115_s30, 0  ;;  %s5617_s3 = scalar_lea.sflag [#allocation4], %s5616_s2 }
0x1c4a   : > { %p6817_p13 = pnand %p6850_p8, %p9116_p11 }
0x1c4c   : > { %7883 = dma.done.wait (!%p6817_p13), %s5617_s3, 128  }
0x1c4d   : > { %7885 = vsyncadd (!%p6817_p13), %s5617_s3, 4294967168  ;;  %s9117_s28 = sld [smem:[#allocation40_spill]]  ;;  %s9118_s27 = sld [smem:[#allocation37_spill]] }
0x1c4e   : > { %s9119_s3 = sld [smem:[#allocation38_spill]]  ;;  %s9120_s7 = sld [smem:[#allocation41_spill]] }
0x1c53   : > { %p44_p1 = scmp.ge.s32.totalorder %s9117_s28, 4  }
0x1c55   :  { %46 = sbr.rel (!%p44_p1) target bundleno = 29 (0x1d), region = 244 }
0x1c5c   :  { %5622 = vsyncpa [#allocation3], 1 }
0x1c5d   :  { %5624 = vsyncpa [#allocation3 + $0x1], 1 }
0x1c5e   :  { %5625 = vsyncpa [#allocation6], 1 }
0x1c5f   :  { %5626 = vsyncpa [#allocation9], 1 }
0x1c60   :  { %5627 = vsyncpa [#allocation12], 1 }
0x1c61   :  { %5628 = vsyncpa [#allocation15], 1 }
0x1c62   :  { %5629 = vsyncpa [#allocation18], 1 }
0x1c63   :  { %5630 = vsyncpa [#allocation21], 1 }
0x1c64   :  { %5631 = vsyncpa [#allocation24], 1 }
0x1c65   :  { %5632 = vsyncpa [#allocation4], 1 }
0x1c66   :  { %5634 = vsyncpa [#allocation4 + $0x1], 1 }

</bundles_post_ra>
